<compile_context>
chip_gen: v5e
topology: v5e:2x2
jax: 0.10.0
libtpu: 0.0.40
codegen_flags: <defaults>
</compile_context>

<pallas_src>
import functools
import math

import jax
import jax.numpy as jnp
from jax import lax
from jax.experimental import pallas as pl
from jax.experimental.pallas import tpu as pltpu


# Packed per-layer parameters streamed by the layer grid axis (all stacked over L).
_LAYER_PARAM_ORDER = [
    "wqkv1", "bqkv1", "wo1",          # self-attention: fused QKV + output projection
    "wq2", "wkv2", "bkv2", "wo2",     # cross-attention: Q on trg, fused KV on enc_src
    "w1", "b1", "w2",                 # position-wise feed forward
    "vecs",                           # (L,10,D): bo1,bq2,bo2,b2,g1,be1,g2,be2,g3,be3
]


def _layer_norm(x, g, b, eps=1e-5):
    mu = jnp.mean(x, axis=-1, keepdims=True)
    var = jnp.mean((x - mu) ** 2, axis=-1, keepdims=True)
    return (x - mu) * lax.rsqrt(var + eps) * g + b


def _mm(x, w):
    # Cast the activation to the (possibly bf16) weight dtype; accumulate in f32.
    return jnp.dot(x.astype(w.dtype), w, preferred_element_type=jnp.float32)


# ----------------------------- fused embed + decoder-layer stack ---------------
def _decoder_stack_kernel(idx_ref,                                    # scalar prefetch (SMEM)
                          wemb_hbm, pos_ref, enc_ref, tbias_ref, sbias_ref,
                          wqkv1_ref, bqkv1_ref, wo1_ref,
                          wq2_ref, wkv2_ref, bkv2_ref, wo2_ref,
                          w1_ref, b1_ref, w2_ref, vecs_ref,
                          x_ref, attn_ref,
                          dma_sems, o_scr,
                          *, b_blk, t_len, s_len, n_heads, head_dim,
                          n_layers, n_sem, emb_scale):
    f32 = jnp.float32
    D = n_heads * head_dim
    nblk = b_blk * t_len                        # tokens per grid step (matmul M dim)
    bb = pl.program_id(0)                       # batch-block axis ("parallel")
    l = pl.program_id(1)                        # layer axis ("arbitrary")
    inv_scale = f32(1.0 / math.sqrt(head_dim))

    # --- layer 0: embedding = DMA row-gather from the HBM word table -----------
    @pl.when(l == 0)
    def _():
        tok0 = bb * nblk
        n_chunks = (nblk + n_sem - 1) // n_sem           # static

        def chunk(c, carry):
            base = c * n_sem
            # bounded ring: at most n_sem outstanding single-row copies
            for j in range(n_sem):
                @pl.when(base + j < nblk)
                def _():
                    i = base + j
                    pltpu.make_async_copy(
                        wemb_hbm.at[pl.ds(idx_ref[tok0 + i], 1), :],
                        o_scr.at[pl.ds(i, 1), :],
                        dma_sems.at[j]).start()
            for j in range(n_sem):
                @pl.when(base + j < nblk)
                def _():
                    # all copies have identical size; each wait retires one of them
                    pltpu.make_async_copy(
                        wemb_hbm.at[pl.ds(0, 1), :],
                        o_scr.at[pl.ds(0, 1), :],
                        dma_sems.at[j]).wait()
            return carry

        lax.fori_loop(0, n_chunks, chunk, 0)
        emb = o_scr[...].reshape(b_blk, t_len, D)
        # word_emb * sqrt(D) + pos_emb (pos broadcasts over the batch block)
        x_ref[...] = (emb * f32(emb_scale) + pos_ref[...]).reshape(nblk, D)

    x = x_ref[...]                                       # (nblk, D), resident carry
    enc = enc_ref[...].reshape(b_blk * s_len, D)         # batch folded into M
    tbias = tbias_ref[...]                               # (b_blk, 1, T, T) additive bias
    sbias = sbias_ref[...]                               # (b_blk, 1, 1, S)

    vec = vecs_ref[0].astype(f32)                        # (10, D) packed small vectors
    bo1, bq2, bo2, b2 = vec[0:1], vec[1:2], vec[2:3], vec[3:4]
    g1, be1, g2, be2 = vec[4:5], vec[5:6], vec[6:7], vec[7:8]
    g3, be3 = vec[8:9], vec[9:10]

    def attend(q, k, v, bias, cdt):
        # q: (b_blk, T, H, hd)   k/v: (b_blk, Tk, H, hd)   bias[b] broadcastable (H,T,Tk)
        a_per_b = []
        for b in range(b_blk):                           # static unroll (small Bb)
            e = jnp.einsum("qhd,khd->hqk", q[b].astype(cdt), k[b].astype(cdt),
                           preferred_element_type=f32) * inv_scale
            e = e + bias[b]                              # additive mask bias
            e = e - jnp.max(e, axis=-1, keepdims=True)
            p = jnp.exp(e)
            a = p * pl.reciprocal(jnp.sum(p, axis=-1, keepdims=True), approx=True)
            o = jnp.einsum("hqk,khd->qhd", a.astype(cdt), v[b].astype(cdt),
                           preferred_element_type=f32)
            o_scr[pl.ds(b * t_len, t_len), :] = o.reshape(t_len, D)
            a_per_b.append(a)
        return o_scr[...], a_per_b

    # ---------------- self attention + residual + layernorm --------------------
    w_qkv1 = wqkv1_ref[0]
    cdt = w_qkv1.dtype
    qkv = _mm(x, w_qkv1) + bqkv1_ref[0].astype(f32)      # one fused (D,3D) matmul
    q = qkv[:, :D].reshape(b_blk, t_len, n_heads, head_dim)
    k = qkv[:, D:2 * D].reshape(b_blk, t_len, n_heads, head_dim)
    v = qkv[:, 2 * D:].reshape(b_blk, t_len, n_heads, head_dim)
    o_flat, _ = attend(q, k, v, tbias, cdt)
    sa = _mm(o_flat, wo1_ref[0]) + bo1
    x = _layer_norm(x + sa, g1, be1)

    # ---------------- encoder (cross) attention + residual + layernorm ---------
    q2 = (_mm(x, wq2_ref[0]) + bq2).reshape(b_blk, t_len, n_heads, head_dim)
    kv2 = _mm(enc, wkv2_ref[0]) + bkv2_ref[0].astype(f32)   # fused (D,2D) matmul
    k2 = kv2[:, :D].reshape(b_blk, s_len, n_heads, head_dim)
    v2 = kv2[:, D:].reshape(b_blk, s_len, n_heads, head_dim)
    o2_flat, a2 = attend(q2, k2, v2, sbias, cdt)
    ca = _mm(o2_flat, wo2_ref[0]) + bo2
    x = _layer_norm(x + ca, g2, be2)

    # ---------------- position-wise feed forward + residual + layernorm --------
    h = jnp.maximum(_mm(x, w1_ref[0]) + b1_ref[0].astype(f32), 0.0)
    x = _layer_norm(x + (_mm(h, w2_ref[0]) + b2), g3, be3)

    x_ref[...] = x

    # Only the last layer's cross-attention weights are returned by the module.
    @pl.when(l == n_layers - 1)
    def _():
        for b in range(b_blk):
            attn_ref[b] = a2[b]


def decoder_stack(trg_idx, word_emb, pos_emb_t, enc_src, tbias, sbias, lp,
                  n_heads, *, batch_block=None, n_sem=8):
    B, T = trg_idx.shape
    S = enc_src.shape[1]
    D = word_emb.shape[1]
    L = lp["wqkv1"].shape[0]
    H = n_heads
    hd = D // H
    Bb = B if batch_block is None else batch_block       # whole batch per step by default
    assert B % Bb == 0
    nb = B // Bb
    nblk = Bb * T
    n_sem = max(1, min(n_sem, nblk))
    idx_flat = trg_idx.reshape(B * T).astype(jnp.int32)

    kernel = functools.partial(
        _decoder_stack_kernel, b_blk=Bb, t_len=T, s_len=S, n_heads=H,
        head_dim=hd, n_layers=L, n_sem=n_sem, emb_scale=math.sqrt(D))

    in_specs = [
        pl.BlockSpec(memory_space=pl.ANY),                          # word table in HBM
        pl.BlockSpec((T, D), lambda b, l, idx: (0, 0)),             # positional rows
        pl.BlockSpec((Bb, S, D), lambda b, l, idx: (b, 0, 0)),      # encoder output
        pl.BlockSpec((Bb, 1, T, T), lambda b, l, idx: (b, 0, 0, 0)),
        pl.BlockSpec((Bb, 1, 1, S), lambda b, l, idx: (b, 0, 0, 0)),
    ]
    args = [word_emb, pos_emb_t, enc_src, tbias, sbias]
    for name in _LAYER_PARAM_ORDER:
        arr = lp[name]                                              # stacked (L, d0, d1)
        in_specs.append(pl.BlockSpec((1,) + arr.shape[1:],
                                     lambda b, l, idx: (l, 0, 0)))
        args.append(arr)

    out_shapes = (jax.ShapeDtypeStruct((B * T, D), jnp.float32),
                  jax.ShapeDtypeStruct((B, H, T, S), jnp.float32))
    out_specs = [pl.BlockSpec((nblk, D), lambda b, l, idx: (b, 0)),
                 pl.BlockSpec((Bb, H, T, S), lambda b, l, idx: (b, 0, 0, 0))]

    # Explicit VMEM budget: 2x (double-buffered) input blocks + outputs + scratch.
    def _nbytes(a):
        return int(a.size) * a.dtype.itemsize
    blk = _nbytes(pos_emb_t)
    blk += (_nbytes(enc_src) + _nbytes(tbias) + _nbytes(sbias)) // nb
    for name in _LAYER_PARAM_ORDER:
        blk += _nbytes(lp[name]) // L
    resident = 2 * nblk * D * 4 + Bb * H * T * S * 4                # x out + o_scr + attn
    est = 2 * blk + 2 * resident + (8 << 20)
    vmem_limit = int(min(max(est, 32 << 20), 100 << 20))

    grid_spec = pltpu.PrefetchScalarGridSpec(
        num_scalar_prefetch=1,
        grid=(nb, L),
        in_specs=in_specs,
        out_specs=out_specs,
        scratch_shapes=[pltpu.SemaphoreType.DMA((n_sem,)),
                        pltpu.VMEM((nblk, D), jnp.float32)])

    return pl.pallas_call(
        kernel,
        out_shape=out_shapes,
        grid_spec=grid_spec,
        compiler_params=pltpu.CompilerParams(
            dimension_semantics=("parallel", "arbitrary"),
            vmem_limit_bytes=vmem_limit),
    )(idx_flat, *args)


# ----------------------------- output projection (vocab-tiled, B*T folded) -----
def _logits_kernel(x_ref, w_ref, b_ref, out_ref):
    w = w_ref[...]
    out_ref[...] = (jnp.dot(x_ref[...].astype(w.dtype), w,
                            preferred_element_type=jnp.float32)
                    + b_ref[...].astype(jnp.float32))


def logits(x_flat, w, b, tile_v=2048):
    # Batch*time folded into M: the (D, V) weight streams through VMEM exactly once.
    # tile_v defaults to a multiple of 256 (good for the 2x256^2 MXU on v6e/v7x).
    M, D = x_flat.shape
    V = w.shape[1]
    tv = min(tile_v, V)
    nv = pl.cdiv(V, tv)
    blk = M * D * 4 + (D + 1) * tv * w.dtype.itemsize + M * tv * 4
    vmem_limit = int(min(max(2 * blk + (4 << 20), 32 << 20), 100 << 20))
    return pl.pallas_call(
        _logits_kernel,
        out_shape=jax.ShapeDtypeStruct((M, V), jnp.float32),
        grid=(nv,),
        in_specs=[pl.BlockSpec((M, D), lambda vi: (0, 0)),
                  pl.BlockSpec((D, tv), lambda vi: (0, vi)),
                  pl.BlockSpec((1, tv), lambda vi: (0, vi))],
        out_specs=pl.BlockSpec((M, tv), lambda vi: (0, vi)),
        compiler_params=pltpu.CompilerParams(
            dimension_semantics=("parallel",),
            vmem_limit_bytes=vmem_limit),
    )(x_flat, w, b)


# ----------------------------- full decoder forward ----------------------------
def decoder_forward(params, trg_idx, enc_src, trg_mask, src_mask, n_heads,
                    batch_block=None):
    B, T = trg_idx.shape
    V = params["w_out"].shape[1]
    # Additive mask biases computed ONCE here instead of per (batch, layer) grid step.
    tbias = jnp.where(trg_mask == 0, jnp.float32(-1e10), jnp.float32(0.0))
    sbias = jnp.where(src_mask == 0, jnp.float32(-1e10), jnp.float32(0.0))
    x_flat, attn = decoder_stack(trg_idx, params["word_emb"],
                                 params["pos_emb"][:T], enc_src, tbias, sbias,
                                 params["layers"], n_heads,
                                 batch_block=batch_block)
    lg = logits(x_flat, params["w_out"], params["b_out"])
    return lg.reshape(B, T, V), attn


# ----------------------------- parameter init ----------------------------------
def init_params(key, vocab, d_model, n_layers, n_heads, pff_dim, max_len=500):
    k_emb, k_pos, k_out, k_layers = jax.random.split(key, 4)
    D, Pf, L = d_model, pff_dim, n_layers

    def W(k, shape, s):
        return jax.random.normal(k, shape, jnp.float32) * s

    params = {
        "word_emb": W(k_emb, (vocab, D), 1.0),        # kept f32 (DMA gather source)
        "pos_emb": W(k_pos, (max_len, D), 1.0),
        "w_out": W(k_out, (D, vocab), 0.02),
        "b_out": jnp.zeros((1, vocab), jnp.float32),
    }
    ks = iter(jax.random.split(k_layers, 14))
    layers = {
        "wqkv1": W(next(ks), (L, D, 3 * D), 0.02),    # fused self-attn Q|K|V
        "bqkv1": W(next(ks), (L, 1, 3 * D), 0.01),
        "wo1":   W(next(ks), (L, D, D), 0.02),
        "wq2":   W(next(ks), (L, D, D), 0.02),
        "wkv2":  W(next(ks), (L, D, 2 * D), 0.02),    # fused cross-attn K|V
        "bkv2":  W(next(ks), (L, 1, 2 * D), 0.01),
        "wo2":   W(next(ks), (L, D, D), 0.02),
        "w1":    W(next(ks), (L, D, Pf), 0.02),
        "b1":    W(next(ks), (L, 1, Pf), 0.01),
        "w2":    W(next(ks), (L, Pf, D), 0.02),
    }
    # Packed small per-layer vectors: [bo1, bq2, bo2, b2, g1, be1, g2, be2, g3, be3]
    bo1 = W(next(ks), (L, 1, D), 0.01)
    bq2 = W(next(ks), (L, 1, D), 0.01)
    bo2 = W(next(ks), (L, 1, D), 0.01)
    b2 = W(next(ks), (L, 1, D), 0.01)
    ones = jnp.ones((L, 1, D), jnp.float32)
    zeros = jnp.zeros((L, 1, D), jnp.float32)
    layers["vecs"] = jnp.concatenate(
        [bo1, bq2, bo2, b2, ones, zeros, ones, zeros, ones, zeros], axis=1)
    params["layers"] = layers
    return params


def cast_params(params, dtype):
    # bf16 weights (recommended on v7x); embeddings stay f32, all matmuls accumulate
    # in f32 inside the kernels (layernorm / softmax stay f32 too).
    out = dict(params)
    out["w_out"] = params["w_out"].astype(dtype)
    out["b_out"] = params["b_out"].astype(dtype)
    out["layers"] = {k: v.astype(dtype) for k, v in params["layers"].items()}
    return out


# ----------------------------- pure-JAX reference ------------------------------
def _ref_ln(x, g, b):
    mu = x.mean(-1, keepdims=True)
    var = ((x - mu) ** 2).mean(-1, keepdims=True)
    return (x - mu) / jnp.sqrt(var + 1e-5) * g + b


def ref_forward(params, trg_idx, enc_src, trg_mask, src_mask, n_heads):
    D = params["word_emb"].shape[1]
    B, T = trg_idx.shape
    H = n_heads
    hd = D // H
    x = params["word_emb"][trg_idx] * math.sqrt(D) + params["pos_emb"][:T][None]
    lp = params["layers"]
    attn = None

    def heads(y):                                     # (B, L, D) -> (B, H, L, hd)
        return y.reshape(y.shape[0], y.shape[1], H, hd).transpose(0, 2, 1, 3)

    def merge(y):                                     # (B, H, L, hd) -> (B, L, D)
        return y.transpose(0, 2, 1, 3).reshape(y.shape[0], y.shape[2], D)

    def sdpa(Q, K, V, mask):
        e = jnp.einsum("bhqd,bhkd->bhqk", Q, K) / jnp.sqrt(jnp.float32(hd))
        e = jnp.where(mask == 0, -1e10, e)
        a = jax.nn.softmax(e, axis=-1)
        return merge(jnp.einsum("bhqk,bhkd->bhqd", a, V)), a

    for l in range(lp["wqkv1"].shape[0]):
        vec = lp["vecs"][l]
        bo1, bq2, bo2, b2 = vec[0], vec[1], vec[2], vec[3]
        g1, be1, g2, be2, g3, be3 = vec[4], vec[5], vec[6], vec[7], vec[8], vec[9]
        qkv = x @ lp["wqkv1"][l] + lp["bqkv1"][l][0]
        sa, _ = sdpa(heads(qkv[..., :D]), heads(qkv[..., D:2 * D]),
                     heads(qkv[..., 2 * D:]), trg_mask)
        x = _ref_ln(x + sa @ lp["wo1"][l] + bo1, g1, be1)
        q2 = x @ lp["wq2"][l] + bq2
        kv = enc_src @ lp["wkv2"][l] + lp["bkv2"][l][0]
        ca, attn = sdpa(heads(q2), heads(kv[..., :D]), heads(kv[..., D:]), src_mask)
        x = _ref_ln(x + ca @ lp["wo2"][l] + bo2, g2, be2)
        h = jax.nn.relu(x @ lp["w1"][l] + lp["b1"][l][0])
        x = _ref_ln(x + h @ lp["w2"][l] + b2, g3, be3)
    lg = x @ params["w_out"] + params["b_out"][0]
    return lg, attn


# ----------------------------- main ---------------------------------------------
if __name__ == "__main__":
    B, T, S = 2, 8, 8                    # batch, target len, source len
    V, D, H, P, L = 50, 32, 4, 64, 2     # vocab, d_model, heads, pff_dim, layers

    key = jax.random.PRNGKey(0)
    kp, kt, ke = jax.random.split(key, 3)

    params = init_params(kp, V, D, L, H, P, max_len=500)
    trg_idx = jax.random.randint(kt, (B, T), 0, V, dtype=jnp.int32)
    enc_src = jax.random.normal(ke, (B, S, D), jnp.float32)
    trg_mask = jnp.broadcast_to(jnp.tril(jnp.ones((T, T), jnp.float32))[None, None],
                                (B, 1, T, T))
    src_mask = jnp.ones((B, 1, 1, S), jnp.float32)

    rl, ra = ref_forward(params, trg_idx, enc_src, trg_mask, src_mask, H)

    # fp32 path, whole batch folded into one grid step per layer
    lg, attn = decoder_forward(params, trg_idx, enc_src, trg_mask, src_mask, H)
    jax.block_until_ready((lg, attn))
    assert lg.shape == (B, T, V) and attn.shape == (B, H, T, S)
    assert jnp.allclose(lg, rl, atol=2e-3, rtol=2e-3), float(jnp.max(jnp.abs(lg - rl)))
    assert jnp.allclose(attn, ra, atol=2e-3, rtol=2e-3)

    # fp32 path with a sub-batched "parallel" batch axis (exercises the multi-block /
    # dual-TensorCore grid path used for larger B on v7x)
    lg_b, attn_b = decoder_forward(params, trg_idx, enc_src, trg_mask, src_mask, H,
                                   batch_block=1)
    jax.block_until_ready((lg_b, attn_b))
    assert jnp.allclose(lg_b, rl, atol=2e-3, rtol=2e-3)
    assert jnp.allclose(attn_b, ra, atol=2e-3, rtol=2e-3)

    # bf16-weight path (f32 accumulation / layernorm / softmax), looser tolerance
    lg16, attn16 = decoder_forward(cast_params(params, jnp.bfloat16),
                                   trg_idx, enc_src, trg_mask, src_mask, H)
    jax.block_until_ready((lg16, attn16))
    assert jnp.allclose(lg16, rl, atol=3e-2, rtol=3e-2), float(jnp.max(jnp.abs(lg16 - rl)))
    assert jnp.allclose(attn16, ra, atol=3e-2, rtol=3e-2)

    print("KERNEL_OK")
</pallas_src>

<mosaic_0001>
module attributes {stable_mosaic.version = 11 : i64} {
  func.func @_decoder_stack_kernel(%arg0: i32, %arg1: i32, %arg2: memref<16xi32, #tpu.memory_space<smem>>, %arg3: memref<50x32xf32, #tpu.memory_space<any>>, %arg4: memref<8x32xf32, #tpu.memory_space<vmem>>, %arg5: memref<2x8x32xf32, #tpu.memory_space<vmem>>, %arg6: memref<2x1x8x8xf32, #tpu.memory_space<vmem>>, %arg7: memref<2x1x1x8xf32, #tpu.memory_space<vmem>>, %arg8: memref<1x32x96xf32, #tpu.memory_space<vmem>>, %arg9: memref<1x1x96xf32, #tpu.memory_space<vmem>>, %arg10: memref<1x32x32xf32, #tpu.memory_space<vmem>>, %arg11: memref<1x32x32xf32, #tpu.memory_space<vmem>>, %arg12: memref<1x32x64xf32, #tpu.memory_space<vmem>>, %arg13: memref<1x1x64xf32, #tpu.memory_space<vmem>>, %arg14: memref<1x32x32xf32, #tpu.memory_space<vmem>>, %arg15: memref<1x32x64xf32, #tpu.memory_space<vmem>>, %arg16: memref<1x1x64xf32, #tpu.memory_space<vmem>>, %arg17: memref<1x64x32xf32, #tpu.memory_space<vmem>>, %arg18: memref<1x10x32xf32, #tpu.memory_space<vmem>>, %arg19: memref<16x32xf32, #tpu.memory_space<vmem>>, %arg20: memref<2x4x8x8xf32, #tpu.memory_space<vmem>>, %arg21: memref<8x!tpu.dma_semaphore, #tpu.memory_space<semaphore_mem>>, %arg22: memref<16x32xf32, #tpu.memory_space<vmem>>) attributes {dimension_semantics = [#tpu.dimension_semantics<parallel>, #tpu.dimension_semantics<arbitrary>], iteration_bounds = array<i64: 1, 2>, scalar_prefetch = 1 : i64, scratch_operands = 2 : i64, tpu.core_type = #tpu.core_type<tc>, window_params = [{}, {pipeline_mode = #tpu.pipeline_mode<synchronous>, transform_indices = @transform_1, window_bounds = array<i64: 8, 32>}, {transform_indices = @transform_2, window_bounds = array<i64: 2, 8, 32>}, {transform_indices = @transform_3, window_bounds = array<i64: 2, 1, 8, 8>}, {transform_indices = @transform_4, window_bounds = array<i64: 2, 1, 1, 8>}, {transform_indices = @transform_5, window_bounds = array<i64: 1, 32, 96>}, {transform_indices = @transform_6, window_bounds = array<i64: 1, 1, 96>}, {transform_indices = @transform_7, window_bounds = array<i64: 1, 32, 32>}, {transform_indices = @transform_8, window_bounds = array<i64: 1, 32, 32>}, {transform_indices = @transform_9, window_bounds = array<i64: 1, 32, 64>}, {transform_indices = @transform_10, window_bounds = array<i64: 1, 1, 64>}, {transform_indices = @transform_11, window_bounds = array<i64: 1, 32, 32>}, {transform_indices = @transform_12, window_bounds = array<i64: 1, 32, 64>}, {transform_indices = @transform_13, window_bounds = array<i64: 1, 1, 64>}, {transform_indices = @transform_14, window_bounds = array<i64: 1, 64, 32>}, {transform_indices = @transform_15, window_bounds = array<i64: 1, 10, 32>}, {transform_indices = @transform_16, window_bounds = array<i64: 16, 32>}, {transform_indices = @transform_17, window_bounds = array<i64: 2, 4, 8, 8>}]} {
    %c0_i32 = arith.constant 0 : i32
    %0 = arith.cmpi eq, %arg1, %c0_i32 : i32
    %1 = arith.extui %0 : i1 to i32
    %c0_i32_0 = arith.constant 0 : i32
    %2 = arith.cmpi ne, %1, %c0_i32_0 : i32
    scf.if %2 {
      %c16_i32 = arith.constant 16 : i32
      %257 = arith.muli %arg0, %c16_i32 : i32
      %c0_i32_102 = arith.constant 0 : i32
      %c2_i32 = arith.constant 2 : i32
      %258 = arith.addi %c0_i32_102, %c2_i32 : i32
      %c1_i32_103 = arith.constant 1 : i32
      scf.for %arg23 = %c0_i32_102 to %258 step %c1_i32_103  : i32 {
        %c8_i32 = arith.constant 8 : i32
        %269 = arith.muli %arg23, %c8_i32 : i32
        %c0_i32_112 = arith.constant 0 : i32
        %270 = arith.addi %269, %c0_i32_112 : i32
        %c16_i32_113 = arith.constant 16 : i32
        %271 = arith.cmpi slt, %270, %c16_i32_113 : i32
        %272 = arith.extui %271 : i1 to i32
        %c0_i32_114 = arith.constant 0 : i32
        %273 = arith.cmpi ne, %272, %c0_i32_114 : i32
        scf.if %273 {
          %c0_i32_155 = arith.constant 0 : i32
          %334 = arith.addi %269, %c0_i32_155 : i32
          %335 = arith.addi %257, %334 : i32
          %336 = arith.index_cast %335 : i32 to index
          %337 = memref.load %arg2[%336] : memref<16xi32, #tpu.memory_space<smem>>
          %c0_i32_156 = arith.constant 0 : i32
          %c0_i32_157 = arith.constant 0 : i32
          %338 = tpu.memref_slice %arg3[%337, %c0_i32_157] : memref<50x32xf32, #tpu.memory_space<any>> -> memref<1x32xf32, #tpu.memory_space<any>>
          %c0_i32_158 = arith.constant 0 : i32
          %339 = tpu.memref_slice %arg22[%334, %c0_i32_158] : memref<16x32xf32, #tpu.memory_space<vmem>> -> memref<1x32xf32, #tpu.memory_space<vmem>>
          %340 = tpu.memref_slice %arg21[%c0_i32_156] : memref<8x!tpu.dma_semaphore, #tpu.memory_space<semaphore_mem>> -> memref<1x!tpu.dma_semaphore, #tpu.memory_space<semaphore_mem>>
          %341 = tpu.memref_squeeze %340 : memref<1x!tpu.dma_semaphore, #tpu.memory_space<semaphore_mem>> -> memref<!tpu.dma_semaphore, #tpu.memory_space<semaphore_mem>>
          tpu.enqueue_dma source(%338 : memref<1x32xf32, #tpu.memory_space<any>>) target(%339 : memref<1x32xf32, #tpu.memory_space<vmem>>) target_semaphore(%341 : memref<!tpu.dma_semaphore, #tpu.memory_space<semaphore_mem>>)
        } else {
        }
        %c1_i32_115 = arith.constant 1 : i32
        %274 = arith.addi %269, %c1_i32_115 : i32
        %c16_i32_116 = arith.constant 16 : i32
        %275 = arith.cmpi slt, %274, %c16_i32_116 : i32
        %276 = arith.extui %275 : i1 to i32
        %c0_i32_117 = arith.constant 0 : i32
        %277 = arith.cmpi ne, %276, %c0_i32_117 : i32
        scf.if %277 {
          %c1_i32_155 = arith.constant 1 : i32
          %334 = arith.addi %269, %c1_i32_155 : i32
          %335 = arith.addi %257, %334 : i32
          %336 = arith.index_cast %335 : i32 to index
          %337 = memref.load %arg2[%336] : memref<16xi32, #tpu.memory_space<smem>>
          %c1_i32_156 = arith.constant 1 : i32
          %c0_i32_157 = arith.constant 0 : i32
          %338 = tpu.memref_slice %arg3[%337, %c0_i32_157] : memref<50x32xf32, #tpu.memory_space<any>> -> memref<1x32xf32, #tpu.memory_space<any>>
          %c0_i32_158 = arith.constant 0 : i32
          %339 = tpu.memref_slice %arg22[%334, %c0_i32_158] : memref<16x32xf32, #tpu.memory_space<vmem>> -> memref<1x32xf32, #tpu.memory_space<vmem>>
          %340 = tpu.memref_slice %arg21[%c1_i32_156] : memref<8x!tpu.dma_semaphore, #tpu.memory_space<semaphore_mem>> -> memref<1x!tpu.dma_semaphore, #tpu.memory_space<semaphore_mem>>
          %341 = tpu.memref_squeeze %340 : memref<1x!tpu.dma_semaphore, #tpu.memory_space<semaphore_mem>> -> memref<!tpu.dma_semaphore, #tpu.memory_space<semaphore_mem>>
          tpu.enqueue_dma source(%338 : memref<1x32xf32, #tpu.memory_space<any>>) target(%339 : memref<1x32xf32, #tpu.memory_space<vmem>>) target_semaphore(%341 : memref<!tpu.dma_semaphore, #tpu.memory_space<semaphore_mem>>)
        } else {
        }
        %c2_i32_118 = arith.constant 2 : i32
        %278 = arith.addi %269, %c2_i32_118 : i32
        %c16_i32_119 = arith.constant 16 : i32
        %279 = arith.cmpi slt, %278, %c16_i32_119 : i32
        %280 = arith.extui %279 : i1 to i32
        %c0_i32_120 = arith.constant 0 : i32
        %281 = arith.cmpi ne, %280, %c0_i32_120 : i32
        scf.if %281 {
          %c2_i32_155 = arith.constant 2 : i32
          %334 = arith.addi %269, %c2_i32_155 : i32
          %335 = arith.addi %257, %334 : i32
          %336 = arith.index_cast %335 : i32 to index
          %337 = memref.load %arg2[%336] : memref<16xi32, #tpu.memory_space<smem>>
          %c2_i32_156 = arith.constant 2 : i32
          %c0_i32_157 = arith.constant 0 : i32
          %338 = tpu.memref_slice %arg3[%337, %c0_i32_157] : memref<50x32xf32, #tpu.memory_space<any>> -> memref<1x32xf32, #tpu.memory_space<any>>
          %c0_i32_158 = arith.constant 0 : i32
          %339 = tpu.memref_slice %arg22[%334, %c0_i32_158] : memref<16x32xf32, #tpu.memory_space<vmem>> -> memref<1x32xf32, #tpu.memory_space<vmem>>
          %340 = tpu.memref_slice %arg21[%c2_i32_156] : memref<8x!tpu.dma_semaphore, #tpu.memory_space<semaphore_mem>> -> memref<1x!tpu.dma_semaphore, #tpu.memory_space<semaphore_mem>>
          %341 = tpu.memref_squeeze %340 : memref<1x!tpu.dma_semaphore, #tpu.memory_space<semaphore_mem>> -> memref<!tpu.dma_semaphore, #tpu.memory_space<semaphore_mem>>
          tpu.enqueue_dma source(%338 : memref<1x32xf32, #tpu.memory_space<any>>) target(%339 : memref<1x32xf32, #tpu.memory_space<vmem>>) target_semaphore(%341 : memref<!tpu.dma_semaphore, #tpu.memory_space<semaphore_mem>>)
        } else {
        }
        %c3_i32 = arith.constant 3 : i32
        %282 = arith.addi %269, %c3_i32 : i32
        %c16_i32_121 = arith.constant 16 : i32
        %283 = arith.cmpi slt, %282, %c16_i32_121 : i32
        %284 = arith.extui %283 : i1 to i32
        %c0_i32_122 = arith.constant 0 : i32
        %285 = arith.cmpi ne, %284, %c0_i32_122 : i32
        scf.if %285 {
          %c3_i32_155 = arith.constant 3 : i32
          %334 = arith.addi %269, %c3_i32_155 : i32
          %335 = arith.addi %257, %334 : i32
          %336 = arith.index_cast %335 : i32 to index
          %337 = memref.load %arg2[%336] : memref<16xi32, #tpu.memory_space<smem>>
          %c3_i32_156 = arith.constant 3 : i32
          %c0_i32_157 = arith.constant 0 : i32
          %338 = tpu.memref_slice %arg3[%337, %c0_i32_157] : memref<50x32xf32, #tpu.memory_space<any>> -> memref<1x32xf32, #tpu.memory_space<any>>
          %c0_i32_158 = arith.constant 0 : i32
          %339 = tpu.memref_slice %arg22[%334, %c0_i32_158] : memref<16x32xf32, #tpu.memory_space<vmem>> -> memref<1x32xf32, #tpu.memory_space<vmem>>
          %340 = tpu.memref_slice %arg21[%c3_i32_156] : memref<8x!tpu.dma_semaphore, #tpu.memory_space<semaphore_mem>> -> memref<1x!tpu.dma_semaphore, #tpu.memory_space<semaphore_mem>>
          %341 = tpu.memref_squeeze %340 : memref<1x!tpu.dma_semaphore, #tpu.memory_space<semaphore_mem>> -> memref<!tpu.dma_semaphore, #tpu.memory_space<semaphore_mem>>
          tpu.enqueue_dma source(%338 : memref<1x32xf32, #tpu.memory_space<any>>) target(%339 : memref<1x32xf32, #tpu.memory_space<vmem>>) target_semaphore(%341 : memref<!tpu.dma_semaphore, #tpu.memory_space<semaphore_mem>>)
        } else {
        }
        %c4_i32 = arith.constant 4 : i32
        %286 = arith.addi %269, %c4_i32 : i32
        %c16_i32_123 = arith.constant 16 : i32
        %287 = arith.cmpi slt, %286, %c16_i32_123 : i32
        %288 = arith.extui %287 : i1 to i32
        %c0_i32_124 = arith.constant 0 : i32
        %289 = arith.cmpi ne, %288, %c0_i32_124 : i32
        scf.if %289 {
          %c4_i32_155 = arith.constant 4 : i32
          %334 = arith.addi %269, %c4_i32_155 : i32
          %335 = arith.addi %257, %334 : i32
          %336 = arith.index_cast %335 : i32 to index
          %337 = memref.load %arg2[%336] : memref<16xi32, #tpu.memory_space<smem>>
          %c4_i32_156 = arith.constant 4 : i32
          %c0_i32_157 = arith.constant 0 : i32
          %338 = tpu.memref_slice %arg3[%337, %c0_i32_157] : memref<50x32xf32, #tpu.memory_space<any>> -> memref<1x32xf32, #tpu.memory_space<any>>
          %c0_i32_158 = arith.constant 0 : i32
          %339 = tpu.memref_slice %arg22[%334, %c0_i32_158] : memref<16x32xf32, #tpu.memory_space<vmem>> -> memref<1x32xf32, #tpu.memory_space<vmem>>
          %340 = tpu.memref_slice %arg21[%c4_i32_156] : memref<8x!tpu.dma_semaphore, #tpu.memory_space<semaphore_mem>> -> memref<1x!tpu.dma_semaphore, #tpu.memory_space<semaphore_mem>>
          %341 = tpu.memref_squeeze %340 : memref<1x!tpu.dma_semaphore, #tpu.memory_space<semaphore_mem>> -> memref<!tpu.dma_semaphore, #tpu.memory_space<semaphore_mem>>
          tpu.enqueue_dma source(%338 : memref<1x32xf32, #tpu.memory_space<any>>) target(%339 : memref<1x32xf32, #tpu.memory_space<vmem>>) target_semaphore(%341 : memref<!tpu.dma_semaphore, #tpu.memory_space<semaphore_mem>>)
        } else {
        }
        %c5_i32 = arith.constant 5 : i32
        %290 = arith.addi %269, %c5_i32 : i32
        %c16_i32_125 = arith.constant 16 : i32
        %291 = arith.cmpi slt, %290, %c16_i32_125 : i32
        %292 = arith.extui %291 : i1 to i32
        %c0_i32_126 = arith.constant 0 : i32
        %293 = arith.cmpi ne, %292, %c0_i32_126 : i32
        scf.if %293 {
          %c5_i32_155 = arith.constant 5 : i32
          %334 = arith.addi %269, %c5_i32_155 : i32
          %335 = arith.addi %257, %334 : i32
          %336 = arith.index_cast %335 : i32 to index
          %337 = memref.load %arg2[%336] : memref<16xi32, #tpu.memory_space<smem>>
          %c5_i32_156 = arith.constant 5 : i32
          %c0_i32_157 = arith.constant 0 : i32
          %338 = tpu.memref_slice %arg3[%337, %c0_i32_157] : memref<50x32xf32, #tpu.memory_space<any>> -> memref<1x32xf32, #tpu.memory_space<any>>
          %c0_i32_158 = arith.constant 0 : i32
          %339 = tpu.memref_slice %arg22[%334, %c0_i32_158] : memref<16x32xf32, #tpu.memory_space<vmem>> -> memref<1x32xf32, #tpu.memory_space<vmem>>
          %340 = tpu.memref_slice %arg21[%c5_i32_156] : memref<8x!tpu.dma_semaphore, #tpu.memory_space<semaphore_mem>> -> memref<1x!tpu.dma_semaphore, #tpu.memory_space<semaphore_mem>>
          %341 = tpu.memref_squeeze %340 : memref<1x!tpu.dma_semaphore, #tpu.memory_space<semaphore_mem>> -> memref<!tpu.dma_semaphore, #tpu.memory_space<semaphore_mem>>
          tpu.enqueue_dma source(%338 : memref<1x32xf32, #tpu.memory_space<any>>) target(%339 : memref<1x32xf32, #tpu.memory_space<vmem>>) target_semaphore(%341 : memref<!tpu.dma_semaphore, #tpu.memory_space<semaphore_mem>>)
        } else {
        }
        %c6_i32 = arith.constant 6 : i32
        %294 = arith.addi %269, %c6_i32 : i32
        %c16_i32_127 = arith.constant 16 : i32
        %295 = arith.cmpi slt, %294, %c16_i32_127 : i32
        %296 = arith.extui %295 : i1 to i32
        %c0_i32_128 = arith.constant 0 : i32
        %297 = arith.cmpi ne, %296, %c0_i32_128 : i32
        scf.if %297 {
          %c6_i32_155 = arith.constant 6 : i32
          %334 = arith.addi %269, %c6_i32_155 : i32
          %335 = arith.addi %257, %334 : i32
          %336 = arith.index_cast %335 : i32 to index
          %337 = memref.load %arg2[%336] : memref<16xi32, #tpu.memory_space<smem>>
          %c6_i32_156 = arith.constant 6 : i32
          %c0_i32_157 = arith.constant 0 : i32
          %338 = tpu.memref_slice %arg3[%337, %c0_i32_157] : memref<50x32xf32, #tpu.memory_space<any>> -> memref<1x32xf32, #tpu.memory_space<any>>
          %c0_i32_158 = arith.constant 0 : i32
          %339 = tpu.memref_slice %arg22[%334, %c0_i32_158] : memref<16x32xf32, #tpu.memory_space<vmem>> -> memref<1x32xf32, #tpu.memory_space<vmem>>
          %340 = tpu.memref_slice %arg21[%c6_i32_156] : memref<8x!tpu.dma_semaphore, #tpu.memory_space<semaphore_mem>> -> memref<1x!tpu.dma_semaphore, #tpu.memory_space<semaphore_mem>>
          %341 = tpu.memref_squeeze %340 : memref<1x!tpu.dma_semaphore, #tpu.memory_space<semaphore_mem>> -> memref<!tpu.dma_semaphore, #tpu.memory_space<semaphore_mem>>
          tpu.enqueue_dma source(%338 : memref<1x32xf32, #tpu.memory_space<any>>) target(%339 : memref<1x32xf32, #tpu.memory_space<vmem>>) target_semaphore(%341 : memref<!tpu.dma_semaphore, #tpu.memory_space<semaphore_mem>>)
        } else {
        }
        %c7_i32 = arith.constant 7 : i32
        %298 = arith.addi %269, %c7_i32 : i32
        %c16_i32_129 = arith.constant 16 : i32
        %299 = arith.cmpi slt, %298, %c16_i32_129 : i32
        %300 = arith.extui %299 : i1 to i32
        %c0_i32_130 = arith.constant 0 : i32
        %301 = arith.cmpi ne, %300, %c0_i32_130 : i32
        scf.if %301 {
          %c7_i32_155 = arith.constant 7 : i32
          %334 = arith.addi %269, %c7_i32_155 : i32
          %335 = arith.addi %257, %334 : i32
          %336 = arith.index_cast %335 : i32 to index
          %337 = memref.load %arg2[%336] : memref<16xi32, #tpu.memory_space<smem>>
          %c7_i32_156 = arith.constant 7 : i32
          %c0_i32_157 = arith.constant 0 : i32
          %338 = tpu.memref_slice %arg3[%337, %c0_i32_157] : memref<50x32xf32, #tpu.memory_space<any>> -> memref<1x32xf32, #tpu.memory_space<any>>
          %c0_i32_158 = arith.constant 0 : i32
          %339 = tpu.memref_slice %arg22[%334, %c0_i32_158] : memref<16x32xf32, #tpu.memory_space<vmem>> -> memref<1x32xf32, #tpu.memory_space<vmem>>
          %340 = tpu.memref_slice %arg21[%c7_i32_156] : memref<8x!tpu.dma_semaphore, #tpu.memory_space<semaphore_mem>> -> memref<1x!tpu.dma_semaphore, #tpu.memory_space<semaphore_mem>>
          %341 = tpu.memref_squeeze %340 : memref<1x!tpu.dma_semaphore, #tpu.memory_space<semaphore_mem>> -> memref<!tpu.dma_semaphore, #tpu.memory_space<semaphore_mem>>
          tpu.enqueue_dma source(%338 : memref<1x32xf32, #tpu.memory_space<any>>) target(%339 : memref<1x32xf32, #tpu.memory_space<vmem>>) target_semaphore(%341 : memref<!tpu.dma_semaphore, #tpu.memory_space<semaphore_mem>>)
        } else {
        }
        %c0_i32_131 = arith.constant 0 : i32
        %302 = arith.addi %269, %c0_i32_131 : i32
        %c16_i32_132 = arith.constant 16 : i32
        %303 = arith.cmpi slt, %302, %c16_i32_132 : i32
        %304 = arith.extui %303 : i1 to i32
        %c0_i32_133 = arith.constant 0 : i32
        %305 = arith.cmpi ne, %304, %c0_i32_133 : i32
        scf.if %305 {
          %c0_i32_155 = arith.constant 0 : i32
          %c0_i32_156 = arith.constant 0 : i32
          %c0_i32_157 = arith.constant 0 : i32
          %334 = tpu.memref_slice %arg3[%c0_i32_156, %c0_i32_157] : memref<50x32xf32, #tpu.memory_space<any>> -> memref<1x32xf32, #tpu.memory_space<any>>
          %c0_i32_158 = arith.constant 0 : i32
          %c0_i32_159 = arith.constant 0 : i32
          %335 = tpu.memref_slice %arg22[%c0_i32_158, %c0_i32_159] : memref<16x32xf32, #tpu.memory_space<vmem>> -> memref<1x32xf32, #tpu.memory_space<vmem>>
          %336 = tpu.memref_slice %arg21[%c0_i32_155] : memref<8x!tpu.dma_semaphore, #tpu.memory_space<semaphore_mem>> -> memref<1x!tpu.dma_semaphore, #tpu.memory_space<semaphore_mem>>
          %337 = tpu.memref_squeeze %336 : memref<1x!tpu.dma_semaphore, #tpu.memory_space<semaphore_mem>> -> memref<!tpu.dma_semaphore, #tpu.memory_space<semaphore_mem>>
          tpu.wait_dma2 semaphore(%337 : memref<!tpu.dma_semaphore, #tpu.memory_space<semaphore_mem>>) src(%334 : memref<1x32xf32, #tpu.memory_space<any>>) dst(%335 : memref<1x32xf32, #tpu.memory_space<vmem>>)
        } else {
        }
        %c1_i32_134 = arith.constant 1 : i32
        %306 = arith.addi %269, %c1_i32_134 : i32
        %c16_i32_135 = arith.constant 16 : i32
        %307 = arith.cmpi slt, %306, %c16_i32_135 : i32
        %308 = arith.extui %307 : i1 to i32
        %c0_i32_136 = arith.constant 0 : i32
        %309 = arith.cmpi ne, %308, %c0_i32_136 : i32
        scf.if %309 {
          %c1_i32_155 = arith.constant 1 : i32
          %c0_i32_156 = arith.constant 0 : i32
          %c0_i32_157 = arith.constant 0 : i32
          %334 = tpu.memref_slice %arg3[%c0_i32_156, %c0_i32_157] : memref<50x32xf32, #tpu.memory_space<any>> -> memref<1x32xf32, #tpu.memory_space<any>>
          %c0_i32_158 = arith.constant 0 : i32
          %c0_i32_159 = arith.constant 0 : i32
          %335 = tpu.memref_slice %arg22[%c0_i32_158, %c0_i32_159] : memref<16x32xf32, #tpu.memory_space<vmem>> -> memref<1x32xf32, #tpu.memory_space<vmem>>
          %336 = tpu.memref_slice %arg21[%c1_i32_155] : memref<8x!tpu.dma_semaphore, #tpu.memory_space<semaphore_mem>> -> memref<1x!tpu.dma_semaphore, #tpu.memory_space<semaphore_mem>>
          %337 = tpu.memref_squeeze %336 : memref<1x!tpu.dma_semaphore, #tpu.memory_space<semaphore_mem>> -> memref<!tpu.dma_semaphore, #tpu.memory_space<semaphore_mem>>
          tpu.wait_dma2 semaphore(%337 : memref<!tpu.dma_semaphore, #tpu.memory_space<semaphore_mem>>) src(%334 : memref<1x32xf32, #tpu.memory_space<any>>) dst(%335 : memref<1x32xf32, #tpu.memory_space<vmem>>)
        } else {
        }
        %c2_i32_137 = arith.constant 2 : i32
        %310 = arith.addi %269, %c2_i32_137 : i32
        %c16_i32_138 = arith.constant 16 : i32
        %311 = arith.cmpi slt, %310, %c16_i32_138 : i32
        %312 = arith.extui %311 : i1 to i32
        %c0_i32_139 = arith.constant 0 : i32
        %313 = arith.cmpi ne, %312, %c0_i32_139 : i32
        scf.if %313 {
          %c2_i32_155 = arith.constant 2 : i32
          %c0_i32_156 = arith.constant 0 : i32
          %c0_i32_157 = arith.constant 0 : i32
          %334 = tpu.memref_slice %arg3[%c0_i32_156, %c0_i32_157] : memref<50x32xf32, #tpu.memory_space<any>> -> memref<1x32xf32, #tpu.memory_space<any>>
          %c0_i32_158 = arith.constant 0 : i32
          %c0_i32_159 = arith.constant 0 : i32
          %335 = tpu.memref_slice %arg22[%c0_i32_158, %c0_i32_159] : memref<16x32xf32, #tpu.memory_space<vmem>> -> memref<1x32xf32, #tpu.memory_space<vmem>>
          %336 = tpu.memref_slice %arg21[%c2_i32_155] : memref<8x!tpu.dma_semaphore, #tpu.memory_space<semaphore_mem>> -> memref<1x!tpu.dma_semaphore, #tpu.memory_space<semaphore_mem>>
          %337 = tpu.memref_squeeze %336 : memref<1x!tpu.dma_semaphore, #tpu.memory_space<semaphore_mem>> -> memref<!tpu.dma_semaphore, #tpu.memory_space<semaphore_mem>>
          tpu.wait_dma2 semaphore(%337 : memref<!tpu.dma_semaphore, #tpu.memory_space<semaphore_mem>>) src(%334 : memref<1x32xf32, #tpu.memory_space<any>>) dst(%335 : memref<1x32xf32, #tpu.memory_space<vmem>>)
        } else {
        }
        %c3_i32_140 = arith.constant 3 : i32
        %314 = arith.addi %269, %c3_i32_140 : i32
        %c16_i32_141 = arith.constant 16 : i32
        %315 = arith.cmpi slt, %314, %c16_i32_141 : i32
        %316 = arith.extui %315 : i1 to i32
        %c0_i32_142 = arith.constant 0 : i32
        %317 = arith.cmpi ne, %316, %c0_i32_142 : i32
        scf.if %317 {
          %c3_i32_155 = arith.constant 3 : i32
          %c0_i32_156 = arith.constant 0 : i32
          %c0_i32_157 = arith.constant 0 : i32
          %334 = tpu.memref_slice %arg3[%c0_i32_156, %c0_i32_157] : memref<50x32xf32, #tpu.memory_space<any>> -> memref<1x32xf32, #tpu.memory_space<any>>
          %c0_i32_158 = arith.constant 0 : i32
          %c0_i32_159 = arith.constant 0 : i32
          %335 = tpu.memref_slice %arg22[%c0_i32_158, %c0_i32_159] : memref<16x32xf32, #tpu.memory_space<vmem>> -> memref<1x32xf32, #tpu.memory_space<vmem>>
          %336 = tpu.memref_slice %arg21[%c3_i32_155] : memref<8x!tpu.dma_semaphore, #tpu.memory_space<semaphore_mem>> -> memref<1x!tpu.dma_semaphore, #tpu.memory_space<semaphore_mem>>
          %337 = tpu.memref_squeeze %336 : memref<1x!tpu.dma_semaphore, #tpu.memory_space<semaphore_mem>> -> memref<!tpu.dma_semaphore, #tpu.memory_space<semaphore_mem>>
          tpu.wait_dma2 semaphore(%337 : memref<!tpu.dma_semaphore, #tpu.memory_space<semaphore_mem>>) src(%334 : memref<1x32xf32, #tpu.memory_space<any>>) dst(%335 : memref<1x32xf32, #tpu.memory_space<vmem>>)
        } else {
        }
        %c4_i32_143 = arith.constant 4 : i32
        %318 = arith.addi %269, %c4_i32_143 : i32
        %c16_i32_144 = arith.constant 16 : i32
        %319 = arith.cmpi slt, %318, %c16_i32_144 : i32
        %320 = arith.extui %319 : i1 to i32
        %c0_i32_145 = arith.constant 0 : i32
        %321 = arith.cmpi ne, %320, %c0_i32_145 : i32
        scf.if %321 {
          %c4_i32_155 = arith.constant 4 : i32
          %c0_i32_156 = arith.constant 0 : i32
          %c0_i32_157 = arith.constant 0 : i32
          %334 = tpu.memref_slice %arg3[%c0_i32_156, %c0_i32_157] : memref<50x32xf32, #tpu.memory_space<any>> -> memref<1x32xf32, #tpu.memory_space<any>>
          %c0_i32_158 = arith.constant 0 : i32
          %c0_i32_159 = arith.constant 0 : i32
          %335 = tpu.memref_slice %arg22[%c0_i32_158, %c0_i32_159] : memref<16x32xf32, #tpu.memory_space<vmem>> -> memref<1x32xf32, #tpu.memory_space<vmem>>
          %336 = tpu.memref_slice %arg21[%c4_i32_155] : memref<8x!tpu.dma_semaphore, #tpu.memory_space<semaphore_mem>> -> memref<1x!tpu.dma_semaphore, #tpu.memory_space<semaphore_mem>>
          %337 = tpu.memref_squeeze %336 : memref<1x!tpu.dma_semaphore, #tpu.memory_space<semaphore_mem>> -> memref<!tpu.dma_semaphore, #tpu.memory_space<semaphore_mem>>
          tpu.wait_dma2 semaphore(%337 : memref<!tpu.dma_semaphore, #tpu.memory_space<semaphore_mem>>) src(%334 : memref<1x32xf32, #tpu.memory_space<any>>) dst(%335 : memref<1x32xf32, #tpu.memory_space<vmem>>)
        } else {
        }
        %c5_i32_146 = arith.constant 5 : i32
        %322 = arith.addi %269, %c5_i32_146 : i32
        %c16_i32_147 = arith.constant 16 : i32
        %323 = arith.cmpi slt, %322, %c16_i32_147 : i32
        %324 = arith.extui %323 : i1 to i32
        %c0_i32_148 = arith.constant 0 : i32
        %325 = arith.cmpi ne, %324, %c0_i32_148 : i32
        scf.if %325 {
          %c5_i32_155 = arith.constant 5 : i32
          %c0_i32_156 = arith.constant 0 : i32
          %c0_i32_157 = arith.constant 0 : i32
          %334 = tpu.memref_slice %arg3[%c0_i32_156, %c0_i32_157] : memref<50x32xf32, #tpu.memory_space<any>> -> memref<1x32xf32, #tpu.memory_space<any>>
          %c0_i32_158 = arith.constant 0 : i32
          %c0_i32_159 = arith.constant 0 : i32
          %335 = tpu.memref_slice %arg22[%c0_i32_158, %c0_i32_159] : memref<16x32xf32, #tpu.memory_space<vmem>> -> memref<1x32xf32, #tpu.memory_space<vmem>>
          %336 = tpu.memref_slice %arg21[%c5_i32_155] : memref<8x!tpu.dma_semaphore, #tpu.memory_space<semaphore_mem>> -> memref<1x!tpu.dma_semaphore, #tpu.memory_space<semaphore_mem>>
          %337 = tpu.memref_squeeze %336 : memref<1x!tpu.dma_semaphore, #tpu.memory_space<semaphore_mem>> -> memref<!tpu.dma_semaphore, #tpu.memory_space<semaphore_mem>>
          tpu.wait_dma2 semaphore(%337 : memref<!tpu.dma_semaphore, #tpu.memory_space<semaphore_mem>>) src(%334 : memref<1x32xf32, #tpu.memory_space<any>>) dst(%335 : memref<1x32xf32, #tpu.memory_space<vmem>>)
        } else {
        }
        %c6_i32_149 = arith.constant 6 : i32
        %326 = arith.addi %269, %c6_i32_149 : i32
        %c16_i32_150 = arith.constant 16 : i32
        %327 = arith.cmpi slt, %326, %c16_i32_150 : i32
        %328 = arith.extui %327 : i1 to i32
        %c0_i32_151 = arith.constant 0 : i32
        %329 = arith.cmpi ne, %328, %c0_i32_151 : i32
        scf.if %329 {
          %c6_i32_155 = arith.constant 6 : i32
          %c0_i32_156 = arith.constant 0 : i32
          %c0_i32_157 = arith.constant 0 : i32
          %334 = tpu.memref_slice %arg3[%c0_i32_156, %c0_i32_157] : memref<50x32xf32, #tpu.memory_space<any>> -> memref<1x32xf32, #tpu.memory_space<any>>
          %c0_i32_158 = arith.constant 0 : i32
          %c0_i32_159 = arith.constant 0 : i32
          %335 = tpu.memref_slice %arg22[%c0_i32_158, %c0_i32_159] : memref<16x32xf32, #tpu.memory_space<vmem>> -> memref<1x32xf32, #tpu.memory_space<vmem>>
          %336 = tpu.memref_slice %arg21[%c6_i32_155] : memref<8x!tpu.dma_semaphore, #tpu.memory_space<semaphore_mem>> -> memref<1x!tpu.dma_semaphore, #tpu.memory_space<semaphore_mem>>
          %337 = tpu.memref_squeeze %336 : memref<1x!tpu.dma_semaphore, #tpu.memory_space<semaphore_mem>> -> memref<!tpu.dma_semaphore, #tpu.memory_space<semaphore_mem>>
          tpu.wait_dma2 semaphore(%337 : memref<!tpu.dma_semaphore, #tpu.memory_space<semaphore_mem>>) src(%334 : memref<1x32xf32, #tpu.memory_space<any>>) dst(%335 : memref<1x32xf32, #tpu.memory_space<vmem>>)
        } else {
        }
        %c7_i32_152 = arith.constant 7 : i32
        %330 = arith.addi %269, %c7_i32_152 : i32
        %c16_i32_153 = arith.constant 16 : i32
        %331 = arith.cmpi slt, %330, %c16_i32_153 : i32
        %332 = arith.extui %331 : i1 to i32
        %c0_i32_154 = arith.constant 0 : i32
        %333 = arith.cmpi ne, %332, %c0_i32_154 : i32
        scf.if %333 {
          %c7_i32_155 = arith.constant 7 : i32
          %c0_i32_156 = arith.constant 0 : i32
          %c0_i32_157 = arith.constant 0 : i32
          %334 = tpu.memref_slice %arg3[%c0_i32_156, %c0_i32_157] : memref<50x32xf32, #tpu.memory_space<any>> -> memref<1x32xf32, #tpu.memory_space<any>>
          %c0_i32_158 = arith.constant 0 : i32
          %c0_i32_159 = arith.constant 0 : i32
          %335 = tpu.memref_slice %arg22[%c0_i32_158, %c0_i32_159] : memref<16x32xf32, #tpu.memory_space<vmem>> -> memref<1x32xf32, #tpu.memory_space<vmem>>
          %336 = tpu.memref_slice %arg21[%c7_i32_155] : memref<8x!tpu.dma_semaphore, #tpu.memory_space<semaphore_mem>> -> memref<1x!tpu.dma_semaphore, #tpu.memory_space<semaphore_mem>>
          %337 = tpu.memref_squeeze %336 : memref<1x!tpu.dma_semaphore, #tpu.memory_space<semaphore_mem>> -> memref<!tpu.dma_semaphore, #tpu.memory_space<semaphore_mem>>
          tpu.wait_dma2 semaphore(%337 : memref<!tpu.dma_semaphore, #tpu.memory_space<semaphore_mem>>) src(%334 : memref<1x32xf32, #tpu.memory_space<any>>) dst(%335 : memref<1x32xf32, #tpu.memory_space<vmem>>)
        } else {
        }
      }
      %c2_i32_104 = arith.constant 2 : i32
      %c0_105 = arith.constant 0 : index
      %c0_106 = arith.constant 0 : index
      %259 = vector.load %arg22[%c0_105, %c0_106] : memref<16x32xf32, #tpu.memory_space<vmem>>, vector<16x32xf32>
      %260 = vector.shape_cast %259 : vector<16x32xf32> to vector<2x8x32xf32>
      %cst_107 = arith.constant 5.65685415 : f32
      %261 = vector.broadcast %cst_107 : f32 to vector<2x8x32xf32>
      %262 = arith.mulf %260, %261 : vector<2x8x32xf32>
      %c0_108 = arith.constant 0 : index
      %c0_109 = arith.constant 0 : index
      %263 = vector.load %arg4[%c0_108, %c0_109] : memref<8x32xf32, #tpu.memory_space<vmem>>, vector<8x32xf32>
      %264 = vector.shape_cast %263 : vector<8x32xf32> to vector<1x8x32xf32>
      %265 = vector.broadcast %264 : vector<1x8x32xf32> to vector<2x8x32xf32>
      %266 = arith.addf %262, %265 : vector<2x8x32xf32>
      %267 = vector.shape_cast %266 : vector<2x8x32xf32> to vector<16x32xf32>
      %c0_110 = arith.constant 0 : index
      %c0_111 = arith.constant 0 : index
      %268 = vector.load %arg19[%c0_110, %c0_111] : memref<16x32xf32, #tpu.memory_space<vmem>>, vector<16x32xf32>
      tpu.vector_store %arg19[%c0_110, %c0_111], %267 {strides = array<i32>} : memref<16x32xf32, #tpu.memory_space<vmem>>, vector<16x32xf32>,
    } else {
    }
    %c0 = arith.constant 0 : index
    %c0_1 = arith.constant 0 : index
    %3 = vector.load %arg19[%c0, %c0_1] : memref<16x32xf32, #tpu.memory_space<vmem>>, vector<16x32xf32>
    %c0_2 = arith.constant 0 : index
    %c0_3 = arith.constant 0 : index
    %c0_4 = arith.constant 0 : index
    %4 = vector.load %arg5[%c0_2, %c0_3, %c0_4] : memref<2x8x32xf32, #tpu.memory_space<vmem>>, vector<2x8x32xf32>
    %5 = vector.shape_cast %4 : vector<2x8x32xf32> to vector<16x32xf32>
    %c0_5 = arith.constant 0 : index
    %c0_6 = arith.constant 0 : index
    %c0_7 = arith.constant 0 : index
    %c0_8 = arith.constant 0 : index
    %6 = vector.load %arg6[%c0_5, %c0_6, %c0_7, %c0_8] : memref<2x1x8x8xf32, #tpu.memory_space<vmem>>, vector<2x1x8x8xf32>
    %c0_9 = arith.constant 0 : index
    %c0_10 = arith.constant 0 : index
    %c0_11 = arith.constant 0 : index
    %c0_12 = arith.constant 0 : index
    %7 = vector.load %arg7[%c0_9, %c0_10, %c0_11, %c0_12] : memref<2x1x1x8xf32, #tpu.memory_space<vmem>>, vector<2x1x1x8xf32>
    %c0_13 = arith.constant 0 : index
    %c0_14 = arith.constant 0 : index
    %c0_15 = arith.constant 0 : index
    %8 = vector.load %arg18[%c0_13, %c0_14, %c0_15] : memref<1x10x32xf32, #tpu.memory_space<vmem>>, vector<1x10x32xf32>
    %9 = vector.shape_cast %8 : vector<1x10x32xf32> to vector<10x32xf32>
    %10 = vector.extract_strided_slice %9 {offsets = [0, 0], sizes = [1, 32], strides = [1, 1]} : vector<10x32xf32> to vector<1x32xf32>
    %11 = vector.extract_strided_slice %9 {offsets = [1, 0], sizes = [1, 32], strides = [1, 1]} : vector<10x32xf32> to vector<1x32xf32>
    %12 = vector.extract_strided_slice %9 {offsets = [2, 0], sizes = [1, 32], strides = [1, 1]} : vector<10x32xf32> to vector<1x32xf32>
    %13 = vector.extract_strided_slice %9 {offsets = [3, 0], sizes = [1, 32], strides = [1, 1]} : vector<10x32xf32> to vector<1x32xf32>
    %14 = vector.extract_strided_slice %9 {offsets = [4, 0], sizes = [1, 32], strides = [1, 1]} : vector<10x32xf32> to vector<1x32xf32>
    %15 = vector.extract_strided_slice %9 {offsets = [5, 0], sizes = [1, 32], strides = [1, 1]} : vector<10x32xf32> to vector<1x32xf32>
    %16 = vector.extract_strided_slice %9 {offsets = [6, 0], sizes = [1, 32], strides = [1, 1]} : vector<10x32xf32> to vector<1x32xf32>
    %17 = vector.extract_strided_slice %9 {offsets = [7, 0], sizes = [1, 32], strides = [1, 1]} : vector<10x32xf32> to vector<1x32xf32>
    %18 = vector.extract_strided_slice %9 {offsets = [8, 0], sizes = [1, 32], strides = [1, 1]} : vector<10x32xf32> to vector<1x32xf32>
    %19 = vector.extract_strided_slice %9 {offsets = [9, 0], sizes = [1, 32], strides = [1, 1]} : vector<10x32xf32> to vector<1x32xf32>
    %c0_16 = arith.constant 0 : index
    %c0_17 = arith.constant 0 : index
    %c0_18 = arith.constant 0 : index
    %20 = vector.load %arg8[%c0_16, %c0_17, %c0_18] : memref<1x32x96xf32, #tpu.memory_space<vmem>>, vector<1x32x96xf32>
    %21 = vector.shape_cast %20 : vector<1x32x96xf32> to vector<32x96xf32>
    %cst = arith.constant dense<0.000000e+00> : vector<16x96xf32>
    %22 = tpu.matmul %3, %21, %cst {dimension_numbers = #tpu.dot_dimension_numbers<[1], [0], [0], [1], [0, 0, 1, 1], [], []>} : vector<16x32xf32>, vector<32x96xf32>, vector<16x96xf32> -> vector<16x96xf32>
    %c0_19 = arith.constant 0 : index
    %c0_20 = arith.constant 0 : index
    %c0_21 = arith.constant 0 : index
    %23 = vector.load %arg9[%c0_19, %c0_20, %c0_21] : memref<1x1x96xf32, #tpu.memory_space<vmem>>, vector<1x1x96xf32>
    %24 = vector.shape_cast %23 : vector<1x1x96xf32> to vector<1x96xf32>
    %25 = vector.broadcast %24 : vector<1x96xf32> to vector<16x96xf32>
    %26 = arith.addf %22, %25 : vector<16x96xf32>
    %27 = vector.extract_strided_slice %26 {offsets = [0, 0], sizes = [16, 32], strides = [1, 1]} : vector<16x96xf32> to vector<16x32xf32>
    %28 = vector.shape_cast %27 : vector<16x32xf32> to vector<2x8x4x8xf32>
    %29 = vector.extract_strided_slice %26 {offsets = [0, 32], sizes = [16, 32], strides = [1, 1]} : vector<16x96xf32> to vector<16x32xf32>
    %30 = vector.shape_cast %29 : vector<16x32xf32> to vector<2x8x4x8xf32>
    %31 = vector.extract_strided_slice %26 {offsets = [0, 64], sizes = [16, 32], strides = [1, 1]} : vector<16x96xf32> to vector<16x32xf32>
    %32 = vector.shape_cast %31 : vector<16x32xf32> to vector<2x8x4x8xf32>
    %33 = vector.extract_strided_slice %28 {offsets = [0, 0, 0, 0], sizes = [1, 8, 4, 8], strides = [1, 1, 1, 1]} : vector<2x8x4x8xf32> to vector<1x8x4x8xf32>
    %34 = vector.shape_cast %33 : vector<1x8x4x8xf32> to vector<8x4x8xf32>
    %35 = vector.extract_strided_slice %30 {offsets = [0, 0, 0, 0], sizes = [1, 8, 4, 8], strides = [1, 1, 1, 1]} : vector<2x8x4x8xf32> to vector<1x8x4x8xf32>
    %36 = vector.shape_cast %35 : vector<1x8x4x8xf32> to vector<8x4x8xf32>
    "tpu.trace_start"() <{level = 10 : i32, message = "qhd,khd->hqk"}> : () -> ()
    %cst_22 = arith.constant dense<0.000000e+00> : vector<4x8x8xf32>
    %37 = tpu.matmul %34, %36, %cst_22 {dimension_numbers = #tpu.dot_dimension_numbers<[2], [2], [0], [0], [0, 1, 0, 0, 1, 0], [1], [1]>} : vector<8x4x8xf32>, vector<8x4x8xf32>, vector<4x8x8xf32> -> vector<4x8x8xf32>
    "tpu.trace_stop"() : () -> ()
    %cst_23 = arith.constant 0.353553385 : f32
    %38 = vector.broadcast %cst_23 : f32 to vector<4x8x8xf32>
    %39 = arith.mulf %37, %38 : vector<4x8x8xf32>
    %40 = vector.extract_strided_slice %6 {offsets = [0, 0, 0, 0], sizes = [1, 1, 8, 8], strides = [1, 1, 1, 1]} : vector<2x1x8x8xf32> to vector<1x1x8x8xf32>
    %41 = vector.shape_cast %40 : vector<1x1x8x8xf32> to vector<1x8x8xf32>
    %42 = vector.broadcast %41 : vector<1x8x8xf32> to vector<4x8x8xf32>
    %43 = arith.addf %39, %42 : vector<4x8x8xf32>
    %cst_24 = arith.constant dense<0xFF800000> : vector<4x8xf32>
    %44 = vector.multi_reduction <maximumf>, %43, %cst_24 [2] : vector<4x8x8xf32> to vector<4x8xf32>
    %45 = vector.shape_cast %44 : vector<4x8xf32> to vector<4x8x1xf32>
    %46 = vector.broadcast %45 : vector<4x8x1xf32> to vector<4x8x8xf32>
    %47 = arith.subf %43, %46 : vector<4x8x8xf32>
    %48 = math.exp %47 : vector<4x8x8xf32>
    %cst_25 = arith.constant dense<0.000000e+00> : vector<4x8xf32>
    %49 = vector.multi_reduction <add>, %48, %cst_25 [2] : vector<4x8x8xf32> to vector<4x8xf32>
    %50 = vector.shape_cast %49 : vector<4x8xf32> to vector<4x8x1xf32>
    %51 = tpu.reciprocal %50 {approx = true} : vector<4x8x1xf32> -> vector<4x8x1xf32>
    %52 = vector.broadcast %51 : vector<4x8x1xf32> to vector<4x8x8xf32>
    %53 = arith.mulf %48, %52 : vector<4x8x8xf32>
    %54 = vector.extract_strided_slice %32 {offsets = [0, 0, 0, 0], sizes = [1, 8, 4, 8], strides = [1, 1, 1, 1]} : vector<2x8x4x8xf32> to vector<1x8x4x8xf32>
    %55 = vector.shape_cast %54 : vector<1x8x4x8xf32> to vector<8x4x8xf32>
    "tpu.trace_start"() <{level = 10 : i32, message = "hqk,khd->qhd"}> : () -> ()
    %cst_26 = arith.constant dense<0.000000e+00> : vector<4x8x8xf32>
    %56 = tpu.matmul %55, %53, %cst_26 {dimension_numbers = #tpu.dot_dimension_numbers<[0], [2], [2], [1], [0, 1, 0, 2, 1, 1], [1], [0]>} : vector<8x4x8xf32>, vector<4x8x8xf32>, vector<4x8x8xf32> -> vector<4x8x8xf32>
    %57 = tpu.transpose %56, [2, 0, 1] : vector<4x8x8xf32> -> vector<8x4x8xf32>
    "tpu.trace_stop"() : () -> ()
    %58 = vector.shape_cast %57 : vector<8x4x8xf32> to vector<8x32xf32>
    %c0_27 = arith.constant 0 : index
    %c0_28 = arith.constant 0 : index
    %59 = vector.load %arg22[%c0_27, %c0_28] : memref<16x32xf32, #tpu.memory_space<vmem>>, vector<8x32xf32>
    tpu.vector_store %arg22[%c0_27, %c0_28], %58 {strides = array<i32>} : memref<16x32xf32, #tpu.memory_space<vmem>>, vector<8x32xf32>,
    %60 = vector.extract_strided_slice %28 {offsets = [1, 0, 0, 0], sizes = [1, 8, 4, 8], strides = [1, 1, 1, 1]} : vector<2x8x4x8xf32> to vector<1x8x4x8xf32>
    %61 = vector.shape_cast %60 : vector<1x8x4x8xf32> to vector<8x4x8xf32>
    %62 = vector.extract_strided_slice %30 {offsets = [1, 0, 0, 0], sizes = [1, 8, 4, 8], strides = [1, 1, 1, 1]} : vector<2x8x4x8xf32> to vector<1x8x4x8xf32>
    %63 = vector.shape_cast %62 : vector<1x8x4x8xf32> to vector<8x4x8xf32>
    "tpu.trace_start"() <{level = 10 : i32, message = "qhd,khd->hqk"}> : () -> ()
    %cst_29 = arith.constant dense<0.000000e+00> : vector<4x8x8xf32>
    %64 = tpu.matmul %61, %63, %cst_29 {dimension_numbers = #tpu.dot_dimension_numbers<[2], [2], [0], [0], [0, 1, 0, 0, 1, 0], [1], [1]>} : vector<8x4x8xf32>, vector<8x4x8xf32>, vector<4x8x8xf32> -> vector<4x8x8xf32>
    "tpu.trace_stop"() : () -> ()
    %cst_30 = arith.constant 0.353553385 : f32
    %65 = vector.broadcast %cst_30 : f32 to vector<4x8x8xf32>
    %66 = arith.mulf %64, %65 : vector<4x8x8xf32>
    %67 = vector.extract_strided_slice %6 {offsets = [1, 0, 0, 0], sizes = [1, 1, 8, 8], strides = [1, 1, 1, 1]} : vector<2x1x8x8xf32> to vector<1x1x8x8xf32>
    %68 = vector.shape_cast %67 : vector<1x1x8x8xf32> to vector<1x8x8xf32>
    %69 = vector.broadcast %68 : vector<1x8x8xf32> to vector<4x8x8xf32>
    %70 = arith.addf %66, %69 : vector<4x8x8xf32>
    %cst_31 = arith.constant dense<0xFF800000> : vector<4x8xf32>
    %71 = vector.multi_reduction <maximumf>, %70, %cst_31 [2] : vector<4x8x8xf32> to vector<4x8xf32>
    %72 = vector.shape_cast %71 : vector<4x8xf32> to vector<4x8x1xf32>
    %73 = vector.broadcast %72 : vector<4x8x1xf32> to vector<4x8x8xf32>
    %74 = arith.subf %70, %73 : vector<4x8x8xf32>
    %75 = math.exp %74 : vector<4x8x8xf32>
    %cst_32 = arith.constant dense<0.000000e+00> : vector<4x8xf32>
    %76 = vector.multi_reduction <add>, %75, %cst_32 [2] : vector<4x8x8xf32> to vector<4x8xf32>
    %77 = vector.shape_cast %76 : vector<4x8xf32> to vector<4x8x1xf32>
    %78 = tpu.reciprocal %77 {approx = true} : vector<4x8x1xf32> -> vector<4x8x1xf32>
    %79 = vector.broadcast %78 : vector<4x8x1xf32> to vector<4x8x8xf32>
    %80 = arith.mulf %75, %79 : vector<4x8x8xf32>
    %81 = vector.extract_strided_slice %32 {offsets = [1, 0, 0, 0], sizes = [1, 8, 4, 8], strides = [1, 1, 1, 1]} : vector<2x8x4x8xf32> to vector<1x8x4x8xf32>
    %82 = vector.shape_cast %81 : vector<1x8x4x8xf32> to vector<8x4x8xf32>
    "tpu.trace_start"() <{level = 10 : i32, message = "hqk,khd->qhd"}> : () -> ()
    %cst_33 = arith.constant dense<0.000000e+00> : vector<4x8x8xf32>
    %83 = tpu.matmul %82, %80, %cst_33 {dimension_numbers = #tpu.dot_dimension_numbers<[0], [2], [2], [1], [0, 1, 0, 2, 1, 1], [1], [0]>} : vector<8x4x8xf32>, vector<4x8x8xf32>, vector<4x8x8xf32> -> vector<4x8x8xf32>
    %84 = tpu.transpose %83, [2, 0, 1] : vector<4x8x8xf32> -> vector<8x4x8xf32>
    "tpu.trace_stop"() : () -> ()
    %85 = vector.shape_cast %84 : vector<8x4x8xf32> to vector<8x32xf32>
    %c8 = arith.constant 8 : index
    %c0_34 = arith.constant 0 : index
    %86 = vector.load %arg22[%c8, %c0_34] : memref<16x32xf32, #tpu.memory_space<vmem>>, vector<8x32xf32>
    tpu.vector_store %arg22[%c8, %c0_34], %85 {strides = array<i32>} : memref<16x32xf32, #tpu.memory_space<vmem>>, vector<8x32xf32>,
    %c0_35 = arith.constant 0 : index
    %c0_36 = arith.constant 0 : index
    %87 = vector.load %arg22[%c0_35, %c0_36] : memref<16x32xf32, #tpu.memory_space<vmem>>, vector<16x32xf32>
    %c0_37 = arith.constant 0 : index
    %c0_38 = arith.constant 0 : index
    %c0_39 = arith.constant 0 : index
    %88 = vector.load %arg10[%c0_37, %c0_38, %c0_39] : memref<1x32x32xf32, #tpu.memory_space<vmem>>, vector<1x32x32xf32>
    %89 = vector.shape_cast %88 : vector<1x32x32xf32> to vector<32x32xf32>
    %cst_40 = arith.constant dense<0.000000e+00> : vector<16x32xf32>
    %90 = tpu.matmul %87, %89, %cst_40 {dimension_numbers = #tpu.dot_dimension_numbers<[1], [0], [0], [1], [0, 0, 1, 1], [], []>} : vector<16x32xf32>, vector<32x32xf32>, vector<16x32xf32> -> vector<16x32xf32>
    %91 = vector.broadcast %10 : vector<1x32xf32> to vector<16x32xf32>
    %92 = arith.addf %90, %91 : vector<16x32xf32>
    %93 = arith.addf %3, %92 : vector<16x32xf32>
    %cst_41 = arith.constant dense<0.000000e+00> : vector<16xf32>
    %94 = vector.multi_reduction <add>, %93, %cst_41 [1] : vector<16x32xf32> to vector<16xf32>
    %95 = vector.shape_cast %94 : vector<16xf32> to vector<16x1xf32>
    %cst_42 = arith.constant 3.200000e+01 : f32
    %96 = vector.broadcast %cst_42 : f32 to vector<16x1xf32>
    %97 = arith.divf %95, %96 : vector<16x1xf32>
    %98 = vector.broadcast %97 : vector<16x1xf32> to vector<16x32xf32>
    %99 = arith.subf %93, %98 : vector<16x32xf32>
    %100 = arith.mulf %99, %99 : vector<16x32xf32>
    %cst_43 = arith.constant dense<0.000000e+00> : vector<16xf32>
    %101 = vector.multi_reduction <add>, %100, %cst_43 [1] : vector<16x32xf32> to vector<16xf32>
    %102 = vector.shape_cast %101 : vector<16xf32> to vector<16x1xf32>
    %cst_44 = arith.constant 3.200000e+01 : f32
    %103 = vector.broadcast %cst_44 : f32 to vector<16x1xf32>
    %104 = arith.divf %102, %103 : vector<16x1xf32>
    %105 = vector.broadcast %97 : vector<16x1xf32> to vector<16x32xf32>
    %106 = arith.subf %93, %105 : vector<16x32xf32>
    %cst_45 = arith.constant 9.99999974E-6 : f32
    %107 = vector.broadcast %cst_45 : f32 to vector<16x1xf32>
    %108 = arith.addf %104, %107 : vector<16x1xf32>
    %109 = math.rsqrt %108 : vector<16x1xf32>
    %110 = vector.broadcast %109 : vector<16x1xf32> to vector<16x32xf32>
    %111 = arith.mulf %106, %110 : vector<16x32xf32>
    %112 = vector.broadcast %14 : vector<1x32xf32> to vector<16x32xf32>
    %113 = arith.mulf %111, %112 : vector<16x32xf32>
    %114 = vector.broadcast %15 : vector<1x32xf32> to vector<16x32xf32>
    %115 = arith.addf %113, %114 : vector<16x32xf32>
    %c0_46 = arith.constant 0 : index
    %c0_47 = arith.constant 0 : index
    %c0_48 = arith.constant 0 : index
    %116 = vector.load %arg11[%c0_46, %c0_47, %c0_48] : memref<1x32x32xf32, #tpu.memory_space<vmem>>, vector<1x32x32xf32>
    %117 = vector.shape_cast %116 : vector<1x32x32xf32> to vector<32x32xf32>
    %cst_49 = arith.constant dense<0.000000e+00> : vector<16x32xf32>
    %118 = tpu.matmul %115, %117, %cst_49 {dimension_numbers = #tpu.dot_dimension_numbers<[1], [0], [0], [1], [0, 0, 1, 1], [], []>} : vector<16x32xf32>, vector<32x32xf32>, vector<16x32xf32> -> vector<16x32xf32>
    %119 = vector.broadcast %11 : vector<1x32xf32> to vector<16x32xf32>
    %120 = arith.addf %118, %119 : vector<16x32xf32>
    %121 = vector.shape_cast %120 : vector<16x32xf32> to vector<2x8x4x8xf32>
    %c0_50 = arith.constant 0 : index
    %c0_51 = arith.constant 0 : index
    %c0_52 = arith.constant 0 : index
    %122 = vector.load %arg12[%c0_50, %c0_51, %c0_52] : memref<1x32x64xf32, #tpu.memory_space<vmem>>, vector<1x32x64xf32>
    %123 = vector.shape_cast %122 : vector<1x32x64xf32> to vector<32x64xf32>
    %cst_53 = arith.constant dense<0.000000e+00> : vector<16x64xf32>
    %124 = tpu.matmul %5, %123, %cst_53 {dimension_numbers = #tpu.dot_dimension_numbers<[1], [0], [0], [1], [0, 0, 1, 1], [], []>} : vector<16x32xf32>, vector<32x64xf32>, vector<16x64xf32> -> vector<16x64xf32>
    %c0_54 = arith.constant 0 : index
    %c0_55 = arith.constant 0 : index
    %c0_56 = arith.constant 0 : index
    %125 = vector.load %arg13[%c0_54, %c0_55, %c0_56] : memref<1x1x64xf32, #tpu.memory_space<vmem>>, vector<1x1x64xf32>
    %126 = vector.shape_cast %125 : vector<1x1x64xf32> to vector<1x64xf32>
    %127 = vector.broadcast %126 : vector<1x64xf32> to vector<16x64xf32>
    %128 = arith.addf %124, %127 : vector<16x64xf32>
    %129 = vector.extract_strided_slice %128 {offsets = [0, 0], sizes = [16, 32], strides = [1, 1]} : vector<16x64xf32> to vector<16x32xf32>
    %130 = vector.shape_cast %129 : vector<16x32xf32> to vector<2x8x4x8xf32>
    %131 = vector.extract_strided_slice %128 {offsets = [0, 32], sizes = [16, 32], strides = [1, 1]} : vector<16x64xf32> to vector<16x32xf32>
    %132 = vector.shape_cast %131 : vector<16x32xf32> to vector<2x8x4x8xf32>
    %133 = vector.extract_strided_slice %121 {offsets = [0, 0, 0, 0], sizes = [1, 8, 4, 8], strides = [1, 1, 1, 1]} : vector<2x8x4x8xf32> to vector<1x8x4x8xf32>
    %134 = vector.shape_cast %133 : vector<1x8x4x8xf32> to vector<8x4x8xf32>
    %135 = vector.extract_strided_slice %130 {offsets = [0, 0, 0, 0], sizes = [1, 8, 4, 8], strides = [1, 1, 1, 1]} : vector<2x8x4x8xf32> to vector<1x8x4x8xf32>
    %136 = vector.shape_cast %135 : vector<1x8x4x8xf32> to vector<8x4x8xf32>
    "tpu.trace_start"() <{level = 10 : i32, message = "qhd,khd->hqk"}> : () -> ()
    %cst_57 = arith.constant dense<0.000000e+00> : vector<4x8x8xf32>
    %137 = tpu.matmul %134, %136, %cst_57 {dimension_numbers = #tpu.dot_dimension_numbers<[2], [2], [0], [0], [0, 1, 0, 0, 1, 0], [1], [1]>} : vector<8x4x8xf32>, vector<8x4x8xf32>, vector<4x8x8xf32> -> vector<4x8x8xf32>
    "tpu.trace_stop"() : () -> ()
    %cst_58 = arith.constant 0.353553385 : f32
    %138 = vector.broadcast %cst_58 : f32 to vector<4x8x8xf32>
    %139 = arith.mulf %137, %138 : vector<4x8x8xf32>
    %140 = vector.extract_strided_slice %7 {offsets = [0, 0, 0, 0], sizes = [1, 1, 1, 8], strides = [1, 1, 1, 1]} : vector<2x1x1x8xf32> to vector<1x1x1x8xf32>
    %141 = vector.shape_cast %140 : vector<1x1x1x8xf32> to vector<1x1x8xf32>
    %142 = vector.broadcast %141 : vector<1x1x8xf32> to vector<4x8x8xf32>
    %143 = arith.addf %139, %142 : vector<4x8x8xf32>
    %cst_59 = arith.constant dense<0xFF800000> : vector<4x8xf32>
    %144 = vector.multi_reduction <maximumf>, %143, %cst_59 [2] : vector<4x8x8xf32> to vector<4x8xf32>
    %145 = vector.shape_cast %144 : vector<4x8xf32> to vector<4x8x1xf32>
    %146 = vector.broadcast %145 : vector<4x8x1xf32> to vector<4x8x8xf32>
    %147 = arith.subf %143, %146 : vector<4x8x8xf32>
    %148 = math.exp %147 : vector<4x8x8xf32>
    %cst_60 = arith.constant dense<0.000000e+00> : vector<4x8xf32>
    %149 = vector.multi_reduction <add>, %148, %cst_60 [2] : vector<4x8x8xf32> to vector<4x8xf32>
    %150 = vector.shape_cast %149 : vector<4x8xf32> to vector<4x8x1xf32>
    %151 = tpu.reciprocal %150 {approx = true} : vector<4x8x1xf32> -> vector<4x8x1xf32>
    %152 = vector.broadcast %151 : vector<4x8x1xf32> to vector<4x8x8xf32>
    %153 = arith.mulf %148, %152 : vector<4x8x8xf32>
    %154 = vector.extract_strided_slice %132 {offsets = [0, 0, 0, 0], sizes = [1, 8, 4, 8], strides = [1, 1, 1, 1]} : vector<2x8x4x8xf32> to vector<1x8x4x8xf32>
    %155 = vector.shape_cast %154 : vector<1x8x4x8xf32> to vector<8x4x8xf32>
    "tpu.trace_start"() <{level = 10 : i32, message = "hqk,khd->qhd"}> : () -> ()
    %cst_61 = arith.constant dense<0.000000e+00> : vector<4x8x8xf32>
    %156 = tpu.matmul %155, %153, %cst_61 {dimension_numbers = #tpu.dot_dimension_numbers<[0], [2], [2], [1], [0, 1, 0, 2, 1, 1], [1], [0]>} : vector<8x4x8xf32>, vector<4x8x8xf32>, vector<4x8x8xf32> -> vector<4x8x8xf32>
    %157 = tpu.transpose %156, [2, 0, 1] : vector<4x8x8xf32> -> vector<8x4x8xf32>
    "tpu.trace_stop"() : () -> ()
    %158 = vector.shape_cast %157 : vector<8x4x8xf32> to vector<8x32xf32>
    %c0_62 = arith.constant 0 : index
    %c0_63 = arith.constant 0 : index
    %159 = vector.load %arg22[%c0_62, %c0_63] : memref<16x32xf32, #tpu.memory_space<vmem>>, vector<8x32xf32>
    tpu.vector_store %arg22[%c0_62, %c0_63], %158 {strides = array<i32>} : memref<16x32xf32, #tpu.memory_space<vmem>>, vector<8x32xf32>,
    %160 = vector.extract_strided_slice %121 {offsets = [1, 0, 0, 0], sizes = [1, 8, 4, 8], strides = [1, 1, 1, 1]} : vector<2x8x4x8xf32> to vector<1x8x4x8xf32>
    %161 = vector.shape_cast %160 : vector<1x8x4x8xf32> to vector<8x4x8xf32>
    %162 = vector.extract_strided_slice %130 {offsets = [1, 0, 0, 0], sizes = [1, 8, 4, 8], strides = [1, 1, 1, 1]} : vector<2x8x4x8xf32> to vector<1x8x4x8xf32>
    %163 = vector.shape_cast %162 : vector<1x8x4x8xf32> to vector<8x4x8xf32>
    "tpu.trace_start"() <{level = 10 : i32, message = "qhd,khd->hqk"}> : () -> ()
    %cst_64 = arith.constant dense<0.000000e+00> : vector<4x8x8xf32>
    %164 = tpu.matmul %161, %163, %cst_64 {dimension_numbers = #tpu.dot_dimension_numbers<[2], [2], [0], [0], [0, 1, 0, 0, 1, 0], [1], [1]>} : vector<8x4x8xf32>, vector<8x4x8xf32>, vector<4x8x8xf32> -> vector<4x8x8xf32>
    "tpu.trace_stop"() : () -> ()
    %cst_65 = arith.constant 0.353553385 : f32
    %165 = vector.broadcast %cst_65 : f32 to vector<4x8x8xf32>
    %166 = arith.mulf %164, %165 : vector<4x8x8xf32>
    %167 = vector.extract_strided_slice %7 {offsets = [1, 0, 0, 0], sizes = [1, 1, 1, 8], strides = [1, 1, 1, 1]} : vector<2x1x1x8xf32> to vector<1x1x1x8xf32>
    %168 = vector.shape_cast %167 : vector<1x1x1x8xf32> to vector<1x1x8xf32>
    %169 = vector.broadcast %168 : vector<1x1x8xf32> to vector<4x8x8xf32>
    %170 = arith.addf %166, %169 : vector<4x8x8xf32>
    %cst_66 = arith.constant dense<0xFF800000> : vector<4x8xf32>
    %171 = vector.multi_reduction <maximumf>, %170, %cst_66 [2] : vector<4x8x8xf32> to vector<4x8xf32>
    %172 = vector.shape_cast %171 : vector<4x8xf32> to vector<4x8x1xf32>
    %173 = vector.broadcast %172 : vector<4x8x1xf32> to vector<4x8x8xf32>
    %174 = arith.subf %170, %173 : vector<4x8x8xf32>
    %175 = math.exp %174 : vector<4x8x8xf32>
    %cst_67 = arith.constant dense<0.000000e+00> : vector<4x8xf32>
    %176 = vector.multi_reduction <add>, %175, %cst_67 [2] : vector<4x8x8xf32> to vector<4x8xf32>
    %177 = vector.shape_cast %176 : vector<4x8xf32> to vector<4x8x1xf32>
    %178 = tpu.reciprocal %177 {approx = true} : vector<4x8x1xf32> -> vector<4x8x1xf32>
    %179 = vector.broadcast %178 : vector<4x8x1xf32> to vector<4x8x8xf32>
    %180 = arith.mulf %175, %179 : vector<4x8x8xf32>
    %181 = vector.extract_strided_slice %132 {offsets = [1, 0, 0, 0], sizes = [1, 8, 4, 8], strides = [1, 1, 1, 1]} : vector<2x8x4x8xf32> to vector<1x8x4x8xf32>
    %182 = vector.shape_cast %181 : vector<1x8x4x8xf32> to vector<8x4x8xf32>
    "tpu.trace_start"() <{level = 10 : i32, message = "hqk,khd->qhd"}> : () -> ()
    %cst_68 = arith.constant dense<0.000000e+00> : vector<4x8x8xf32>
    %183 = tpu.matmul %182, %180, %cst_68 {dimension_numbers = #tpu.dot_dimension_numbers<[0], [2], [2], [1], [0, 1, 0, 2, 1, 1], [1], [0]>} : vector<8x4x8xf32>, vector<4x8x8xf32>, vector<4x8x8xf32> -> vector<4x8x8xf32>
    %184 = tpu.transpose %183, [2, 0, 1] : vector<4x8x8xf32> -> vector<8x4x8xf32>
    "tpu.trace_stop"() : () -> ()
    %185 = vector.shape_cast %184 : vector<8x4x8xf32> to vector<8x32xf32>
    %c8_69 = arith.constant 8 : index
    %c0_70 = arith.constant 0 : index
    %186 = vector.load %arg22[%c8_69, %c0_70] : memref<16x32xf32, #tpu.memory_space<vmem>>, vector<8x32xf32>
    tpu.vector_store %arg22[%c8_69, %c0_70], %185 {strides = array<i32>} : memref<16x32xf32, #tpu.memory_space<vmem>>, vector<8x32xf32>,
    %c0_71 = arith.constant 0 : index
    %c0_72 = arith.constant 0 : index
    %187 = vector.load %arg22[%c0_71, %c0_72] : memref<16x32xf32, #tpu.memory_space<vmem>>, vector<16x32xf32>
    %c0_73 = arith.constant 0 : index
    %c0_74 = arith.constant 0 : index
    %c0_75 = arith.constant 0 : index
    %188 = vector.load %arg14[%c0_73, %c0_74, %c0_75] : memref<1x32x32xf32, #tpu.memory_space<vmem>>, vector<1x32x32xf32>
    %189 = vector.shape_cast %188 : vector<1x32x32xf32> to vector<32x32xf32>
    %cst_76 = arith.constant dense<0.000000e+00> : vector<16x32xf32>
    %190 = tpu.matmul %187, %189, %cst_76 {dimension_numbers = #tpu.dot_dimension_numbers<[1], [0], [0], [1], [0, 0, 1, 1], [], []>} : vector<16x32xf32>, vector<32x32xf32>, vector<16x32xf32> -> vector<16x32xf32>
    %191 = vector.broadcast %12 : vector<1x32xf32> to vector<16x32xf32>
    %192 = arith.addf %190, %191 : vector<16x32xf32>
    %193 = arith.addf %115, %192 : vector<16x32xf32>
    %cst_77 = arith.constant dense<0.000000e+00> : vector<16xf32>
    %194 = vector.multi_reduction <add>, %193, %cst_77 [1] : vector<16x32xf32> to vector<16xf32>
    %195 = vector.shape_cast %194 : vector<16xf32> to vector<16x1xf32>
    %cst_78 = arith.constant 3.200000e+01 : f32
    %196 = vector.broadcast %cst_78 : f32 to vector<16x1xf32>
    %197 = arith.divf %195, %196 : vector<16x1xf32>
    %198 = vector.broadcast %197 : vector<16x1xf32> to vector<16x32xf32>
    %199 = arith.subf %193, %198 : vector<16x32xf32>
    %200 = arith.mulf %199, %199 : vector<16x32xf32>
    %cst_79 = arith.constant dense<0.000000e+00> : vector<16xf32>
    %201 = vector.multi_reduction <add>, %200, %cst_79 [1] : vector<16x32xf32> to vector<16xf32>
    %202 = vector.shape_cast %201 : vector<16xf32> to vector<16x1xf32>
    %cst_80 = arith.constant 3.200000e+01 : f32
    %203 = vector.broadcast %cst_80 : f32 to vector<16x1xf32>
    %204 = arith.divf %202, %203 : vector<16x1xf32>
    %205 = vector.broadcast %197 : vector<16x1xf32> to vector<16x32xf32>
    %206 = arith.subf %193, %205 : vector<16x32xf32>
    %cst_81 = arith.constant 9.99999974E-6 : f32
    %207 = vector.broadcast %cst_81 : f32 to vector<16x1xf32>
    %208 = arith.addf %204, %207 : vector<16x1xf32>
    %209 = math.rsqrt %208 : vector<16x1xf32>
    %210 = vector.broadcast %209 : vector<16x1xf32> to vector<16x32xf32>
    %211 = arith.mulf %206, %210 : vector<16x32xf32>
    %212 = vector.broadcast %16 : vector<1x32xf32> to vector<16x32xf32>
    %213 = arith.mulf %211, %212 : vector<16x32xf32>
    %214 = vector.broadcast %17 : vector<1x32xf32> to vector<16x32xf32>
    %215 = arith.addf %213, %214 : vector<16x32xf32>
    %c0_82 = arith.constant 0 : index
    %c0_83 = arith.constant 0 : index
    %c0_84 = arith.constant 0 : index
    %216 = vector.load %arg15[%c0_82, %c0_83, %c0_84] : memref<1x32x64xf32, #tpu.memory_space<vmem>>, vector<1x32x64xf32>
    %217 = vector.shape_cast %216 : vector<1x32x64xf32> to vector<32x64xf32>
    %cst_85 = arith.constant dense<0.000000e+00> : vector<16x64xf32>
    %218 = tpu.matmul %215, %217, %cst_85 {dimension_numbers = #tpu.dot_dimension_numbers<[1], [0], [0], [1], [0, 0, 1, 1], [], []>} : vector<16x32xf32>, vector<32x64xf32>, vector<16x64xf32> -> vector<16x64xf32>
    %c0_86 = arith.constant 0 : index
    %c0_87 = arith.constant 0 : index
    %c0_88 = arith.constant 0 : index
    %219 = vector.load %arg16[%c0_86, %c0_87, %c0_88] : memref<1x1x64xf32, #tpu.memory_space<vmem>>, vector<1x1x64xf32>
    %220 = vector.shape_cast %219 : vector<1x1x64xf32> to vector<1x64xf32>
    %221 = vector.broadcast %220 : vector<1x64xf32> to vector<16x64xf32>
    %222 = arith.addf %218, %221 : vector<16x64xf32>
    %cst_89 = arith.constant 0.000000e+00 : f32
    %223 = vector.broadcast %cst_89 : f32 to vector<16x64xf32>
    %224 = arith.maximumf %222, %223 : vector<16x64xf32>
    %c0_90 = arith.constant 0 : index
    %c0_91 = arith.constant 0 : index
    %c0_92 = arith.constant 0 : index
    %225 = vector.load %arg17[%c0_90, %c0_91, %c0_92] : memref<1x64x32xf32, #tpu.memory_space<vmem>>, vector<1x64x32xf32>
    %226 = vector.shape_cast %225 : vector<1x64x32xf32> to vector<64x32xf32>
    %cst_93 = arith.constant dense<0.000000e+00> : vector<16x32xf32>
    %227 = tpu.matmul %224, %226, %cst_93 {dimension_numbers = #tpu.dot_dimension_numbers<[1], [0], [0], [1], [0, 0, 1, 1], [], []>} : vector<16x64xf32>, vector<64x32xf32>, vector<16x32xf32> -> vector<16x32xf32>
    %228 = vector.broadcast %13 : vector<1x32xf32> to vector<16x32xf32>
    %229 = arith.addf %227, %228 : vector<16x32xf32>
    %230 = arith.addf %215, %229 : vector<16x32xf32>
    %cst_94 = arith.constant dense<0.000000e+00> : vector<16xf32>
    %231 = vector.multi_reduction <add>, %230, %cst_94 [1] : vector<16x32xf32> to vector<16xf32>
    %232 = vector.shape_cast %231 : vector<16xf32> to vector<16x1xf32>
    %cst_95 = arith.constant 3.200000e+01 : f32
    %233 = vector.broadcast %cst_95 : f32 to vector<16x1xf32>
    %234 = arith.divf %232, %233 : vector<16x1xf32>
    %235 = vector.broadcast %234 : vector<16x1xf32> to vector<16x32xf32>
    %236 = arith.subf %230, %235 : vector<16x32xf32>
    %237 = arith.mulf %236, %236 : vector<16x32xf32>
    %cst_96 = arith.constant dense<0.000000e+00> : vector<16xf32>
    %238 = vector.multi_reduction <add>, %237, %cst_96 [1] : vector<16x32xf32> to vector<16xf32>
    %239 = vector.shape_cast %238 : vector<16xf32> to vector<16x1xf32>
    %cst_97 = arith.constant 3.200000e+01 : f32
    %240 = vector.broadcast %cst_97 : f32 to vector<16x1xf32>
    %241 = arith.divf %239, %240 : vector<16x1xf32>
    %242 = vector.broadcast %234 : vector<16x1xf32> to vector<16x32xf32>
    %243 = arith.subf %230, %242 : vector<16x32xf32>
    %cst_98 = arith.constant 9.99999974E-6 : f32
    %244 = vector.broadcast %cst_98 : f32 to vector<16x1xf32>
    %245 = arith.addf %241, %244 : vector<16x1xf32>
    %246 = math.rsqrt %245 : vector<16x1xf32>
    %247 = vector.broadcast %246 : vector<16x1xf32> to vector<16x32xf32>
    %248 = arith.mulf %243, %247 : vector<16x32xf32>
    %249 = vector.broadcast %18 : vector<1x32xf32> to vector<16x32xf32>
    %250 = arith.mulf %248, %249 : vector<16x32xf32>
    %251 = vector.broadcast %19 : vector<1x32xf32> to vector<16x32xf32>
    %252 = arith.addf %250, %251 : vector<16x32xf32>
    %c0_99 = arith.constant 0 : index
    %c0_100 = arith.constant 0 : index
    %253 = vector.load %arg19[%c0_99, %c0_100] : memref<16x32xf32, #tpu.memory_space<vmem>>, vector<16x32xf32>
    tpu.vector_store %arg19[%c0_99, %c0_100], %252 {strides = array<i32>} : memref<16x32xf32, #tpu.memory_space<vmem>>, vector<16x32xf32>,
    %c1_i32 = arith.constant 1 : i32
    %254 = arith.cmpi eq, %arg1, %c1_i32 : i32
    %255 = arith.extui %254 : i1 to i32
    %c0_i32_101 = arith.constant 0 : i32
    %256 = arith.cmpi ne, %255, %c0_i32_101 : i32
    scf.if %256 {
      %c0_102 = arith.constant 0 : index
      %c0_103 = arith.constant 0 : index
      %c0_104 = arith.constant 0 : index
      %c0_105 = arith.constant 0 : index
      %257 = vector.load %arg20[%c0_102, %c0_103, %c0_104, %c0_105] : memref<2x4x8x8xf32, #tpu.memory_space<vmem>>, vector<1x4x8x8xf32>
      %258 = vector.shape_cast %257 : vector<1x4x8x8xf32> to vector<4x8x8xf32>
      %259 = vector.shape_cast %153 : vector<4x8x8xf32> to vector<1x4x8x8xf32>
      tpu.vector_store %arg20[%c0_102, %c0_103, %c0_104, %c0_105], %259 {strides = array<i32>} : memref<2x4x8x8xf32, #tpu.memory_space<vmem>>, vector<1x4x8x8xf32>,
      %c1 = arith.constant 1 : index
      %c0_106 = arith.constant 0 : index
      %c0_107 = arith.constant 0 : index
      %c0_108 = arith.constant 0 : index
      %260 = vector.load %arg20[%c1, %c0_106, %c0_107, %c0_108] : memref<2x4x8x8xf32, #tpu.memory_space<vmem>>, vector<1x4x8x8xf32>
      %261 = vector.shape_cast %260 : vector<1x4x8x8xf32> to vector<4x8x8xf32>
      %262 = vector.shape_cast %180 : vector<4x8x8xf32> to vector<1x4x8x8xf32>
      tpu.vector_store %arg20[%c1, %c0_106, %c0_107, %c0_108], %262 {strides = array<i32>} : memref<2x4x8x8xf32, #tpu.memory_space<vmem>>, vector<1x4x8x8xf32>,
    } else {
    }
    return
  }
  func.func @transform_1(%arg0: i32, %arg1: i32, %arg2: memref<16xi32, #tpu.memory_space<smem>>) -> (i32, i32) {
    %c0_i32 = arith.constant 0 : i32
    %c0_i32_0 = arith.constant 0 : i32
    %c0_i32_1 = arith.constant 0 : i32
    return %c0_i32, %c0_i32_0 : i32, i32
  }
  func.func @transform_2(%arg0: i32, %arg1: i32, %arg2: memref<16xi32, #tpu.memory_space<smem>>) -> (i32, i32, i32) {
    %c0_i32 = arith.constant 0 : i32
    %c0_i32_0 = arith.constant 0 : i32
    %c0_i32_1 = arith.constant 0 : i32
    return %arg0, %c0_i32, %c0_i32_0 : i32, i32, i32
  }
  func.func @transform_3(%arg0: i32, %arg1: i32, %arg2: memref<16xi32, #tpu.memory_space<smem>>) -> (i32, i32, i32, i32) {
    %c0_i32 = arith.constant 0 : i32
    %c0_i32_0 = arith.constant 0 : i32
    %c0_i32_1 = arith.constant 0 : i32
    %c0_i32_2 = arith.constant 0 : i32
    return %arg0, %c0_i32, %c0_i32_0, %c0_i32_1 : i32, i32, i32, i32
  }
  func.func @transform_4(%arg0: i32, %arg1: i32, %arg2: memref<16xi32, #tpu.memory_space<smem>>) -> (i32, i32, i32, i32) {
    %c0_i32 = arith.constant 0 : i32
    %c0_i32_0 = arith.constant 0 : i32
    %c0_i32_1 = arith.constant 0 : i32
    %c0_i32_2 = arith.constant 0 : i32
    return %arg0, %c0_i32, %c0_i32_0, %c0_i32_1 : i32, i32, i32, i32
  }
  func.func @transform_5(%arg0: i32, %arg1: i32, %arg2: memref<16xi32, #tpu.memory_space<smem>>) -> (i32, i32, i32) {
    %c0_i32 = arith.constant 0 : i32
    %c0_i32_0 = arith.constant 0 : i32
    %c0_i32_1 = arith.constant 0 : i32
    return %arg1, %c0_i32, %c0_i32_0 : i32, i32, i32
  }
  func.func @transform_6(%arg0: i32, %arg1: i32, %arg2: memref<16xi32, #tpu.memory_space<smem>>) -> (i32, i32, i32) {
    %c0_i32 = arith.constant 0 : i32
    %c0_i32_0 = arith.constant 0 : i32
    %c0_i32_1 = arith.constant 0 : i32
    return %arg1, %c0_i32, %c0_i32_0 : i32, i32, i32
  }
  func.func @transform_7(%arg0: i32, %arg1: i32, %arg2: memref<16xi32, #tpu.memory_space<smem>>) -> (i32, i32, i32) {
    %c0_i32 = arith.constant 0 : i32
    %c0_i32_0 = arith.constant 0 : i32
    %c0_i32_1 = arith.constant 0 : i32
    return %arg1, %c0_i32, %c0_i32_0 : i32, i32, i32
  }
  func.func @transform_8(%arg0: i32, %arg1: i32, %arg2: memref<16xi32, #tpu.memory_space<smem>>) -> (i32, i32, i32) {
    %c0_i32 = arith.constant 0 : i32
    %c0_i32_0 = arith.constant 0 : i32
    %c0_i32_1 = arith.constant 0 : i32
    return %arg1, %c0_i32, %c0_i32_0 : i32, i32, i32
  }
  func.func @transform_9(%arg0: i32, %arg1: i32, %arg2: memref<16xi32, #tpu.memory_space<smem>>) -> (i32, i32, i32) {
    %c0_i32 = arith.constant 0 : i32
    %c0_i32_0 = arith.constant 0 : i32
    %c0_i32_1 = arith.constant 0 : i32
    return %arg1, %c0_i32, %c0_i32_0 : i32, i32, i32
  }
  func.func @transform_10(%arg0: i32, %arg1: i32, %arg2: memref<16xi32, #tpu.memory_space<smem>>) -> (i32, i32, i32) {
    %c0_i32 = arith.constant 0 : i32
    %c0_i32_0 = arith.constant 0 : i32
    %c0_i32_1 = arith.constant 0 : i32
    return %arg1, %c0_i32, %c0_i32_0 : i32, i32, i32
  }
  func.func @transform_11(%arg0: i32, %arg1: i32, %arg2: memref<16xi32, #tpu.memory_space<smem>>) -> (i32, i32, i32) {
    %c0_i32 = arith.constant 0 : i32
    %c0_i32_0 = arith.constant 0 : i32
    %c0_i32_1 = arith.constant 0 : i32
    return %arg1, %c0_i32, %c0_i32_0 : i32, i32, i32
  }
  func.func @transform_12(%arg0: i32, %arg1: i32, %arg2: memref<16xi32, #tpu.memory_space<smem>>) -> (i32, i32, i32) {
    %c0_i32 = arith.constant 0 : i32
    %c0_i32_0 = arith.constant 0 : i32
    %c0_i32_1 = arith.constant 0 : i32
    return %arg1, %c0_i32, %c0_i32_0 : i32, i32, i32
  }
  func.func @transform_13(%arg0: i32, %arg1: i32, %arg2: memref<16xi32, #tpu.memory_space<smem>>) -> (i32, i32, i32) {
    %c0_i32 = arith.constant 0 : i32
    %c0_i32_0 = arith.constant 0 : i32
    %c0_i32_1 = arith.constant 0 : i32
    return %arg1, %c0_i32, %c0_i32_0 : i32, i32, i32
  }
  func.func @transform_14(%arg0: i32, %arg1: i32, %arg2: memref<16xi32, #tpu.memory_space<smem>>) -> (i32, i32, i32) {
    %c0_i32 = arith.constant 0 : i32
    %c0_i32_0 = arith.constant 0 : i32
    %c0_i32_1 = arith.constant 0 : i32
    return %arg1, %c0_i32, %c0_i32_0 : i32, i32, i32
  }
  func.func @transform_15(%arg0: i32, %arg1: i32, %arg2: memref<16xi32, #tpu.memory_space<smem>>) -> (i32, i32, i32) {
    %c0_i32 = arith.constant 0 : i32
    %c0_i32_0 = arith.constant 0 : i32
    %c0_i32_1 = arith.constant 0 : i32
    return %arg1, %c0_i32, %c0_i32_0 : i32, i32, i32
  }
  func.func @transform_16(%arg0: i32, %arg1: i32, %arg2: memref<16xi32, #tpu.memory_space<smem>>) -> (i32, i32) {
    %c0_i32 = arith.constant 0 : i32
    %c0_i32_0 = arith.constant 0 : i32
    return %arg0, %c0_i32 : i32, i32
  }
  func.func @transform_17(%arg0: i32, %arg1: i32, %arg2: memref<16xi32, #tpu.memory_space<smem>>) -> (i32, i32, i32, i32) {
    %c0_i32 = arith.constant 0 : i32
    %c0_i32_0 = arith.constant 0 : i32
    %c0_i32_1 = arith.constant 0 : i32
    %c0_i32_2 = arith.constant 0 : i32
    return %arg0, %c0_i32, %c0_i32_0, %c0_i32_1 : i32, i32, i32, i32
  }
}

</mosaic_0001>

<bundles_post_ra>
// kernel: tpu_custom_call.1
= control target key start
LH: loop header
LB: loop body
LE: loop exit
PB: predicated region body
PF: predicated region fallthrough
CT: control target
= control target key end

     0   :  { %s11471_s30 = smov [#allocation5]   ;;  %s13723_s0 = inlined_call_operand.hbm [shape: s32[16], index: 0, kind: input, shape index: {}]   ;;  %s13724_s1 = inlined_call_operand.vmem [shape: f32[50,32], index: 1, kind: input, shape index: {}]   ;;  %s13725_s2 = inlined_call_operand.vmem [shape: f32[8,32], index: 2, kind: input, shape index: {}]   ;;  %s13726_s3 = inlined_call_operand.vmem [shape: f32[2,8,32], index: 3, kind: input, shape index: {}]   ;;  %s13727_s4 = inlined_call_operand.vmem [shape: f32[2,1,8,8], index: 4, kind: input, shape index: {}]   ;;  %s13728_s5 = inlined_call_operand.vmem [shape: f32[2,1,1,8], index: 5, kind: input, shape index: {}]   ;;  %s13729_s6 = inlined_call_operand.vmem [shape: f32[2,32,96], index: 6, kind: input, shape index: {}]   ;;  %s13730_s7 = inlined_call_operand.vmem [shape: f32[2,1,96], index: 7, kind: input, shape index: {}]   ;;  %s13731_s8 = inlined_call_operand.vmem [shape: f32[2,32,32], index: 8, kind: input, shape index: {}]   ;;  %s13732_s9 = inlined_call_operand.vmem [shape: f32[2,32,32], index: 9, kind: input, shape index: {}]   ;;  %s13733_s10 = inlined_call_operand.hbm [shape: f32[2,32,64], index: 10, kind: input, shape index: {}]   ;;  %s13734_s11 = inlined_call_operand.vmem [shape: f32[2,1,64], index: 11, kind: input, shape index: {}]   ;;  %s13735_s12 = inlined_call_operand.hbm [shape: f32[2,32,32], index: 12, kind: input, shape index: {}]   ;;  %s13736_s13 = inlined_call_operand.hbm [shape: f32[2,32,64], index: 13, kind: input, shape index: {}]   ;;  %s13737_s14 = inlined_call_operand.vmem [shape: f32[2,1,64], index: 14, kind: input, shape index: {}]   ;;  %s13738_s15 = inlined_call_operand.vmem [shape: f32[2,64,32], index: 15, kind: input, shape index: {}]   ;;  %s13739_s16 = inlined_call_operand.vmem [shape: f32[2,10,32], index: 16, kind: input, shape index: {}]   ;;  %s13740_s17 = inlined_call_operand.hbm [shape: f32[16,32], index: 17, kind: output, shape index: {0}]   ;;  %s13741_s18 = inlined_call_operand.hbm [shape: f32[2,4,8,8], index: 18, kind: output, shape index: {1}]  }
   0x1   :  { %13752 = sst [smem:[#allocation43_spill]] %s13723_s0 }
   0x2   :  { %13753 = sst [smem:[#allocation44_spill]] %s13724_s1 }
   0x3   :  { %13754 = sst [smem:[#allocation45_spill]] %s13725_s2 }
   0x4   :  { %13755 = sst [smem:[#allocation46_spill]] %s13726_s3 }
   0x5   :  { %13756 = sst [smem:[#allocation47_spill]] %s13727_s4 }
   0x6   :  { %13757 = sst [smem:[#allocation48_spill]] %s13728_s5 }
   0x7   :  { %13758 = sst [smem:[#allocation49_spill]] %s13729_s6 }
   0x8   :  { %13759 = sst [smem:[#allocation50_spill]] %s13731_s8 }
   0x9   :  { %13760 = sst [smem:[#allocation51_spill]] %s13732_s9 }
   0xa   :  { %13761 = sst [smem:[#allocation52_spill]] %s13733_s10 }
   0xb   :  { %13762 = sst [smem:[#allocation53_spill]] %s13734_s11 }
   0xc   :  { %13763 = sst [smem:[#allocation54_spill]] %s13735_s12 }
   0xd   :  { %13764 = sst [smem:[#allocation55_spill]] %s13736_s13 }
   0xe   :  { %13765 = sst [smem:[#allocation56_spill]] %s13737_s14 }
   0xf   :  { %13766 = sst [smem:[#allocation57_spill]] %s13738_s15 }
  0x10   :  { %13767 = sst [smem:[#allocation58_spill]] %s13739_s16 }
  0x11   :  { %13768 = sst [smem:[#allocation59_spill]] %s13740_s17 }
  0x12   :  { %13769 = sst [smem:[#allocation60_spill]] %s13741_s18 }
  0x13   :  { %s13770_s29 = sld [smem:[#allocation43_spill]] }
  0x19   :  { %s25_s5 = sshll.u32 %s13770_s29, 4  ;;  %s26_s5 = int_to_ptr.hbm [resolvable:$true] %s25_s5 }
  0x1a   :  { %28 = dma.hbm_to_smem %s26_s5, 16, %s11471_s30, [#allocation4] }
  0x1b   :  { %11393 = dma.done.wait [#allocation4], 16 }
  0x1c   :  { %11394 = vsyncadd [#allocation4], 4294967280 }
  0x1d   :  { %31 = sfence }
  0x1e   :  { %32 = vsyncpa [#allocation7], 0 }
  0x1f   :  { %34 = vsyncpa [#allocation7 + $0x1], 0 }
  0x20   :  { %35 = vsyncpa [#allocation10], 0 }
  0x21   :  { %37 = vsyncpa [#allocation10 + $0x1], 0 }
  0x22   :  { %38 = vsyncpa [#allocation8], 0 }
  0x23   :  { %39 = vsyncpa [#allocation14], 0  ;;  %s11586_s0 = smov 0   ;;  %s11588_s19 = smov 0  }
  0x24   :  { %s11590_s1 = smov 0   ;;  %s11592_s20 = smov 0  }
  0x25   :  { %s11594_s21 = smov 0   ;;  %s11596_s5 = smov 0  }
  0x26 LB: > { %13771 = sst [smem:[#allocation36_spill]] %s11449_s19  ;;  %s11615_s22 = sadd.s32 4294967295, %s11465_s5   ;;  %s11465_s5 = sphi %s11596_s5, %s45_s5   ;;  %s11461_s21 = sphi %s11594_s21, %s13818_s21   ;;  %s11457_s20 = sphi %s11592_s20, %s13817_s20   ;;  %s11453_s1 = sphi %s11590_s1, %s13816_s1   ;;  %s11449_s19 = sphi %s11588_s19, %s13815_s19   ;;  %s11445_s0 = sphi %s11586_s0, %s13814_s0  }
  0x27   : > { %13772 = sst [smem:[#allocation37_spill]] %s11453_s1  ;;  %s54_s2 = sadd.s32 1, %s11461_s21 }
  0x28   : > { %13773 = sst [smem:[#allocation38_spill]] %s11461_s21  ;;  %p55_p0 = scmp.ge.s32.totalorder %s54_s2, 2 }
  0x29   : > { %13774 = sst [smem:[#allocation39_spill]] %s11465_s5  ;;  %s267_s23 = sadd.s32 1, %s11453_s1 }
  0x2a   : > { %13775 = sst [smem:[#allocation40_spill]] %s11615_s22  ;;  %p274_p1 = scmp.ne.s32.totalorder %s11453_s1, %s11449_s19 }
  0x2b   : > { %p275_p2 = scmp.eq.s32.totalorder %s11465_s5, 0  ;;  %s13820_s2 = smov (%p55_p0, %s54_s2), 0 }
  0x2c   : > { %13776 = sst [smem:[#allocation41_spill]] %s13820_s2  ;;  %p280_p4 = scmp.ne.s32.totalorder %s11449_s19, %s11445_s0 }
  0x2d   : > { %p276_p3 = por %p275_p2, %p274_p1  ;;  %s264_s24 = ssub.s32 %s11461_s21, %s13820_s2 }
  0x2e   : > { %p281_p5 = scmp.eq.s32.totalorder %s11615_s22, 0  ;;  %p265_p6 = scmp.eq.s32.totalorder %s264_s24, 0 }
  0x2f   : > { %p10789_p8 = scmp.lt.s32.totalorder %s11465_s5, 2  ;;  %s571_s27 = sand.u32 1, %s11453_s1  }
  0x30   : > { %p11628_p7 = por %p281_p5, %p280_p4  ;;  %s11638_s28 = sshll.u32 %s11461_s21, 5 }
  0x31   : > { %s11634_s26 = scalar_select %p265_p6, %s11453_s1, %s267_s23  }
  0x32   : > { %s10609_s29 = sshll.u32 %s571_s27, 5  ;;  %p11640_p9 = pnand %p10789_p8, %p276_p3 }
  0x33   : > { %13778 = sst [smem:[#allocation42_spill]] %s11634_s26  ;;  %s599_s0 = sand.u32 1, %s11465_s5  }
  0x34   : > { %s13780_s12 = sld [smem:[#allocation54_spill]]  ;;  %s603_s17 = scalar_lea.vmem [#allocation9], %s10609_s29 }
  0x35   : > { %s611_s23 = sshll.u32 %s603_s17, 4  ;;  %p10618_p10 = scmp.ge.s32.totalorder %s11465_s5, 1  ;;  %s612_s23 = int_to_ptr.vmem [resolvable:$true] %s611_s23 }
  0x36   : > { %s600_s21 = scalar_lea.sflag [#allocation10], %s599_s0  ;;  %s11472_s1 = smov 128  }
  0x37   : > { %s11473_s3 = smov 8   ;;  %p663_p11 = scmp.lt.s32.totalorder %s11465_s5, 3 }
  0x38   : > { %s13782_s10 = sld [smem:[#allocation52_spill]]  ;;  %s572_s0 = scalar_lea.sflag [#allocation7], %s571_s27 }
  0x39   : > { %p11653_p12 = pnand %p10618_p10, %p663_p11  ;;  %s13783_s13 = sld [smem:[#allocation55_spill]] }
  0x3a   : > { %s608_s18 = scalar_lea.hbm %s13780_s12, %s11638_s28  ;;  %s625_s5 = scalar_lea.vmem [#allocation11], %s10609_s29 }
  0x3b   : > { %s609_s26 = sshll.u32 %s608_s18, 4  ;;  %s575_s18 = scalar_lea.vmem [#allocation6], %s10609_s29  ;;  %s610_s26 = int_to_ptr.hbm [resolvable:$true] %s609_s26 }
  0x3c   : > { %10785 = dma.hbm_to_vmem [thread:$0]  (!%p11640_p9), %s610_s26, 512, %s612_s23, %s600_s21, %s11472_s1, %s11472_s1, %s11473_s3  }
  0x3d   : > { %s583_s12 = sshll.u32 %s575_s18, 4  ;;  %s633_s14 = sshll.u32 %s625_s5, 4  ;;  %s584_s12 = int_to_ptr.vmem [resolvable:$true] %s583_s12  ;;  %s634_s14 = int_to_ptr.vmem [resolvable:$true] %s633_s14 }
  0x3e   : > { %s580_s17 = scalar_lea.hbm %s13782_s10, %s11638_s28  ;;  %667 = sbr.rel (%p11653_p12) target bundleno = 5602 (0x15e2), region = 80 }
  0x3f   : > { %s581_s16 = sshll.u32 %s580_s17, 4  ;;  %s630_s23 = scalar_lea.hbm %s13783_s13, %s11638_s28  ;;  %s582_s16 = int_to_ptr.hbm [resolvable:$true] %s581_s16 }
  0x40   : > { %10782 = dma.hbm_to_vmem [thread:$0]  (!%p11640_p9), %s582_s16, 512, %s584_s12, %s572_s0, %s11472_s1, %s11472_s1, %s11473_s3  }
  0x41   : > { %s631_s11 = sshll.u32 %s630_s23, 4  ;;  %s669_s2 = sand.u32 (!%p11653_p12), 1, %s11449_s19   ;;  %s632_s11 = int_to_ptr.hbm [resolvable:$true] %s631_s11 }
  0x42   : > { %10788 = dma.hbm_to_vmem [thread:$0]  (!%p11640_p9), %s632_s11, 512, %s634_s14, %s600_s21, %s11472_s1, %s11472_s1, %s11473_s3  }
  0x43   : > { %s10619_s27 = sshll.u32 %s669_s2, 5  ;;  %s670_s24 = scalar_lea.sflag [#allocation7], %s669_s2 }
  0x44   : > { %s11672_s12 = scalar_lea.vmem [#allocation6], %s10619_s27 }
  0x45   : > { %11396 = dma.done.wait (%p11628_p7), %s670_s24, 512  }
  0x46   : > { %11398 = vsyncadd (%p11628_p7), %s670_s24, 4294966784  ;;  %s679_s15 = sand.u32 1, %s11615_s22   ;;  %s11679_s3 = scalar_lea.vmem [#allocation9], %s10619_s27 }
  0x47   : > { %s680_s16 = scalar_lea.sflag [#allocation10], %s679_s15 }
  0x48   : > { %11400 = dma.done.wait (%p11628_p7), %s680_s16, 1024  }
  0x49   : > { %11402 = vsyncadd (%p11628_p7), %s680_s16, 4294966272  ;;  %p813_p13 = scmp.lt.s32.totalorder %s11457_s20, 1  ;;  %s13784_s6 = sld [smem:[#allocation49_spill]] }
  0x4a   : > { %s13785_s8 = sld [smem:[#allocation50_spill]]  ;;  %s11729_s0 = scalar_lea.vmem [#allocation11], %s10619_s27 }
  0x4b   : > { %s11687_s4 = scalar_select %p813_p13, %s11457_s20, 1 }
  0x4c   : > { %s13786_s9 = sld [smem:[#allocation51_spill]]  ;;  %p10632_p0 = scmp.ne.s32.totalorder %s11457_s20, 0 }
  0x4d   : > { %s10744_s11 = sshll.u32 %s11687_s4, 5  ;;  %s10747_s28 = sshll.u32 %s11687_s4, 6 }
  0x4e   : > { %s13789_s10 = sld [smem:[#allocation57_spill]]  ;;  %s10748_s30 = sshll.u32 %s11687_s4, 4 }
  0x4f   : > { %s11697_s25 = scalar_lea.vmem %s13784_s6, %s10744_s11  ;;  %s13790_s18 = sld [smem:[#allocation58_spill]] }
  0x50   : > { %s11702_s17 = scalar_lea.vmem %s13785_s8, %s10744_s11  ;;  %s11732_s23 = smov (!%p10632_p0), 0  }
  0x51   : > { %852 = sbr.rel (%p10632_p0) target bundleno = 227 (0xe3), region = 96 }
  0x52   : > { %s11707_s26 = scalar_lea.vmem %s13786_s9, %s10744_s11 }
  0x54   : > { %s11721_s29 = scalar_lea.vmem %s13789_s10, %s10747_s28 }
  0x55   : > { %s11727_s11 = scalar_lea.vmem %s13790_s18, %s10748_s30 }
  0x56 LB: >> { %s11738_s6 = sshll.u32 %s11469_s23, 3  ;;  %s11469_s23 = sphi %s11732_s23, %s859_s23  }
  0x57   : >> { %p10634_p1 = scmp.ge.s32.totalorder %s11738_s6, 16 }
  0x58   : >> { %s866_s8 = sld [smem:[#allocation5 + %s11738_s6]] (!%p10634_p1)  ;;  %s868_s2 = scalar_lea.vmem (!%p10634_p1), [#allocation3], %s11738_s6 }
  0x59   : >> { %864 = sbr.rel (%p10634_p1) target bundleno = 99 (0x63), region = 107  ;;  %s13791_s27 = sld [smem:[#allocation44_spill]] (!%p10634_p1) }
  0x5f   : >> { %s867_s21 = scalar_lea.vmem %s13791_s27, %s866_s8 }
  0x60   : >> { %v883_v0 = vld [vmem:[%s867_s21] sm:$0x1] }
  0x61   : >> { %884 = vst [vmem:[%s868_s2] sm:$0x1] %v883_v0 }
  0x62   : >> { %902 = vsyncadd [#allocation2], 16 }
  0x63 PF: >> { %s11747_s24 = sadd.s32 1, %s11738_s6 }
  0x64   : >> { %p10635_p2 = scmp.ge.s32.totalorder %s11747_s24, 16 }
  0x65   : >> { %s909_s16 = sld [smem:[#allocation5 + %s11747_s24]] (!%p10635_p2)  ;;  %s10408_s18 = scalar_lea.vmem (!%p10635_p2), [#allocation3], %s11738_s6 }
  0x66   : >> { %907 = sbr.rel (%p10635_p2) target bundleno = 112 (0x70), region = 141  ;;  %s13792_s28 = sld [smem:[#allocation44_spill]] (!%p10635_p2) }
  0x6c   : >> { %s910_s30 = scalar_lea.vmem %s13792_s28, %s909_s16 }
  0x6d   : >> { %v927_v1 = vld [vmem:[%s910_s30] sm:$0x1] }
  0x6e   : >> { %10637 = vst [vmem:[%s10408_s18 + $0x1] sm:$0x1] %v927_v1 }
  0x6f   : >> { %946 = vsyncadd [#allocation2 + $0x1], 16 }
  0x70 PF: >> { %s11756_s8 = sadd.s32 2, %s11738_s6 }
  0x71   : >> { %p10638_p3 = scmp.ge.s32.totalorder %s11756_s8, 16 }
  0x72   : >> { %s953_s10 = sld [smem:[#allocation5 + %s11756_s8]] (!%p10638_p3)  ;;  %s10412_s16 = scalar_lea.vmem (!%p10638_p3), [#allocation3], %s11738_s6 }
  0x73   : >> { %951 = sbr.rel (%p10638_p3) target bundleno = 125 (0x7d), region = 175  ;;  %s13793_s21 = sld [smem:[#allocation44_spill]] (!%p10638_p3) }
  0x79   : >> { %s954_s2 = scalar_lea.vmem %s13793_s21, %s953_s10 }
  0x7a   : >> { %v971_v2 = vld [vmem:[%s954_s2] sm:$0x1] }
  0x7b   : >> { %10640 = vst [vmem:[%s10412_s16 + $0x2] sm:$0x1] %v971_v2 }
  0x7c   : >> { %990 = vsyncadd [#allocation2 + $0x2], 16 }
  0x7d PF: >> { %s11765_s14 = sadd.s32 3, %s11738_s6 }
  0x7e   : >> { %p10641_p4 = scmp.ge.s32.totalorder %s11765_s14, 16 }
  0x7f   : >> { %s997_s1 = sld [smem:[#allocation5 + %s11765_s14]] (!%p10641_p4)  ;;  %s10416_s10 = scalar_lea.vmem (!%p10641_p4), [#allocation3], %s11738_s6 }
  0x80   : >> { %995 = sbr.rel (%p10641_p4) target bundleno = 138 (0x8a), region = 209  ;;  %s13794_s18 = sld [smem:[#allocation44_spill]] (!%p10641_p4) }
  0x86   : >> { %s998_s5 = scalar_lea.vmem %s13794_s18, %s997_s1 }
  0x87   : >> { %v1015_v3 = vld [vmem:[%s998_s5] sm:$0x1] }
  0x88   : >> { %10643 = vst [vmem:[%s10416_s10 + $0x3] sm:$0x1] %v1015_v3 }
  0x89   : >> { %1034 = vsyncadd [#allocation2 + $0x3], 16 }
  0x8a PF: >> { %s11774_s13 = sadd.s32 4, %s11738_s6 }
  0x8b   : >> { %p10644_p5 = scmp.ge.s32.totalorder %s11774_s13, 16 }
  0x8c   : >> { %s1041_s27 = sld [smem:[#allocation5 + %s11774_s13]] (!%p10644_p5)  ;;  %s10420_s1 = scalar_lea.vmem (!%p10644_p5), [#allocation3], %s11738_s6 }
  0x8d   : >> { %1039 = sbr.rel (%p10644_p5) target bundleno = 151 (0x97), region = 243  ;;  %s13795_s16 = sld [smem:[#allocation44_spill]] (!%p10644_p5) }
  0x93   : >> { %s1042_s15 = scalar_lea.vmem %s13795_s16, %s1041_s27 }
  0x94   : >> { %v1059_v4 = vld [vmem:[%s1042_s15] sm:$0x1] }
  0x95   : >> { %10646 = vst [vmem:[%s10420_s1 + $0x4] sm:$0x1] %v1059_v4 }
  0x96   : >> { %1078 = vsyncadd [#allocation2 + $0x4], 16 }
  0x97 PF: >> { %s11783_s5 = sadd.s32 5, %s11738_s6 }
  0x98   : >> { %p10647_p6 = scmp.ge.s32.totalorder %s11783_s5, 16 }
  0x99   : >> { %s1085_s28 = sld [smem:[#allocation5 + %s11783_s5]] (!%p10647_p6)  ;;  %s10424_s27 = scalar_lea.vmem (!%p10647_p6), [#allocation3], %s11738_s6 }
  0x9a   : >> { %1083 = sbr.rel (%p10647_p6) target bundleno = 164 (0xa4), region = 277  ;;  %s13796_s10 = sld [smem:[#allocation44_spill]] (!%p10647_p6) }
  0xa0   : >> { %s1086_s9 = scalar_lea.vmem %s13796_s10, %s1085_s28 }
  0xa1   : >> { %v1103_v5 = vld [vmem:[%s1086_s9] sm:$0x1] }
  0xa2   : >> { %10649 = vst [vmem:[%s10424_s27 + $0x5] sm:$0x1] %v1103_v5 }
  0xa3   : >> { %1122 = vsyncadd [#allocation2 + $0x5], 16 }
  0xa4 PF: >> { %s11792_s15 = sadd.s32 6, %s11738_s6 }
  0xa5   : >> { %p10650_p7 = scmp.ge.s32.totalorder %s11792_s15, 16 }
  0xa6   : >> { %s1129_s21 = sld [smem:[#allocation5 + %s11792_s15]] (!%p10650_p7)  ;;  %s10428_s28 = scalar_lea.vmem (!%p10650_p7), [#allocation3], %s11738_s6 }
  0xa7   : >> { %1127 = sbr.rel (%p10650_p7) target bundleno = 177 (0xb1), region = 311  ;;  %s13797_s1 = sld [smem:[#allocation44_spill]] (!%p10650_p7) }
  0xad   : >> { %s1130_s19 = scalar_lea.vmem %s13797_s1, %s1129_s21 }
  0xae   : >> { %v1147_v6 = vld [vmem:[%s1130_s19] sm:$0x1] }
  0xaf   : >> { %10652 = vst [vmem:[%s10428_s28 + $0x6] sm:$0x1] %v1147_v6 }
  0xb0   : >> { %1166 = vsyncadd [#allocation2 + $0x6], 16 }
  0xb1 PF: >> { %s11801_s9 = sadd.s32 7, %s11738_s6 }
  0xb2   : >> { %p10653_p8 = scmp.ge.s32.totalorder %s11801_s9, 16 }
  0xb3   : >> { %s1173_s30 = sld [smem:[#allocation5 + %s11801_s9]] (!%p10653_p8)  ;;  %s10432_s21 = scalar_lea.vmem (!%p10653_p8), [#allocation3], %s11738_s6 }
  0xb4   : >> { %1171 = sbr.rel (%p10653_p8) target bundleno = 190 (0xbe), region = 345  ;;  %s13798_s27 = sld [smem:[#allocation44_spill]] (!%p10653_p8) }
  0xba   : >> { %s1174_s22 = scalar_lea.vmem %s13798_s27, %s1173_s30 }
  0xbb   : >> { %v1191_v7 = vld [vmem:[%s1174_s22] sm:$0x1] }
  0xbc   : >> { %10655 = vst [vmem:[%s10432_s21 + $0x7] sm:$0x1] %v1191_v7 }
  0xbd   : >> { %1210 = vsyncadd [#allocation2 + $0x7], 16 }
  0xbe PF: >> { %p10790_p9 = scmp.lt.s32.totalorder %s11738_s6, 16 }
  0xc0   : >> { %11404 = dma.done.wait (%p10790_p9), [#allocation2], 16 }
  0xc1   : >> { %11406 = vsyncadd (%p10790_p9), [#allocation2], 4294967280  ;;  %p10791_p10 = scmp.lt.s32.totalorder %s11747_s24, 16 }
  0xc3   : >> { %11408 = dma.done.wait (%p10791_p10), [#allocation2 + $0x1], 16 }
  0xc4   : >> { %11410 = vsyncadd (%p10791_p10), [#allocation2 + $0x1], 4294967280  ;;  %p10792_p11 = scmp.lt.s32.totalorder %s11756_s8, 16 }
  0xc6   : >> { %11412 = dma.done.wait (%p10792_p11), [#allocation2 + $0x2], 16 }
  0xc7   : >> { %11414 = vsyncadd (%p10792_p11), [#allocation2 + $0x2], 4294967280  ;;  %p10793_p12 = scmp.lt.s32.totalorder %s11765_s14, 16 }
  0xc9   : >> { %11416 = dma.done.wait (%p10793_p12), [#allocation2 + $0x3], 16 }
  0xca   : >> { %11418 = vsyncadd (%p10793_p12), [#allocation2 + $0x3], 4294967280  ;;  %p10794_p13 = scmp.lt.s32.totalorder %s11774_s13, 16 }
  0xcc   : >> { %11420 = dma.done.wait (%p10794_p13), [#allocation2 + $0x4], 16 }
  0xcd   : >> { %11422 = vsyncadd (%p10794_p13), [#allocation2 + $0x4], 4294967280  ;;  %p10795_p0 = scmp.lt.s32.totalorder %s11783_s5, 16 }
  0xcf   : >> { %11424 = dma.done.wait (%p10795_p0), [#allocation2 + $0x5], 16 }
  0xd0   : >> { %11426 = vsyncadd (%p10795_p0), [#allocation2 + $0x5], 4294967280  ;;  %p10796_p1 = scmp.lt.s32.totalorder %s11792_s15, 16 }
  0xd2   : >> { %11428 = dma.done.wait (%p10796_p1), [#allocation2 + $0x6], 16 }
  0xd3   : >> { %11430 = vsyncadd (%p10796_p1), [#allocation2 + $0x6], 4294967280  ;;  %p10797_p2 = scmp.lt.s32.totalorder %s11801_s9, 16 }
  0xd5   : >> { %11432 = dma.done.wait (%p10797_p2), [#allocation2 + $0x7], 16 }
  0xd6   : >> { %11434 = vsyncadd (%p10797_p2), [#allocation2 + $0x7], 4294967280  ;;  %s859_s23 = sadd.s32 1, %s11469_s23  }
  0xd7   : >> { %p856_p3 = scmp.ge.s32.totalorder %s859_s23, 2  }
  0xd8   : > { %v1266_v8 = vld [vmem:[#allocation3] sm:$0xff] (%p856_p3)  ;;  %s13799_s6 = sld [smem:[#allocation45_spill]] (%p856_p3)  ;;  %v1267_v10 = vld [vmem:[#allocation3 + $0x8] sm:$0xff] (%p856_p3)  ;;  %vm1273_vm0 = vcmask (%p856_p3), 261120  }
  0xd9   : > { %858 = sbr.rel (!%p856_p3) target bundleno = 86 (0x56), region = 573  ;;  %v1268_v11 = vmul.f32 (%p856_p3), 5.656854, %v1266_v8  ;;  %v1269_v12 = vmul.f32 (%p856_p3), 5.656854, %v1267_v10 }
  0xde   : > { %v1270_v9 = vld [vmem:[%s13799_s6] sm:$0xff] }
  0xdf   : > { %v1271_v13 = vadd.f32 %v1270_v9, %v1268_v11  ;;  %v1272_v14 = vadd.f32 %v1270_v9, %v1269_v12 }
  0xe1   : > { %1274 = vst.msk [vmem:[#allocation12] sm:$0xff] %vm1273_vm0, %v1271_v13 }
  0xe2   : > { %1275 = vst.msk [vmem:[#allocation12 + $0x8] sm:$0xff] %vm1273_vm0, %v1272_v14 }
  0xe3 PF: > { %v1289_v15 = vld [vmem:[%s11697_s25 + $0x18] sm:$0xff]  ;;  %v1288_v16 = vld [vmem:[%s11697_s25 + $0x10] sm:$0xff]  ;;  %v1287_v17 = vld [vmem:[%s11697_s25 + $0x8] sm:$0xff]  ;;  %vm1294_vm1 = vcmask 261120   ;;  %s13800_s8 = scalar_lea.vmem %s13730_s7, %s11687_s4  ;;  %s11474_s14 = smov 64   ;;  %vm1345_vm2 = vcmask 1047556  }
  0xe4   : > { %1313 = vmatpush.msra.mxu0 %v1289_v15  ;;  %v1286_v18 = vld [vmem:[%s11697_s25] sm:$0xff]  ;;  %s11475_s25 = smov 112   ;;  %s11476_s13 = smov 104   ;;  %v11479_v32 = vmov 1983009808   ;;  %vm2463_vm3 = vcmask 64512  }
  0xe5   : > { %v11120_v21 = vld [vmem:[%s13800_s8] ss:$0 sm:$0xff]  ;;  %s11477_s5 = smov 120   ;;  %s11478_s15 = smov 96   ;;  %v1350_v33 = vunpack.c.l.s4 %v11479_v32  ;;  %v11480_v42 = vmov 1934713408  }
  0xe6   : > { %1314 = vmatpush.msra.mxu0 %v1288_v16  ;;  %v1374_v43 = vunpack.c.l.s4 %v11480_v42  ;;  %s13801_s1 = sld [smem:[#allocation47_spill]]  ;;  %s11481_s18 = smov 16   ;;  %vm3643_vm4 = vcmask 130048   ;;  %vm3645_vm5 = vcmask 195584   ;;  %vm10104_vm0 = vcmask 523264  }
  0xe7   : > { %v11867_v38 = vunpack.c.0.s8 %v1350_v33  ;;  %s11482_s10 = smov 24   ;;  %s11483_s27 = smov 8  }
  0xe8   : > { %1315 = vmatpush.msra.mxu0 %v1287_v17  ;;  %v1276_v19 = vld [vmem:[#allocation12] sm:$0xff]  ;;  %v11875_v52 = vunpack.c.0.s8 %v1374_v43  ;;  %s13803_s19 = sld [smem:[#allocation46_spill]]  ;;  %p10726_p4 = scmp.ne.s32.totalorder %s11457_s20, 1 }
  0xe9   : > { %v1277_v20 = vld [vmem:[#allocation12 + $0x8] sm:$0xff]  ;;  %s13805_s8 = sld [smem:[#allocation53_spill]] }
  0xea   : > { %1316 = vmatpush.msra.mxu0 %v1286_v18  ;;  %s13807_s2 = sld [smem:[#allocation48_spill]] }
  0xeb   : > { %10664 = vmatmul.msk.f32.vlgmr.msra.gmra.mxu0 %vm1294_vm1, %v1276_v19 }
  0xec   : > { %s13802_s28 = smov %s13801_s1 }
  0xee   : > { %s13804_s22 = smov %s13803_s19 }
  0xf3   : > { %10665 = vmatmul.msk.f32.gmra.mxu0 %vm1294_vm1, %v1277_v20 }
 0x168   : > { %v1318_v22 = vpop.f32.mrf.mxu0 }
 0x169   : > { %v11834_v23 = vadd.f32 %v11120_v21, %v1318_v22 }
 0x16b   : > { %1593 = vrot.lane.b32.xlu2 %v11834_v23, %s11474_s14  ;;  %1332 = vrot.lane.b32.xlu1 %v11834_v23, %s11475_s25 }
 0x16c   : > { %1338 = vrot.lane.b32.xlu0 %v11834_v23, %s11476_s13 }
 0x170   : > { %v1321_v24 = vpop.f32.mrf.mxu0 }
 0x171   : > { %v1322_v25 = vadd.f32 %v11120_v21, %v1321_v24 }
 0x173   : > { %1328 = vrot.lane.b32.xlu1 %v1322_v25, %s11477_s5  ;;  %1334 = vrot.lane.b32.xlu2 %v1322_v25, %s11475_s25  ;;  %v1403_v30 = vrot.slane %v1322_v25, 4 }
 0x174   : > { %1326 = vrot.lane.b32.xlu0 %v11834_v23, %s11477_s5 }
 0x17b   : > { %1595 = vrot.lane.b32.xlu1 %v1322_v25, %s11474_s14 }
 0x17c   : > { %1340 = vrot.lane.b32.xlu0 %v1322_v25, %s11476_s13 }
 0x1c5   : > { %v11854_v29 = vpop.permute.xlu2 %1593 }
 0x1cd   : > { %v11860_v35 = vpop.permute.xlu2 %1334 }
 0x1ce   : > { %v1404_v37 = vsel %vm1345_vm2, %v11860_v35, %v1403_v30  ;;  %v1401_v39 = vrot.slane %v11860_v35, 4 }
 0x1cf   : > { %v1412_v41 = vperm.slane %v1404_v37, %v11867_v38 }
 0x1d0   : > { %v1402_v44 = vsel %vm1345_vm2, %v1401_v39, %v1322_v25 }
 0x1d1   : > { %v1439_v49 = vrot.slane %v1412_v41, 4  ;;  %v1408_v51 = vperm.slane %v1402_v44, %v11867_v38 }
 0x1d3   : > { %v1427_v60 = vrot.slane %v1408_v51, 4 }
 0x1dd   : > { %v11848_v26 = vpop.permute.xlu1 %1332 }
 0x1de   : > { %v11850_v27 = vpop.permute.xlu0 %1338  ;;  %v10881_v28 = vpack.i.bf16 %v11834_v23, %v11848_v26 }
 0x1e0   : > { %10882 = vrot.lane.b32.xlu2 %v10881_v28, %s11478_s15 }
 0x1e5   : > { %v1329_v31 = vpop.permute.xlu1 %1328 }
 0x1e6   : > { %v11857_v34 = vpop.permute.xlu0 %1326  ;;  %1599 = vrot.lane.b32.xlu0 %v1329_v31, %s11474_s14  ;;  %v1415_v40 = vrot.slane %v1329_v31, 4  ;;  %v10891_v63 = vpack.i.bf16 %v11860_v35, %v1329_v31 }
 0x1e7   : > { %v10876_v36 = vpack.i.bf16 %v11857_v34, %v11850_v27 }
 0x1e9   : > { %10877 = vrot.lane.b32.xlu1 %v10876_v36, %s11478_s15 }
 0x1ee   : > { %v1341_v45 = vpop.permute.xlu0 %1340 }
 0x1ef   : > { %v1413_v46 = vrot.slane %v1341_v45, 4  ;;  %v1416_v47 = vsel %vm1345_vm2, %v1341_v45, %v1415_v40  ;;  %v10886_v48 = vpack.i.bf16 %v1341_v45, %v1322_v25 }
 0x1f0   : > { %v1424_v50 = vperm.slane %v1416_v47, %v11867_v38 }
 0x1f1   : > { %v1414_v53 = vsel %vm1345_vm2, %v1413_v46, %v1329_v31  ;;  %1605 = vrot.lane.b32.xlu1 %v11850_v27, %s11474_s14  ;;  %10887 = vrot.lane.b32.xlu2 %v10886_v48, %s11478_s15  ;;  %v11934_v48 = vpop.permute.xlu1 %1595 }
 0x1f2   : > { %v1420_v54 = vperm.slane %v1414_v53, %v11867_v38  ;;  %v1437_v55 = vrot.slane %v1424_v50, 4  ;;  %v1440_v56 = vsel %vm1345_vm2, %v1424_v50, %v1439_v49 }
 0x1f3   : > { %v1448_v57 = vperm.slane %v1440_v56, %v11875_v52 }
 0x1f4   : > { %v1425_v58 = vrot.slane %v1420_v54, 4  ;;  %v1438_v59 = vsel %vm1345_vm2, %v1437_v55, %v1412_v41  ;;  %v1428_v1 = vsel %vm1345_vm2, %v1420_v54, %v1427_v60 }
 0x1f5   : > { %v1444_v61 = vperm.slane %v1438_v59, %v11875_v52  ;;  %v1455_v62 = vrot.slane %v1448_v57, 4  ;;  %v1436_v6 = vperm.slane %v1428_v1, %v11875_v52 }
 0x1f6   : > { %v1426_v0 = vsel %vm1345_vm2, %v1425_v58, %v1408_v51 }
 0x1f7   : > { %v1453_v2 = vrot.slane %v1444_v61, 4  ;;  %v1456_v3 = vsel %vm1345_vm2, 0.0, %v1455_v62  ;;  %v1432_v4 = vperm.slane %v1426_v0, %v11875_v52  ;;  %v3659_v9 = vsel %vm1345_vm2, %v1455_v62, %v1444_v61 }
 0x1f8   : > { %v3664_v5 = vrot.slane %v1456_v3, 4  ;;  %v1451_v10 = vrot.slane %v1436_v6, 4  ;;  %v3663_v11 = vperm.slane %v3659_v9, %v11867_v38 }
 0x1f9   : > { %1597 = vrot.lane.b32.xlu1 %v11857_v34, %s11474_s14  ;;  %10892 = vrot.lane.b32.xlu2 %v10891_v63, %s11478_s15  ;;  %v1449_v7 = vrot.slane %v1432_v4, 4  ;;  %v1454_v8 = vsel %vm1345_vm2, 0.0, %v1453_v2 }
 0x1fa   : > { %v3665_v12 = vsel %vm1345_vm2, %v3664_v5, %v1454_v8  ;;  %v1452_v14 = vsel %vm1345_vm2, 0.0, %v1451_v10  ;;  %v3648_v15 = vsel %vm1345_vm2, %v1451_v10, %v1432_v4  ;;  %v3684_v18 = vrot.slane %v3663_v11, 4 }
 0x1fb   : > { %v1450_v13 = vsel %vm1345_vm2, 0.0, %v1449_v7  ;;  %v3653_v16 = vrot.slane %v1452_v14, 4  ;;  %v3669_v17 = vperm.slane %v3665_v12, %v11867_v38  ;;  %v3652_v19 = vperm.slane %v3648_v15, %v11867_v38 }
 0x1fd   : > { %v3654_v20 = vsel %vm1345_vm2, %v3653_v16, %v1450_v13  ;;  %v3685_v21 = vsel %vm1345_vm2, %v3669_v17, %v3684_v18  ;;  %v3672_v24 = vrot.slane %v3652_v19, 4  ;;  %v3682_v25 = vrot.slane %v3669_v17, 4 }
 0x1fe   : > { %v3658_v22 = vperm.slane %v3654_v20, %v11867_v38  ;;  %v3693_v28 = vperm.slane %v3685_v21, %v11875_v52 }
 0x1ff   : > { %v3683_v37 = vsel %vm1345_vm2, %v3682_v25, %v3663_v11 }
 0x200   : > { %v3670_v30 = vrot.slane %v3658_v22, 4  ;;  %v3673_v31 = vsel %vm1345_vm2, %v3658_v22, %v3672_v24  ;;  %v3698_v32 = vrot.slane %v3693_v28, 4  ;;  %v11924_v42 = vperm.slane %v3683_v37, %v11875_v52 }
 0x201   : > { %1601 = vrot.lane.b32.xlu1 %v11848_v26, %s11474_s14  ;;  %1607 = vrot.lane.b32.xlu2 %v1341_v45, %s11474_s14  ;;  %v3681_v33 = vperm.slane %v3673_v31, %v11875_v52  ;;  %v1619_v24 = vrot.slane %v11854_v29, 4 }
 0x202   : > { %v3671_v36 = vsel %vm1345_vm2, %v3670_v30, %v3652_v19 }
 0x203   : > { %v11916_v39 = vperm.slane %v3671_v36, %v11875_v52  ;;  %v11919_v40 = vsel %vm1345_vm2, %v3698_v32, %v3681_v33  ;;  %v3700_v41 = vrot.slane %v3681_v33, 4 }
 0x205   : > { %v3696_v43 = vrot.slane %v11916_v39, 4  ;;  %v11928_v44 = vsel %vm1345_vm2, %v3693_v28, %v3700_v41 }
 0x207   : > { %v11932_v45 = vsel %vm1345_vm2, %v11924_v42, %v3696_v43 }
 0x209   : > { %1603 = vrot.lane.b32.xlu1 %v11860_v35, %s11474_s14  ;;  %s13806_s14 = scalar_lea.vmem %s13805_s8, %s11687_s4 }
 0x23a   : > { %v10883_v46 = vpop.permute.xlu2 %10882 }
 0x23b   : > { %v10884_v47 = vunpack.i.l.bf16 %v10883_v46  ;;  %v10885_v50 = vunpack.i.h.bf16 %v10883_v46 }
 0x23d   : > { %v1481_v49 = vrot.slane %v10884_v47, 4  ;;  %v1483_v53 = vrot.slane %v10885_v50, 4 }
 0x23f   : > { %v1482_v35 = vsel %vm1345_vm2, %v1481_v49, %v10885_v50  ;;  %v1484_v60 = vsel %vm1345_vm2, %v10884_v47, %v1483_v53 }
 0x240   : > { %v11940_v57 = vperm.slane %v1482_v35, %v11867_v38  ;;  %v1492_v2 = vperm.slane %v1484_v60, %v11867_v38 }
 0x242   : > { %v1507_v63 = vrot.slane %v11940_v57, 4  ;;  %v1519_v36 = vrot.slane %v1492_v2, 4 }
 0x24b   : > { %v11937_v54 = vpop.permute.xlu2 %10887 }
 0x253   : > { %v11957_v8 = vpop.permute.xlu2 %10892 }
 0x258   : > { %v1600_v16 = vpop.permute.xlu0 %1599 }
 0x259   : > { %v1687_v19 = vrot.slane %v1600_v16, 4 }
 0x25b   : > { %v10878_v51 = vpop.permute.xlu1 %10877  ;;  %v1608_v18 = vpop.permute.xlu2 %1607 }
 0x25c   : > { %v10880_v55 = vunpack.i.h.bf16 %v10878_v51  ;;  %v10879_v56 = vunpack.i.l.bf16 %v10878_v51  ;;  %v1685_v22 = vrot.slane %v1608_v18, 4  ;;  %v1688_v30 = vsel %vm1345_vm2, %v1608_v18, %v1687_v19 }
 0x25d   : > { %v11972_v43 = vperm.slane %v1688_v30, %v11867_v38 }
 0x25e   : > { %v1495_v58 = vrot.slane %v10880_v55, 4  ;;  %v1493_v59 = vrot.slane %v10879_v56, 4  ;;  %v1686_v41 = vsel %vm1345_vm2, %v1685_v22, %v1600_v16 }
 0x25f   : > { %v11980_v53 = vperm.slane %v1686_v41, %v11867_v38  ;;  %v10894_v41 = vunpack.i.l.bf16 %v11957_v8 }
 0x260   : > { %v1494_v61 = vsel %vm1345_vm2, %v1493_v59, %v10880_v55  ;;  %v1496_v62 = vsel %vm1345_vm2, %v10879_v56, %v1495_v58 }
 0x261   : > { %v11947_v0 = vperm.slane %v1494_v61, %v11867_v38  ;;  %v1504_v1 = vperm.slane %v1496_v62, %v11867_v38  ;;  %v1709_v62 = vrot.slane %v11972_v43, 4 }
 0x263   : > { %v1517_v3 = vrot.slane %v1504_v1, 4  ;;  %v1606_v4 = vpop.permute.xlu1 %1605  ;;  %v1508_v5 = vsel %vm1345_vm2, %v11947_v0, %v1507_v63  ;;  %v1520_v47 = vsel %vm1345_vm2, %v1504_v1, %v1519_v36  ;;  %v1505_v18 = vrot.slane %v11947_v0, 4 }
 0x264   : > { %v11954_v6 = vperm.slane %v1508_v5, %v11875_v52  ;;  %v1629_v17 = vrot.slane %v1606_v4, 4  ;;  %v1528_v59 = vperm.slane %v1520_v47, %v11875_v52 }
 0x265   : > { %v1518_v7 = vsel %vm1345_vm2, %v1517_v3, %v1492_v2  ;;  %v1506_v22 = vsel %vm1345_vm2, %v1505_v18, %v11940_v57 }
 0x266   : > { %v1524_v9 = vperm.slane %v1518_v7, %v11875_v52  ;;  %v1531_v10 = vrot.slane %v11954_v6, 4  ;;  %v1535_v7 = vrot.slane %v1528_v59, 4 }
 0x268   : > { %v1533_v11 = vrot.slane %v1524_v9, 4  ;;  %v1532_v12 = vsel %vm1345_vm2, 0.0, %v1531_v10  ;;  %v1697_v10 = vrot.slane %v11980_v53, 4  ;;  %v10896_v16 = vpack.i.bf16 %v1524_v9, %v11954_v6 }
 0x269   : > { %v1512_v6 = vperm.slane %v1506_v22, %v11875_v52 }
 0x26a   : > { %v1534_v13 = vsel %vm1345_vm2, 0.0, %v1533_v11 }
 0x26b   : > { %v1598_v14 = vpop.permute.xlu1 %1597  ;;  %v10917_v15 = vpack.i.bf16 %v1534_v13, %v1532_v12 }
 0x26c   : > { %v1630_v20 = vsel %vm1345_vm2, %v1629_v17, %v1598_v14  ;;  %v1631_v21 = vrot.slane %v1598_v14, 4  ;;  %v1536_v14 = vsel %vm1345_vm2, 0.0, %v1535_v7 }
 0x26d   : > { %10918 = vxpose.xlu1.b32.start.end [1/1] (short) (narrow) %v10917_v15, 8  ;;  %v1636_v25 = vperm.slane %v1630_v20, %v11867_v38 }
 0x26e   : > { %v1632_v33 = vsel %vm1345_vm2, %v1606_v4, %v1631_v21 }
 0x26f   : > { %v1641_v49 = vrot.slane %v1636_v25, 4  ;;  %v1640_v35 = vperm.slane %v1632_v33, %v11867_v38  ;;  %v10890_v33 = vunpack.i.h.bf16 %v11937_v54 }
 0x271   : > { %v1653_v20 = vrot.slane %v1640_v35, 4 }
 0x273   : > { %v1602_v28 = vpop.permute.xlu1 %1601 }
 0x274   : > { %v1617_v31 = vrot.slane %v1602_v28, 4  ;;  %v1620_v32 = vsel %vm1345_vm2, %v1602_v28, %v1619_v24  ;;  %v1529_v28 = vrot.slane %v1512_v6, 4 }
 0x275   : > { %v1628_v37 = vperm.slane %v1620_v32, %v11867_v38  ;;  %v10889_v32 = vunpack.i.l.bf16 %v11937_v54 }
 0x276   : > { %v1618_v46 = vsel %vm1345_vm2, %v1617_v31, %v11854_v29  ;;  %v1675_v29 = vrot.slane %v11934_v48, 4  ;;  %v1530_v31 = vsel %vm1345_vm2, 0.0, %v1529_v28 }
 0x277   : > { %v1655_v50 = vrot.slane %v1628_v37, 4  ;;  %v1624_v51 = vperm.slane %v1618_v46, %v11867_v38  ;;  %v1654_v24 = vsel %vm1345_vm2, %v1653_v20, %v1628_v37  ;;  %v10910_v36 = vpack.i.bf16 %v1530_v31, %v1512_v6 }
 0x278   : > { %v1660_v9 = vperm.slane %v1654_v24, %v11875_v52  ;;  %v10895_v37 = vunpack.i.h.bf16 %v11957_v8  ;;  %v1539_v46 = vrot.slane %v10889_v32, 4 }
 0x279   : > { %v1656_v55 = vsel %vm1345_vm2, %v1640_v35, %v1655_v50  ;;  %v1642_v56 = vsel %vm1345_vm2, %v1641_v49, %v1624_v51  ;;  %v1643_v58 = vrot.slane %v1624_v51, 4  ;;  %v1549_v49 = vrot.slane %v10890_v33, 4 }
 0x27a   : > { %v1664_v60 = vperm.slane %v1656_v55, %v11875_v52  ;;  %v1648_v61 = vperm.slane %v1642_v56, %v11875_v52  ;;  %v1537_v50 = vrot.slane %v10895_v37, 4  ;;  %v1540_v35 = vsel %vm1345_vm2, %v10895_v37, %v1539_v46 }
 0x27b   : > { %v1604_v63 = vpop.permute.xlu1 %1603  ;;  %v1644_v1 = vsel %vm1345_vm2, %v1636_v25, %v1643_v58  ;;  %v1669_v51 = vrot.slane %v1660_v9, 4  ;;  %v1550_v55 = vsel %vm1345_vm2, %v1549_v49, %v10894_v41  ;;  %v1551_v56 = vrot.slane %v10894_v41, 4 }
 0x27c   : > { %v1673_v2 = vrot.slane %v1604_v63, 4  ;;  %v1676_v3 = vsel %vm1345_vm2, %v1604_v63, %v1675_v29  ;;  %2800 = vxpose.xlu0.b32.start.end [1/1] (short) (narrow) %v1664_v60, 8  ;;  %2608 = vxpose.xlu1.b32.start.end [1/1] (short) (narrow) %v1648_v61, 8  ;;  %v1652_v4 = vperm.slane %v1644_v1, %v11875_v52  ;;  %v1671_v25 = vrot.slane %v1664_v60, 4 }
 0x27d   : > { %v1684_v5 = vperm.slane %v1676_v3, %v11867_v38  ;;  %v1665_v30 = vrot.slane %v1648_v61, 4  ;;  %v1548_v54 = vperm.slane %v1540_v35, %v11867_v38  ;;  %v1670_v8 = vsel %vm1345_vm2, 0.0, %v1669_v51 }
 0x27e   : > { %v1674_v11 = vsel %vm1345_vm2, %v1673_v2, %v11934_v48  ;;  %2672 = vxpose.xlu2.b32.start.end [1/1] (short) (narrow) %v1652_v4, 8  ;;  %v10903_v48 = vpack.i.bf16 %v1536_v14, %v1528_v59  ;;  %v1672_v0 = vsel %vm1345_vm2, 0.0, %v1671_v25  ;;  %v1667_v47 = vrot.slane %v1652_v4, 4 }
 0x27f   : > { %v11997_v12 = vperm.slane %v1674_v11, %v11867_v38  ;;  %v12000_v13 = vsel %vm1345_vm2, %v1709_v62, %v1684_v5  ;;  %v1666_v57 = vsel %vm1345_vm2, 0.0, %v1665_v30  ;;  %v1556_v59 = vperm.slane %v1550_v55, %v11867_v38 }
 0x280   : > { %v1668_v58 = vsel %vm1345_vm2, 0.0, %v1667_v47  ;;  %v1711_v29 = vrot.slane %v1684_v5, 4  ;;  %v1538_v60 = vsel %vm1345_vm2, %v1537_v50, %v10889_v32  ;;  %v1552_v61 = vsel %vm1345_vm2, %v10890_v33, %v1551_v56 }
 0x281   : > { %v1698_v15 = vsel %vm1345_vm2, %v1697_v10, %v11997_v12  ;;  %v1544_v62 = vperm.slane %v1538_v60, %v11867_v38  ;;  %v1560_v1 = vperm.slane %v1552_v61, %v11867_v38  ;;  %v1561_v2 = vrot.slane %v1556_v59, 4 }
 0x282   : > { %v1704_v17 = vperm.slane %v1698_v15, %v11875_v52  ;;  %v1712_v63 = vsel %vm1345_vm2, %v11972_v43, %v1711_v29  ;;  %v1575_v3 = vrot.slane %v1548_v54, 4  ;;  %v1699_v4 = vrot.slane %v11997_v12, 4 }
 0x283   : > { %v12035_v5 = vperm.slane %v1712_v63, %v11875_v52  ;;  %v1562_v7 = vsel %vm1345_vm2, %v1561_v2, %v1544_v62  ;;  %v1573_v15 = vrot.slane %v1560_v1, 4 }
 0x284   : > { %10897 = vxpose.xlu0.b32.start.end [1/1] (short) (narrow) %v10896_v16, 8  ;;  %v1721_v19 = vrot.slane %v1704_v17, 4  ;;  %v1576_v10 = vsel %vm1345_vm2, %v1560_v1, %v1575_v3  ;;  %v1700_v11 = vsel %vm1345_vm2, %v11980_v53, %v1699_v4  ;;  %v1568_v43 = vperm.slane %v1562_v7, %v11875_v52 }
 0x285   : > { %v1584_v14 = vperm.slane %v1576_v10, %v11875_v52  ;;  %v12045_v12 = vperm.slane %v1700_v11, %v11875_v52  ;;  %v1563_v53 = vrot.slane %v1544_v62, 4 }
 0x286   : > { %10904 = vxpose.xlu2.b32.start.end [1/1] (short) (narrow) %v10903_v48, 8  ;;  %v1722_v21 = vsel %vm1345_vm2, 0.0, %v1721_v19  ;;  %v1585_v22 = vrot.slane %v1568_v43, 4 }
 0x287   : > { %4558 = vxpose.xlu1.b32.start.end [1/1] (short) (narrow) %v1722_v21, 8  ;;  %v10924_v16 = vpack.i.bf16 %v1584_v14, %v1568_v43  ;;  %v1591_v18 = vrot.slane %v1584_v14, 4  ;;  %v1564_v21 = vsel %vm1345_vm2, %v1556_v59, %v1563_v53 }
 0x288   : > { %v1572_v24 = vperm.slane %v1564_v21, %v11875_v52  ;;  %v1586_v25 = vsel %vm1345_vm2, 0.0, %v1585_v22 }
 0x289   : > { %v1592_v19 = vsel %vm1345_vm2, 0.0, %v1591_v18 }
 0x28a   : > { %v10938_v6 = vpack.i.bf16 %v1572_v24, %v1586_v25 }
 0x28c   : > { %2736 = vxpose.xlu0.b32.start.end [1/1] (short) (narrow) %v1660_v9, 8  ;;  %v1587_v9 = vrot.slane %v1572_v24, 4 }
 0x28e   : > { %2832 = vxpose.xlu2.b32.start.end [1/1] (short) (narrow) %v1672_v0, 8  ;;  %v1588_v28 = vsel %vm1345_vm2, 0.0, %v1587_v9 }
 0x294   : > { %2640 = vxpose.xlu0.b32.start.end [1/1] (short) (narrow) %v1666_v57, 8 }
 0x296   : > { %10911 = vxpose.xlu2.b32.start.end [1/1] (short) (narrow) %v10910_v36, 8 }
 0x29c   : > { %2704 = vxpose.xlu0.b32.start.end [1/1] (short) (narrow) %v1668_v58, 8 }
 0x29e   : > { %2768 = vxpose.xlu2.b32.start.end [1/1] (short) (narrow) %v1670_v8, 8 }
 0x2a4   : > { %4526 = vxpose.xlu0.b32.start.end [1/1] (short) (narrow) %v1704_v17, 8  ;;  %v1574_v17 = vsel %vm1345_vm2, %v1573_v15, %v1548_v54 }
 0x2a5   : > { %v1580_v48 = vperm.slane %v1574_v17, %v11875_v52 }
 0x2a6   : > { %4718 = vxpose.xlu2.b32.start.end [1/1] (short) (narrow) %v12035_v5, 8 }
 0x2a7   : > { %v10931_v20 = vpack.i.bf16 %v1592_v19, %v1580_v48  ;;  %v1589_v0 = vrot.slane %v1580_v48, 4 }
 0x2a9   : > { %v1590_v30 = vsel %vm1345_vm2, 0.0, %v1589_v0 }
 0x2aa   : > { %v10945_v31 = vpack.i.bf16 %v1590_v30, %v1588_v28 }
 0x2ac   : > { %4590 = vxpose.xlu0.b32.start.end [1/1] (short) (narrow) %v12045_v12, 8 }
 0x2ae   : > { %10925 = vxpose.xlu2.b32.start.end [1/1] (short) (narrow) %v10924_v16, 8 }
 0x2b6   : > { %10932 = vxpose.xlu2.b32.start.end [1/1] (short) (narrow) %v10931_v20, 8 }
 0x2be   : > { %10939 = vxpose.xlu2.b32.start.end [1/1] (short) (narrow) %v10938_v6, 8 }
 0x2c6   : > { %10946 = vxpose.xlu2.b32.start.end [1/1] (short) (narrow) %v10945_v31, 8 }
 0x311   : > { %v10919_v32 = vpop.trf.xlu1 }
 0x312   : > { %v10923_v37 = vunpack.i.h.bf16 %v10919_v32  ;;  %v10920_v35 = vunpack.i.l.bf16 %v10919_v32 }
 0x314   : > { %v2077_v47 = vrot.slane %v10923_v37, 4  ;;  %v2051_v29 = vrot.slane %v10920_v35, 4 }
 0x317   : > { %v2688_v57 = vpop.trf.xlu2 }
 0x318   : > { %v2864_v61 = vrot.slane %v2688_v57, 4 }
 0x31f   : > { %v10905_v33 = vpop.trf.xlu2 }
 0x320   : > { %v2816_v36 = vpop.trf.xlu0  ;;  %v10909_v41 = vunpack.i.h.bf16 %v10905_v33  ;;  %v10906_v55 = vunpack.i.l.bf16 %v10905_v33  ;;  %v2624_v54 = vpop.trf.xlu1 }
 0x321   : > { %v2866_v1 = vrot.slane %v2624_v54, 4  ;;  %v2865_v17 = vsel %vm1345_vm2, %v2864_v61, %v2624_v54  ;;  %v2888_v48 = vrot.slane %v2816_v36, 4 }
 0x322   : > { %v2075_v51 = vrot.slane %v10909_v41, 4  ;;  %v2078_v58 = vsel %vm1345_vm2, %v10909_v41, %v2077_v47  ;;  %v2063_v63 = vrot.slane %v10906_v55, 4 }
 0x323   : > { %v2086_v62 = vperm.slane %v2078_v58, %v11867_v38  ;;  %v2867_v18 = vsel %vm1345_vm2, %v2688_v57, %v2866_v1 }
 0x324   : > { %v2076_v8 = vsel %vm1345_vm2, %v2075_v51, %v10923_v37 }
 0x325   : > { %v12064_v10 = vperm.slane %v2076_v8, %v11867_v38  ;;  %v2123_v21 = vrot.slane %v2086_v62, 4 }
 0x327   : > { %v12056_v46 = vpop.trf.xlu2  ;;  %v2111_v30 = vrot.slane %v12064_v10, 4 }
 0x328   : > { %v10898_v49 = vpop.trf.xlu0  ;;  %v2900_v9 = vrot.slane %v12056_v46, 4 }
 0x329   : > { %v10902_v50 = vunpack.i.h.bf16 %v10898_v49  ;;  %v10899_v43 = vunpack.i.l.bf16 %v10898_v49 }
 0x32b   : > { %v2065_v56 = vrot.slane %v10902_v50, 4  ;;  %v2064_v19 = vsel %vm1345_vm2, %v2063_v63, %v10902_v50  ;;  %v2039_v0 = vrot.slane %v10899_v43, 4 }
 0x32c   : > { %v12081_v31 = vperm.slane %v2064_v19, %v11867_v38 }
 0x32d   : > { %v2066_v59 = vsel %vm1345_vm2, %v10906_v55, %v2065_v56 }
 0x32e   : > { %v2074_v60 = vperm.slane %v2066_v59, %v11867_v38 }
 0x32f   : > { %v10912_v2 = vpop.trf.xlu2 }
 0x330   : > { %v10916_v3 = vunpack.i.h.bf16 %v10912_v2  ;;  %v10913_v4 = vunpack.i.l.bf16 %v10912_v2  ;;  %v2752_v7 = vpop.trf.xlu0  ;;  %v2125_v11 = vrot.slane %v2074_v60, 4  ;;  %v2124_v50 = vsel %vm1345_vm2, %v2123_v21, %v2074_v60 }
 0x331   : > { %v2890_v28 = vrot.slane %v2752_v7, 4  ;;  %v2889_v32 = vsel %vm1345_vm2, %v2888_v48, %v2752_v7  ;;  %v2130_v60 = vperm.slane %v2124_v50, %v11875_v52 }
 0x332   : > { %v2052_v14 = vsel %vm1345_vm2, %v2051_v29, %v10916_v3  ;;  %v2053_v15 = vrot.slane %v10916_v3, 4  ;;  %v2041_v16 = vrot.slane %v10913_v4, 4  ;;  %v2126_v6 = vsel %vm1345_vm2, %v2086_v62, %v2125_v11 }
 0x333   : > { %v12073_v22 = vperm.slane %v2052_v14, %v11867_v38  ;;  %v2040_v41 = vsel %vm1345_vm2, %v2039_v0, %v10913_v4  ;;  %v2891_v54 = vsel %vm1345_vm2, %v2816_v36, %v2890_v28  ;;  %v12095_v59 = vperm.slane %v2889_v32, %v11867_v38 }
 0x334   : > { %v2042_v53 = vsel %vm1345_vm2, %v10899_v43, %v2041_v16  ;;  %v2054_v20 = vsel %vm1345_vm2, %v10920_v35, %v2053_v15  ;;  %v12087_v35 = vperm.slane %v2126_v6, %v11875_v52  ;;  %v2046_v61 = vperm.slane %v2040_v41, %v11867_v38 }
 0x335   : > { %v2050_v24 = vperm.slane %v2042_v53, %v11867_v38  ;;  %v2062_v25 = vperm.slane %v2054_v20, %v11867_v38  ;;  %v2087_v58 = vrot.slane %v12073_v22, 4  ;;  %v2112_v62 = vsel %vm1345_vm2, %v2111_v30, %v12081_v31 }
 0x336   : > { %v2147_v2 = vrot.slane %v12087_v35, 4  ;;  %v12112_v3 = vperm.slane %v2865_v17, %v11867_v38  ;;  %v2875_v4 = vperm.slane %v2867_v18, %v11867_v38  ;;  %v2899_v7 = vperm.slane %v2891_v54, %v11867_v38 }
 0x337   : > { %v2784_v57 = vpop.trf.xlu2  ;;  %v2099_v33 = vrot.slane %v2062_v25, 4  ;;  %v2101_v37 = vrot.slane %v2050_v24, 4  ;;  %v2088_v11 = vsel %vm1345_vm2, %v2087_v58, %v2046_v61  ;;  %v2938_v43 = vrot.slane %v12095_v59, 4 }
 0x338   : > { %v2902_v47 = vrot.slane %v2784_v57, 4  ;;  %v2656_v49 = vpop.trf.xlu0  ;;  %v2901_v51 = vsel %vm1345_vm2, %v2900_v9, %v2784_v57  ;;  %v12122_v15 = vperm.slane %v2112_v62, %v11875_v52  ;;  %v2089_v18 = vrot.slane %v2046_v61, 4 }
 0x339   : > { %v2100_v55 = vsel %vm1345_vm2, %v2099_v33, %v2050_v24  ;;  %v2102_v56 = vsel %vm1345_vm2, %v2062_v25, %v2101_v37  ;;  %v12108_v36 = vperm.slane %v2901_v51, %v11867_v38  ;;  %v2878_v17 = vrot.slane %v2656_v49, 4 }
 0x33a   : > { %v2106_v29 = vperm.slane %v2100_v55, %v11875_v52  ;;  %v12099_v8 = vperm.slane %v2102_v56, %v11875_v52  ;;  %v2903_v63 = vsel %vm1345_vm2, %v12056_v46, %v2902_v47  ;;  %v12128_v20 = vperm.slane %v2088_v11, %v11875_v52 }
 0x33b   : > { %v2911_v16 = vperm.slane %v2903_v63, %v11867_v38  ;;  %v2143_v21 = vrot.slane %v2130_v60, 4  ;;  %v2939_v24 = vsel %vm1345_vm2, %v12108_v36, %v2938_v43  ;;  %v2914_v25 = vrot.slane %v12112_v3, 4 }
 0x33c   : > { %v2145_v1 = vrot.slane %v2106_v29, 4  ;;  %v2148_v46 = vsel %vm1345_vm2, %v2147_v2, %v12099_v8  ;;  %v2950_v0 = vrot.slane %v2899_v7, 4  ;;  %v2926_v28 = vrot.slane %v2875_v4, 4 }
 0x33d   : > { %v2135_v32 = vrot.slane %v12122_v15, 4  ;;  %v2144_v57 = vsel %vm1345_vm2, %v2143_v21, %v2106_v29  ;;  %v2947_v41 = vperm.slane %v2939_v24, %v11875_v52  ;;  %v2090_v47 = vsel %vm1345_vm2, %v12073_v22, %v2089_v18 }
 0x33e   : > { %v2146_v14 = vsel %vm1345_vm2, %v2130_v60, %v2145_v1  ;;  %v2951_v37 = vsel %vm1345_vm2, %v2911_v16, %v2950_v0  ;;  %v2948_v61 = vrot.slane %v2911_v16, 4  ;;  %v12158_v2 = vperm.slane %v2090_v47, %v11875_v52 }
 0x33f   : > { %v10959_v48 = vpack.i.bf16 %v2148_v46, %v2146_v14  ;;  %v12125_v19 = vpop.trf.xlu2  ;;  %v2136_v55 = vsel %vm1345_vm2, %v2135_v32, %v12128_v20  ;;  %v12151_v29 = vperm.slane %v2951_v37, %v11875_v52  ;;  %v2964_v1 = vrot.slane %v2947_v41, 4 }
 0x340   : > { %v2720_v53 = vpop.trf.xlu0  ;;  %v10973_v58 = vpack.i.bf16 %v2136_v55, %v2144_v57  ;;  %v1716_v32 = vperm.slane %v12000_v13, %v11875_v52 }
 0x341   : > { %v2876_v6 = vrot.slane %v2720_v53, 4  ;;  %v2879_v9 = vsel %vm1345_vm2, %v2720_v53, %v2878_v17  ;;  %10960 = vxpose.xlu2.b32.start.end [1/1] (short) (narrow) %v10959_v48, 8  ;;  %v2949_v17 = vsel %vm1345_vm2, %v2948_v61, %v2899_v7  ;;  %v2141_v48 = vrot.slane %v12158_v2, 4 }
 0x342   : > { %v2887_v30 = vperm.slane %v2879_v9, %v11867_v38  ;;  %v1727_v53 = vrot.slane %v12035_v5, 4  ;;  %v2955_v24 = vperm.slane %v2949_v17, %v11875_v52  ;;  %v1725_v13 = vrot.slane %v1716_v32, 4 }
 0x343   : > { %v2877_v33 = vsel %vm1345_vm2, %v2876_v6, %v2656_v49  ;;  %v2113_v49 = vrot.slane %v12081_v31, 4 }
 0x344   : > { %v2883_v50 = vperm.slane %v2877_v33, %v11867_v38  ;;  %v2924_v51 = vrot.slane %v2887_v30, 4  ;;  %v2927_v56 = vsel %vm1345_vm2, %v2887_v30, %v2926_v28  ;;  %v1728_v0 = vsel %vm1345_vm2, 0.0, %v1727_v53 }
 0x345   : > { %v12147_v54 = vperm.slane %v2927_v56, %v11875_v52  ;;  %v2114_v16 = vsel %vm1345_vm2, %v12064_v10, %v2113_v49  ;;  %v2936_v10 = vrot.slane %v12108_v36, 4 }
 0x346   : > { %v2915_v60 = vsel %vm1345_vm2, %v2883_v50, %v2914_v25  ;;  %v2925_v22 = vsel %vm1345_vm2, %v2924_v51, %v2875_v4  ;;  %v2149_v4 = vrot.slane %v12099_v8, 4  ;;  %v2912_v46 = vrot.slane %v2883_v50, 4 }
 0x347   : > { %v2974_v62 = vrot.slane %v12147_v54, 4  ;;  %v2923_v63 = vperm.slane %v2915_v60, %v11875_v52  ;;  %v10926_v11 = vpop.trf.xlu2  ;;  %v12161_v43 = vperm.slane %v2925_v22, %v11875_v52  ;;  %v12174_v21 = vperm.slane %v2114_v16, %v11875_v52 }
 0x348   : > { %v2150_v8 = vsel %vm1345_vm2, %v12087_v35, %v2149_v4  ;;  %v2913_v25 = vsel %vm1345_vm2, %v2912_v46, %v12112_v3  ;;  %v10930_v28 = vunpack.i.h.bf16 %v10926_v11  ;;  %v10927_v3 = vunpack.i.l.bf16 %v10926_v11 }
 0x349   : > { %10974 = vxpose.xlu2.b32.start.end [1/1] (short) (narrow) %v10973_v58, 8  ;;  %v2975_v31 = vsel %vm1345_vm2, %v12151_v29, %v2974_v62  ;;  %v2965_v14 = vsel %vm1345_vm2, %v2964_v1, %v2923_v63  ;;  %v2970_v18 = vrot.slane %v12161_v43, 4  ;;  %v2142_v7 = vsel %vm1345_vm2, %v12174_v21, %v2141_v48 }
 0x34a   : > { %3200 = vxpose.xlu1.b32.start.end [1/1] (short) (narrow) %v2975_v31, 8  ;;  %3040 = vxpose.xlu0.b32.start.end [1/1] (short) (narrow) %v2965_v14, 8  ;;  %v10952_v9 = vpack.i.bf16 %v2142_v7, %v2150_v8  ;;  %v12189_v35 = vperm.slane %v2913_v25, %v11875_v52  ;;  %v2937_v36 = vsel %vm1345_vm2, %v2936_v10, %v12095_v59  ;;  %v2966_v33 = vrot.slane %v2923_v63, 4 }
 0x34b   : > { %v2971_v5 = vsel %vm1345_vm2, %v2955_v24, %v2970_v18  ;;  %v3982_v37 = vrot.slane %v10930_v28, 4  ;;  %v3960_v47 = vrot.slane %v10927_v3, 4  ;;  %v12198_v50 = vperm.slane %v2937_v36, %v11875_v52 }
 0x34c   : > { %v2962_v57 = vrot.slane %v12189_v35, 4  ;;  %v2967_v58 = vsel %vm1345_vm2, %v2947_v41, %v2966_v33  ;;  %v1726_v14 = vsel %vm1345_vm2, 0.0, %v1725_v13  ;;  %v2968_v46 = vrot.slane %v2955_v24, 4 }
 0x34d   : > { %v2972_v16 = vrot.slane %v12151_v29, 4 }
 0x34e   : > { %v2963_v59 = vsel %vm1345_vm2, %v12198_v50, %v2962_v57  ;;  %v2969_v25 = vsel %vm1345_vm2, %v2968_v46, %v12161_v43  ;;  %v2960_v43 = vrot.slane %v12198_v50, 4 }
 0x34f   : > { %v12184_v6 = vpop.trf.xlu2  ;;  %v2973_v10 = vsel %vm1345_vm2, %v2972_v16, %v12147_v54  ;;  %v2137_v54 = vrot.slane %v12128_v20, 4 }
 0x350   : > { %v10934_v30 = vunpack.i.l.bf16 %v12184_v6  ;;  %v10937_v49 = vunpack.i.h.bf16 %v12184_v6 }
 0x351   : > { %3136 = vxpose.xlu2.b32.start.end [1/1] (short) (narrow) %v2971_v5, 8 }
 0x352   : > { %4750 = vxpose.xlu1.b32.start.end [1/1] (short) (narrow) %v1728_v0, 8  ;;  %10953 = vxpose.xlu0.b32.start.end [1/1] (short) (narrow) %v10952_v9, 8  ;;  %v3984_v55 = vrot.slane %v10934_v30, 4  ;;  %v3983_v60 = vsel %vm1345_vm2, %v3982_v37, %v10934_v30  ;;  %v3994_v41 = vrot.slane %v10937_v49, 4 }
 0x353   : > { %v3989_v11 = vperm.slane %v3983_v60, %v11867_v38 }
 0x354   : > { %v3985_v63 = vsel %vm1345_vm2, %v10930_v28, %v3984_v55 }
 0x355   : > { %v3993_v18 = vperm.slane %v3985_v63, %v11867_v38  ;;  %v4032_v6 = vrot.slane %v3989_v11, 4 }
 0x357   : > { %v10940_v51 = vpop.trf.xlu2  ;;  %v4044_v36 = vrot.slane %v3993_v18, 4 }
 0x358   : > { %v10944_v56 = vunpack.i.h.bf16 %v10940_v51  ;;  %v10941_v62 = vunpack.i.l.bf16 %v10940_v51 }
 0x359   : > { %4654 = vxpose.xlu2.b32.start.end [1/1] (short) (narrow) %v1716_v32, 8 }
 0x35a   : > { %3008 = vxpose.xlu1.b32.start.end [1/1] (short) (narrow) %v2963_v59, 8  ;;  %3072 = vxpose.xlu0.b32.start.end [1/1] (short) (narrow) %v2967_v58, 8  ;;  %v3958_v22 = vrot.slane %v10944_v56, 4  ;;  %v3961_v61 = vsel %vm1345_vm2, %v10944_v56, %v3960_v47  ;;  %v3972_v4 = vrot.slane %v10941_v62, 4 }
 0x35b   : > { %v3969_v31 = vperm.slane %v3961_v61, %v11867_v38 }
 0x35c   : > { %v3959_v1 = vsel %vm1345_vm2, %v3958_v22, %v10927_v3 }
 0x35d   : > { %v3965_v48 = vperm.slane %v3959_v1, %v11867_v38  ;;  %v4020_v7 = vrot.slane %v3969_v31, 4 }
 0x35f   : > { %v10947_v17 = vpop.trf.xlu2  ;;  %v4008_v3 = vrot.slane %v3965_v48, 4 }
 0x360   : > { %v10951_v53 = vunpack.i.h.bf16 %v10947_v17  ;;  %v10948_v8 = vunpack.i.l.bf16 %v10947_v17 }
 0x361   : > { %4686 = vxpose.xlu2.b32.start.end [1/1] (short) (narrow) %v1726_v14, 8 }
 0x362   : > { %3104 = vxpose.xlu1.b32.start.end [1/1] (short) (narrow) %v2969_v25, 8  ;;  %3168 = vxpose.xlu0.b32.start.end [1/1] (short) (narrow) %v2973_v10, 8  ;;  %v3995_v29 = vsel %vm1345_vm2, %v3994_v41, %v10951_v53  ;;  %v3996_v24 = vrot.slane %v10951_v53, 4  ;;  %v3970_v5 = vrot.slane %v10948_v8, 4  ;;  %v3973_v9 = vsel %vm1345_vm2, %v10948_v8, %v3972_v4 }
 0x363   : > { %v4001_v0 = vperm.slane %v3995_v29, %v11867_v38  ;;  %v3981_v28 = vperm.slane %v3973_v9, %v11867_v38 }
 0x364   : > { %v3971_v30 = vsel %vm1345_vm2, %v3970_v5, %v10941_v62  ;;  %v3997_v32 = vsel %vm1345_vm2, %v10937_v49, %v3996_v24  ;;  %v2961_v62 = vsel %vm1345_vm2, %v2960_v43, %v12189_v35  ;;  %v2139_v35 = vrot.slane %v12174_v21, 4 }
 0x365   : > { %v3977_v57 = vperm.slane %v3971_v30, %v11867_v38  ;;  %v4005_v33 = vperm.slane %v3997_v32, %v11867_v38  ;;  %v4021_v37 = vsel %vm1345_vm2, %v3981_v28, %v4020_v7  ;;  %v4033_v47 = vsel %vm1345_vm2, %v4001_v0, %v4032_v6  ;;  %v12261_v32 = vpop.trf.xlu0 }
 0x366   : > { %v4029_v51 = vperm.slane %v4021_v37, %v11875_v52  ;;  %v4041_v55 = vperm.slane %v4033_v47, %v11875_v52  ;;  %v4030_v56 = vrot.slane %v4001_v0, 4  ;;  %v4018_v50 = vrot.slane %v3981_v28, 4 }
 0x367   : > { %v4009_v20 = vsel %vm1345_vm2, %v3977_v57, %v4008_v3  ;;  %v4045_v59 = vsel %vm1345_vm2, %v4005_v33, %v4044_v36  ;;  %v4006_v58 = vrot.slane %v3977_v57, 4  ;;  %v4042_v49 = vrot.slane %v4005_v33, 4  ;;  %v12265_v33 = vpop.trf.xlu1 }
 0x368   : > { %v4017_v13 = vperm.slane %v4009_v20, %v11875_v52  ;;  %v4053_v60 = vperm.slane %v4045_v59, %v11875_v52  ;;  %v4058_v22 = vrot.slane %v4041_v55, 4  ;;  %v4068_v61 = vrot.slane %v4029_v51, 4 }
 0x369   : > { %v4031_v63 = vsel %vm1345_vm2, %v4030_v56, %v3989_v11  ;;  %v4019_v1 = vsel %vm1345_vm2, %v4018_v50, %v3969_v31  ;;  %v4043_v41 = vsel %vm1345_vm2, %v4042_v49, %v3993_v18  ;;  %v4007_v11 = vsel %vm1345_vm2, %v4006_v58, %v3965_v48 }
 0x36a   : > { %2976 = vxpose.xlu0.b32.start.end [1/1] (short) (narrow) %v2961_v62, 8  ;;  %v4059_v14 = vsel %vm1345_vm2, %v4058_v22, %v4017_v13  ;;  %v4069_v4 = vsel %vm1345_vm2, %v4053_v60, %v4068_v61  ;;  %v4037_v16 = vperm.slane %v4031_v63, %v11875_v52  ;;  %v4025_v17 = vperm.slane %v4019_v1, %v11875_v52 }
 0x36b   : > { %v10980_v46 = vpack.i.bf16 %v4069_v4, %v4059_v14  ;;  %v4049_v53 = vperm.slane %v4043_v41, %v11875_v52  ;;  %v4066_v8 = vrot.slane %v4053_v60, 4  ;;  %v2138_v31 = vsel %vm1345_vm2, %v12122_v15, %v2137_v54 }
 0x36c   : > { %v4064_v18 = vrot.slane %v4025_v17, 4  ;;  %v2140_v25 = vsel %vm1345_vm2, %v2139_v35, %v12158_v2  ;;  %v4013_v7 = vperm.slane %v4007_v11, %v11875_v52  ;;  %v4054_v6 = vrot.slane %v4037_v16, 4 }
 0x36d   : > { %10981 = vxpose.xlu1.b32.start.end [1/1] (short) (narrow) %v10980_v46, 8  ;;  %v4067_v10 = vsel %vm1345_vm2, %v4066_v8, %v4029_v51  ;;  %v4060_v29 = vrot.slane %v4017_v13, 4  ;;  %v10966_v21 = vpack.i.bf16 %v2140_v25, %v2138_v31  ;;  %v4062_v28 = vrot.slane %v4049_v53, 4  ;;  %v12267_v37 = vpop.trf.xlu0 }
 0x36e   : > { %v4065_v24 = vsel %vm1345_vm2, %v4049_v53, %v4064_v18  ;;  %v4055_v48 = vsel %vm1345_vm2, %v4054_v6, %v4013_v7  ;;  %v4056_v0 = vrot.slane %v4013_v7, 4  ;;  %v1723_v43 = vrot.slane %v12045_v12, 4 }
 0x36f   : > { %v10994_v5 = vpack.i.bf16 %v4067_v10, %v4065_v24  ;;  %v4061_v15 = vsel %vm1345_vm2, %v4041_v55, %v4060_v29  ;;  %v4063_v3 = vsel %vm1345_vm2, %v4062_v28, %v4025_v17  ;;  %v1344_v47 = vrot.slane %v11848_v26, 4 }
 0x370   : > { %v10987_v9 = vpack.i.bf16 %v4061_v15, %v4055_v48  ;;  %v4057_v2 = vsel %vm1345_vm2, %v4037_v16, %v4056_v0  ;;  %v1724_v54 = vsel %vm1345_vm2, 0.0, %v1723_v43  ;;  %v1357_v56 = vrot.slane %v11850_v27, 4 }
 0x371   : > { %v11001_v36 = vpack.i.bf16 %v4063_v3, %v4057_v2  ;;  %v1346_v12 = vsel %vm1345_vm2, %v1344_v47, %v11834_v23  ;;  %v1347_v50 = vrot.slane %v11834_v23, 4  ;;  %v1359_v20 = vrot.slane %v11857_v34, 4 }
 0x372   : > { %10967 = vxpose.xlu0.b32.start.end [1/1] (short) (narrow) %v10966_v21, 8  ;;  %v1358_v59 = vsel %vm1345_vm2, %v1357_v56, %v11857_v34  ;;  %v1352_v49 = vperm.slane %v1346_v12, %v11867_v38 }
 0x373   : > { %v1348_v58 = vsel %vm1345_vm2, %v11848_v26, %v1347_v50  ;;  %v1360_v13 = vsel %vm1345_vm2, %v11850_v27, %v1359_v20  ;;  %v1364_v60 = vperm.slane %v1358_v59, %v11867_v38 }
 0x374   : > { %v1356_v22 = vperm.slane %v1348_v58, %v11867_v38  ;;  %v1371_v61 = vrot.slane %v1352_v49, 4  ;;  %v1368_v63 = vperm.slane %v1360_v13, %v11867_v38 }
 0x375   : > { %10995 = vxpose.xlu1.b32.start.end [1/1] (short) (narrow) %v10994_v5, 8  ;;  %v1369_v1 = vrot.slane %v1364_v60, 4 }
 0x376   : > { %v1372_v34 = vsel %vm1345_vm2, %v1364_v60, %v1371_v61  ;;  %v1383_v41 = vrot.slane %v1356_v22, 4  ;;  %v1381_v14 = vrot.slane %v1368_v63, 4 }
 0x377   : > { %v1380_v26 = vperm.slane %v1372_v34, %v11875_v52  ;;  %v1370_v27 = vsel %vm1345_vm2, %v1369_v1, %v1352_v49 }
 0x378   : > { %v1384_v4 = vsel %vm1345_vm2, %v1368_v63, %v1383_v41  ;;  %v1376_v17 = vperm.slane %v1370_v27, %v11875_v52  ;;  %v1382_v11 = vsel %vm1345_vm2, %v1381_v14, %v1356_v22 }
 0x379   : > { %v1392_v46 = vperm.slane %v1384_v4, %v11875_v52  ;;  %v1395_v53 = vrot.slane %v1380_v26, 4  ;;  %v1388_v8 = vperm.slane %v1382_v11, %v11875_v52 }
 0x37a   : > { %10988 = vxpose.xlu0.b32.start.end [1/1] (short) (narrow) %v10987_v9, 8  ;;  %v1393_v25 = vrot.slane %v1376_v17, 4 }
 0x37b   : > { %v1399_v31 = vrot.slane %v1392_v46, 4  ;;  %v1396_v18 = vsel %vm1345_vm2, 0.0, %v1395_v53  ;;  %v1397_v24 = vrot.slane %v1388_v8, 4  ;;  %v1729_v43 = vsel %vm1345_vm2, %v1395_v53, %v1376_v17 }
 0x37c   : > { %v1734_v7 = vrot.slane %v1396_v18, 4  ;;  %v1394_v5 = vsel %vm1345_vm2, 0.0, %v1393_v25 }
 0x37d   : > { %v1400_v21 = vsel %vm1345_vm2, 0.0, %v1399_v31  ;;  %v1398_v3 = vsel %vm1345_vm2, 0.0, %v1397_v24 }
 0x37e   : > { %v1745_v0 = vrot.slane %v1400_v21, 4 }
 0x380   : > { %v1746_v56 = vsel %vm1345_vm2, %v1745_v0, %v1398_v3 }
 0x381   : > { %v1750_v49 = vperm.slane %v1746_v56, %v11867_v38 }
 0x382   : > { %11002 = vxpose.xlu0.b32.start.end [1/1] (short) (narrow) %v11001_v36, 8  ;;  %v1735_v36 = vsel %vm1345_vm2, %v1734_v7, %v1394_v5 }
 0x383   : > { %v1739_v12 = vperm.slane %v1735_v36, %v11867_v38  ;;  %v1763_v34 = vrot.slane %v1750_v49, 4 }
 0x385   : > { %v1751_v22 = vrot.slane %v1739_v12, 4 }
 0x38a   : > { %4622 = vxpose.xlu0.b32.start.end [1/1] (short) (narrow) %v1724_v54, 8  ;;  %v1740_v54 = vsel %vm1345_vm2, %v1399_v31, %v1388_v8 }
 0x38b   : > { %v1744_v59 = vperm.slane %v1740_v54, %v11867_v38 }
 0x38d   : > { %v1765_v1 = vrot.slane %v1744_v59, 4 }
 0x38f   : > { %v1766_v17 = vsel %vm1345_vm2, %v1750_v49, %v1765_v1 }
 0x390   : > { %v1774_v5 = vperm.slane %v1766_v17, %v11875_v52 }
 0x3da   : > { %v10961_v30 = vpop.trf.xlu2 }
 0x3db   : > { %v10965_v10 = vunpack.i.h.bf16 %v10961_v30  ;;  %v10962_v28 = vunpack.i.l.bf16 %v10961_v30  ;;  %v1733_v30 = vperm.slane %v1729_v43, %v11867_v38 }
 0x3dd   : > { %v2419_v48 = vrot.slane %v10965_v10, 4  ;;  %v1753_v63 = vrot.slane %v1733_v30, 4  ;;  %v1752_v14 = vsel %vm1345_vm2, %v1751_v22, %v1733_v30  ;;  %v1779_v30 = vrot.slane %v1774_v5, 4 }
 0x3de   : > { %v1758_v31 = vperm.slane %v1752_v14, %v11875_v52 }
 0x3df   : > { %v1754_v46 = vsel %vm1345_vm2, %v1739_v12, %v1753_v63 }
 0x3e0   : > { %v1777_v43 = vrot.slane %v1758_v31, 4  ;;  %v1762_v54 = vperm.slane %v1754_v46, %v11875_v52 }
 0x3e2   : > { %v12263_v57 = vpop.trf.xlu2 }
 0x3e3   : > { %v10976_v15 = vunpack.i.l.bf16 %v12263_v57  ;;  %v10979_v8 = vunpack.i.h.bf16 %v12263_v57 }
 0x3e5   : > { %v2420_v47 = vsel %vm1345_vm2, %v2419_v48, %v10976_v15 }
 0x3e6   : > { %v2424_v58 = vperm.slane %v2420_v47, %v11867_v38 }
 0x3e8   : > { %v2445_v41 = vrot.slane %v2424_v58, 4 }
 0x3ee   : > { %v12270_v51 = vpop.trf.xlu0  ;;  %v12272_v55 = vpop.trf.xlu1 }
 0x3f6   : > { %v10954_v62 = vpop.trf.xlu0  ;;  %v12288_v23 = vpop.trf.xlu1 }
 0x3f7   : > { %v10955_v6 = vunpack.i.l.bf16 %v10954_v62  ;;  %v10958_v61 = vunpack.i.h.bf16 %v10954_v62  ;;  %v1764_v62 = vsel %vm1345_vm2, %v1763_v34, %v1744_v59 }
 0x3f8   : > { %v1770_v57 = vperm.slane %v1764_v62, %v11875_v52 }
 0x3f9   : > { %v2425_v2 = vrot.slane %v10955_v6, 4  ;;  %v2413_v4 = vrot.slane %v10958_v61, 4 }
 0x3fa   : > { %v1775_v59 = vrot.slane %v1770_v57, 4 }
 0x3fb   : > { %v2426_v50 = vsel %vm1345_vm2, %v2425_v2, %v10962_v28 }
 0x3fc   : > { %v2430_v60 = vperm.slane %v2426_v50, %v11867_v38 }
 0x3fe   : > { %v12296_v16 = vpop.trf.xlu0  ;;  %v12299_v35 = vpop.trf.xlu1  ;;  %v2443_v26 = vrot.slane %v2430_v60, 4  ;;  %v2446_v18 = vsel %vm1345_vm2, %v2430_v60, %v2445_v41 }
 0x3ff   : > { %v2454_v15 = vperm.slane %v2446_v18, %v11875_v52  ;;  %v1778_v18 = vsel %vm1345_vm2, %v1770_v57, %v1777_v43 }
 0x400   : > { %v2444_v6 = vsel %vm1345_vm2, %v2443_v26, %v2424_v58 }
 0x401   : > { %v2450_v2 = vperm.slane %v2444_v6, %v11875_v52  ;;  %v2459_v58 = vrot.slane %v2454_v15, 4 }
 0x403   : > { %v2455_v60 = vrot.slane %v2450_v2, 4 }
 0x406   : > { %v12304_v29 = vpop.trf.xlu0  ;;  %v12309_v9 = vpop.trf.xlu1 }
 0x40e   : > { %v12319_v20 = vpop.trf.xlu0 }
 0x411   : > { %v10982_v13 = vpop.trf.xlu1 }
 0x412   : > { %v10986_v10 = vunpack.i.h.bf16 %v10982_v13  ;;  %v10983_v47 = vunpack.i.l.bf16 %v10982_v13 }
 0x414   : > { %v4344_v3 = vrot.slane %v10986_v10, 4  ;;  %v4326_v13 = vrot.slane %v10983_v47, 4  ;;  %v1781_v10 = vrot.slane %v1762_v54, 4  ;;  %v3694_v47 = vrot.slane %v11924_v42, 4 }
 0x416   : > { %v10968_v27 = vpop.trf.xlu0 }
 0x417   : > { %v10972_v53 = vunpack.i.h.bf16 %v10968_v27  ;;  %v10969_v11 = vunpack.i.l.bf16 %v10968_v27 }
 0x419   : > { %v2407_v25 = vrot.slane %v10972_v53, 4  ;;  %v2414_v7 = vsel %vm1345_vm2, %v2413_v4, %v10969_v11  ;;  %v10996_v24 = vpop.trf.xlu1  ;;  %v1776_v4 = vsel %vm1345_vm2, %v1775_v59, %v1758_v31  ;;  %v1780_v11 = vsel %vm1345_vm2, %v1779_v30, %v1762_v54 }
 0x41a   : > { %v2418_v21 = vperm.slane %v2414_v7, %v11867_v38  ;;  %v10997_v36 = vunpack.i.l.bf16 %v10996_v24  ;;  %v11000_v1 = vunpack.i.h.bf16 %v10996_v24 }
 0x41b   : > { %v2408_v48 = vsel %vm1345_vm2, %v2407_v25, %v10979_v8 }
 0x41c   : > { %v2412_v0 = vperm.slane %v2408_v48, %v11867_v38  ;;  %v2431_v28 = vrot.slane %v2418_v21, 4  ;;  %v4345_v34 = vsel %vm1345_vm2, %v4344_v3, %v10997_v36  ;;  %v4338_v62 = vrot.slane %v11000_v1, 4 }
 0x41d   : > { %v4349_v53 = vperm.slane %v4345_v34, %v11867_v38  ;;  %v1280_v34 = vld [vmem:[%s13801_s1] sm:$0xff] }
 0x41e   : > { %v10989_v12 = vpop.trf.xlu0  ;;  %v2432_v56 = vsel %vm1345_vm2, %v2431_v28, %v2412_v0  ;;  %v2433_v50 = vrot.slane %v2412_v0, 4 }
 0x41f   : > { %v2438_v49 = vperm.slane %v2432_v56, %v11875_v52  ;;  %v10993_v61 = vunpack.i.h.bf16 %v10989_v12  ;;  %v10990_v41 = vunpack.i.l.bf16 %v10989_v12 }
 0x420   : > { %v2434_v22 = vsel %vm1345_vm2, %v2418_v21, %v2433_v50  ;;  %v4362_v21 = vrot.slane %v4349_v53, 4  ;;  %v3695_v50 = vsel %vm1345_vm2, %v3694_v47, %v11916_v39 }
 0x421   : > { %v2442_v63 = vperm.slane %v2434_v22, %v11875_v52  ;;  %v2456_v26 = vsel %vm1345_vm2, %v2455_v60, %v2438_v49  ;;  %v2457_v14 = vrot.slane %v2438_v49, 4  ;;  %v4332_v8 = vrot.slane %v10993_v61, 4 }
 0x422   : > { %2482 = vmatpush.msra.mxu1 %v2456_v26  ;;  %v4327_v7 = vsel %vm1345_vm2, %v4326_v13, %v10990_v41 }
 0x423   : > { %v2460_v27 = vsel %vm1345_vm2, %v2459_v58, %v2442_v63  ;;  %v2461_v46 = vrot.slane %v2442_v63, 4  ;;  %10666 = vmatmul.msk.f32.vlgmr.msra.gmra.mxu1 %vm2463_vm3, %v1776_v4  ;;  %v2458_v17 = vsel %vm1345_vm2, %v2450_v2, %v2457_v14  ;;  %v4331_v57 = vperm.slane %v4327_v7, %v11867_v38  ;;  %v12402_v7 = vld [vmem:[%s13802_s28 + $0x8] sm:$0xff] }
 0x424   : > { %2528 = vmatpush.msra.mxu3 %v2460_v27  ;;  %2505 = vmatpush.msra.mxu2 %v2458_v17  ;;  %v1782_v2 = vsel %vm1345_vm2, %v1774_v5, %v1781_v10 }
 0x425   : > { %10668 = vmatmul.msk.f32.vlgmr.msra.gmra.mxu3 %vm2463_vm3, %v1780_v11  ;;  %v2462_v31 = vsel %vm1345_vm2, %v2454_v15, %v2461_v46  ;;  %10667 = vmatmul.msk.f32.vlgmr.msra.gmra.mxu2 %vm2463_vm3, %v1778_v18  ;;  %v4352_v30 = vrot.slane %v4331_v57, 4 }
 0x426   : > { %2551 = vmatpush.msrb.mxu1 %v2462_v31  ;;  %v11003_v25 = vpop.trf.xlu0 }
 0x427   : > { %v11007_v6 = vunpack.i.h.bf16 %v11003_v25  ;;  %v11004_v24 = vunpack.i.l.bf16 %v11003_v25 }
 0x429   : > { %v4339_v48 = vsel %vm1345_vm2, %v4338_v62, %v11007_v6  ;;  %v4333_v0 = vsel %vm1345_vm2, %v4332_v8, %v11004_v24 }
 0x42a   : > { %v4337_v28 = vperm.slane %v4333_v0, %v11867_v38  ;;  %v4343_v15 = vperm.slane %v4339_v48, %v11867_v38  ;;  %v12406_v48 = vpop.trf.xlu2 }
 0x42b   : > { %10669 = vmatmul.msk.f32.vlgmr.msrb.gmra.mxu1 %vm2463_vm3, %v1782_v2 }
 0x42c   : > { %v4350_v3 = vrot.slane %v4337_v28, 4  ;;  %v4363_v36 = vsel %vm1345_vm2, %v4362_v21, %v4343_v15  ;;  %v4364_v59 = vrot.slane %v4343_v15, 4  ;;  %v4353_v58 = vsel %vm1345_vm2, %v4337_v28, %v4352_v30 }
 0x42d   : > { %v12369_v43 = vperm.slane %v4363_v36, %v11875_v52  ;;  %v4361_v42 = vperm.slane %v4353_v58, %v11875_v52 }
 0x42e   : > { %v4351_v54 = vsel %vm1345_vm2, %v4350_v3, %v4331_v57  ;;  %v4365_v49 = vsel %vm1345_vm2, %v4349_v53, %v4364_v59  ;;  %v4638_v57 = vpop.trf.xlu0 }
 0x42f   : > { %v12374_v12 = vperm.slane %v4351_v54, %v11875_v52  ;;  %v4374_v56 = vrot.slane %v12369_v43, 4  ;;  %v4373_v60 = vperm.slane %v4365_v49, %v11875_v52  ;;  %v4380_v22 = vrot.slane %v4361_v42, 4 }
 0x431   : > { %v4375_v5 = vsel %vm1345_vm2, %v4374_v56, %v12374_v12  ;;  %v4378_v61 = vrot.slane %v4373_v60, 4  ;;  %v12387_v63 = vsel %vm1345_vm2, %v4373_v60, %v4380_v22 }
 0x432   : > { %4400 = vmatpush.msrb.mxu3 %v4375_v5  ;;  %v4670_v0 = vpop.trf.xlu2 }
 0x433   : > { %10678 = vmatmul.msk.f32.vlgmr.msrb.gmra.mxu3 %vm2463_vm3, %v3695_v50  ;;  %v12390_v1 = vsel %vm1345_vm2, %v4378_v61, %v4361_v42 }
 0x43a   : > { %v4702_v28 = vpop.trf.xlu2 }
 0x4a0   : > { %v2484_v39 = vpop.f32.mrf.mxu1 }
 0x4a1   : > { %v2556_v13 = vmul.f32 0.35355338, %v2484_v39 }
 0x4a3   : > { %v2560_v41 = vadd.f32 %v2556_v13, %v1280_v34 }
 0x4a5   : > { %v2564_v26 = vsel %vm2463_vm3, %v2560_v41, -inf }
 0x4a6   : > { %2565 = vmax.xlane.f32.xlu0 %v2564_v26 }
 0x4a8   : > { %v2530_v14 = vpop.f32.mrf.mxu3  ;;  %v2507_v4 = vpop.f32.mrf.mxu2 }
 0x4a9   : > { %v2558_v27 = vmul.f32 0.35355338, %v2530_v14  ;;  %v2553_v46 = vpop.f32.mrf.mxu1  ;;  %v2557_v17 = vmul.f32 0.35355338, %v2507_v4 }
 0x4aa   : > { %v2559_v53 = vmul.f32 0.35355338, %v2553_v46  ;;  %v4818_v46 = vrot.slane %v12288_v23, 4 }
 0x4ab   : > { %v2562_v11 = vadd.f32 %v2558_v27, %v1280_v34  ;;  %v2561_v8 = vadd.f32 %v2557_v17, %v1280_v34  ;;  %v4784_v17 = vrot.slane %v12261_v32, 4 }
 0x4ac   : > { %v2563_v62 = vadd.f32 %v2559_v53, %v1280_v34  ;;  %v4794_v53 = vrot.slane %v4638_v57, 4 }
 0x4ad   : > { %v2570_v18 = vsel %vm2463_vm3, %v2562_v11, -inf  ;;  %v2567_v31 = vsel %vm2463_vm3, %v2561_v8, -inf }
 0x4ae   : > { %2571 = vmax.xlane.f32.xlu2 %v2570_v18  ;;  %v2573_v25 = vsel %vm2463_vm3, %v2563_v62, -inf  ;;  %2568 = vmax.xlane.f32.xlu0 %v2567_v31  ;;  %v4795_v18 = vsel %vm1345_vm2, %v4794_v53, %v12265_v33 }
 0x4af   : > { %2574 = vmax.xlane.f32.xlu1 %v2573_v25  ;;  %v4806_v25 = vrot.slane %v12125_v19, 4 }
 0x4b6   : > { %v4402_v10 = vpop.f32.mrf.mxu3 }
 0x4b7   : > { %v4474_v6 = vmul.f32 0.35355338, %v4402_v10  ;;  %v4782_v10 = vrot.slane %v12267_v37, 4 }
 0x4b9   : > { %v4478_v24 = vadd.f32 %v4474_v6, %v12402_v7  ;;  %v4808_v6 = vrot.slane %v4670_v0, 4 }
 0x4bb   : > { %v4482_v21 = vsel %vm2463_vm3, %v4478_v24, -inf }
 0x4bc   : > { %4483 = vmax.xlane.f32.xlu1 %v4482_v21 }
 0x519   : > { %v2566_v15 = vpop.xlane.xlu0 %2565 }
 0x51a   : > { %v2576_v2 = vsub.f32 %v2560_v41, %v2566_v15  ;;  %v4801_v15 = vperm.slane %v4795_v18, %v11867_v38 }
 0x51c   : > { %v2580_v3 = vmul.f32 1.442695, %v2576_v2  ;;  %v4807_v2 = vsel %vm1345_vm2, %v4806_v25, %v4670_v0 }
 0x51e   : > { %11125 = vpow2.f32 %v2580_v3  ;;  %v4820_v3 = vrot.slane %v4702_v28, 4 }
 0x521   : > { %v2572_v36 = vpop.xlane.xlu2 %2571  ;;  %v2569_v47 = vpop.xlane.xlu0 %2568 }
 0x522   : > { %v2578_v54 = vsub.f32 %v2562_v11, %v2572_v36  ;;  %v2575_v56 = vpop.xlane.xlu1 %2574  ;;  %v2577_v5 = vsub.f32 %v2561_v8, %v2569_v47  ;;  %v4796_v11 = vrot.slane %v12265_v33, 4  ;;  %v4819_v8 = vsel %vm1345_vm2, %v4818_v46, %v4702_v28 }
 0x523   : > { %v2579_v50 = vsub.f32 %v2563_v62, %v2575_v56  ;;  %v4785_v62 = vsel %vm1345_vm2, %v12267_v37, %v4784_v17  ;;  %v4825_v31 = vperm.slane %v4819_v8, %v11867_v38  ;;  %v4783_v33 = vsel %vm1345_vm2, %v4782_v10, %v12261_v32 }
 0x524   : > { %v2584_v30 = vmul.f32 1.442695, %v2578_v54  ;;  %v12408_v59 = vpop.eup %11125  ;;  %v2582_v58 = vmul.f32 1.442695, %v2577_v5  ;;  %v4793_v21 = vperm.slane %v4785_v62, %v11867_v38  ;;  %v4809_v47 = vsel %vm1345_vm2, %v12125_v19, %v4808_v6 }
 0x525   : > { %v2586_v42 = vmul.f32 1.442695, %v2579_v50  ;;  %v2588_v49 = vsel %vm2463_vm3, %v12408_v59, 0.0  ;;  %v4854_v36 = vrot.slane %v4825_v31, 4  ;;  %v4813_v56 = vperm.slane %v4807_v2, %v11867_v38 }
 0x526   : > { %11127 = vpow2.f32 %v2584_v30  ;;  %2589 = vadd.xlane.f32.xlu1 %v2588_v49  ;;  %v4844_v37 = vrot.slane %v4793_v21, 4  ;;  %v4821_v5 = vsel %vm1345_vm2, %v12288_v23, %v4820_v3  ;;  %v4789_v50 = vperm.slane %v4783_v33, %v11867_v38 }
 0x527   : > { %11129 = vpow2.f32 %v2582_v58  ;;  %v4817_v0 = vperm.slane %v4809_v47, %v11867_v38  ;;  %v4855_v30 = vsel %vm1345_vm2, %v4854_v36, %v4813_v56  ;;  %v4829_v32 = vperm.slane %v4821_v5, %v11867_v38 }
 0x528   : > { %11131 = vpow2.f32 %v2586_v42  ;;  %v4861_v19 = vperm.slane %v4855_v30, %v11875_v52  ;;  %v4832_v23 = vrot.slane %v4789_v50, 4  ;;  %v4856_v53 = vrot.slane %v4813_v56, 4 }
 0x529   : > { %v4868_v49 = vrot.slane %v4817_v0, 4  ;;  %v3250_v5 = vrot.slane %v12272_v55, 4 }
 0x52a   : > { %v4857_v8 = vsel %vm1345_vm2, %v4825_v31, %v4856_v53 }
 0x52b   : > { %v4865_v6 = vperm.slane %v4857_v8, %v11875_v52 }
 0x52c   : > { %v12412_v60 = vpop.eup %11127 }
 0x52d   : > { %v12414_v22 = vpop.eup %11129  ;;  %v2594_v61 = vsel %vm2463_vm3, %v12412_v60, 0.0  ;;  %v4882_v47 = vrot.slane %v4865_v6, 4 }
 0x52e   : > { %v12418_v39 = vpop.eup %11131  ;;  %2595 = vadd.xlane.f32.xlu2 %v2594_v61  ;;  %v2591_v34 = vsel %vm2463_vm3, %v12414_v22, 0.0 }
 0x52f   : > { %2592 = vadd.xlane.f32.xlu1 %v2591_v34  ;;  %v2597_v13 = vsel %vm2463_vm3, %v12418_v39, 0.0  ;;  %v4484_v41 = vpop.xlane.xlu1 %4483  ;;  %v4869_v34 = vsel %vm1345_vm2, %v4829_v32, %v4868_v49 }
 0x530   : > { %2598 = vadd.xlane.f32.xlu0 %v2597_v13  ;;  %v4494_v26 = vsub.f32 %v4478_v24, %v4484_v41  ;;  %v4797_v24 = vsel %vm1345_vm2, %v4638_v57, %v4796_v11  ;;  %v4830_v57 = vrot.slane %v4801_v15, 4  ;;  %v4878_v13 = vrot.slane %v4861_v19, 4 }
 0x531   : > { %v4805_v54 = vperm.slane %v4797_v24, %v11867_v38  ;;  %v4866_v24 = vrot.slane %v4829_v32, 4  ;;  %v3232_v32 = vrot.slane %v12270_v51, 4 }
 0x532   : > { %v4498_v14 = vmul.f32 1.442695, %v4494_v26  ;;  %v4831_v58 = vsel %vm1345_vm2, %v4830_v57, %v4789_v50  ;;  %v4833_v26 = vsel %vm1345_vm2, %v4801_v15, %v4832_v23  ;;  %v3251_v50 = vsel %vm1345_vm2, %v3250_v5, %v12406_v48 }
 0x533   : > { %v4845_v28 = vsel %vm1345_vm2, %v4805_v54, %v4844_v37  ;;  %v4837_v61 = vperm.slane %v4831_v58, %v11875_v52  ;;  %v4841_v17 = vperm.slane %v4833_v26, %v11875_v52  ;;  %v4842_v11 = vrot.slane %v4805_v54, 4 }
 0x534   : > { %11133 = vpow2.f32 %v4498_v14  ;;  %v4853_v42 = vperm.slane %v4845_v28, %v11875_v52  ;;  %v4867_v3 = vsel %vm1345_vm2, %v4866_v24, %v4817_v0  ;;  %v3238_v0 = vrot.slane %v12296_v16, 4 }
 0x535   : > { %v4879_v14 = vsel %vm1345_vm2, %v4878_v13, %v4837_v61  ;;  %v4884_v18 = vrot.slane %v4841_v17, 4  ;;  %v4843_v25 = vsel %vm1345_vm2, %v4842_v11, %v4793_v21  ;;  %v4873_v31 = vperm.slane %v4867_v3, %v11875_v52 }
 0x536   : > { %v4892_v41 = vrot.slane %v4853_v42, 4  ;;  %v4849_v2 = vperm.slane %v4843_v25, %v11875_v52  ;;  %v4883_v37 = vsel %vm1345_vm2, %v4882_v47, %v4841_v17  ;;  %v4880_v56 = vrot.slane %v4837_v61, 4 }
 0x537   : > { %v4885_v15 = vsel %vm1345_vm2, %v4865_v6, %v4884_v18  ;;  %v4886_v21 = vrot.slane %v4873_v31, 4  ;;  %v3244_v28 = vrot.slane %v12304_v29, 4  ;;  %v3255_v30 = vperm.slane %v3251_v50, %v11867_v38 }
 0x538   : > { %v4888_v36 = vrot.slane %v4849_v2, 4  ;;  %v4881_v57 = vsel %vm1345_vm2, %v4861_v19, %v4880_v56  ;;  %v3239_v58 = vsel %vm1345_vm2, %v3238_v0, %v12299_v35  ;;  %v3233_v55 = vsel %vm1345_vm2, %v3232_v32, %v12319_v20 }
 0x539   : > { %v4887_v33 = vsel %vm1345_vm2, %v4886_v21, %v4849_v2  ;;  %v3245_v19 = vsel %vm1345_vm2, %v3244_v28, %v12309_v9  ;;  %v3243_v48 = vperm.slane %v3239_v58, %v11867_v38  ;;  %v3237_v29 = vperm.slane %v3233_v55, %v11867_v38 }
 0x53a   : > { %v12424_v4 = vpop.eup %11133  ;;  %v4889_v54 = vsel %vm1345_vm2, %v4873_v31, %v4888_v36  ;;  %v3249_v16 = vperm.slane %v3245_v19, %v11867_v38  ;;  %v4376_v18 = vrot.slane %v12374_v12, 4 }
 0x53b   : > { %v4506_v27 = vsel %vm2463_vm3, %v12424_v4, 0.0  ;;  %v3256_v61 = vrot.slane %v3243_v48, 4 }
 0x53c   : > { %4507 = vadd.xlane.f32.xlu1 %v4506_v27  ;;  %v4877_v27 = vperm.slane %v4869_v34, %v11875_v52  ;;  %v3270_v23 = vrot.slane %v3249_v16, 4  ;;  %v3258_v34 = vrot.slane %v3237_v29, 4  ;;  %v4377_v31 = vsel %vm1345_vm2, %v12369_v43, %v4376_v18 }
 0x53d   : > { %v3257_v35 = vsel %vm1345_vm2, %v3256_v61, %v3237_v29 }
 0x53e   : > { %v4893_v46 = vsel %vm1345_vm2, %v4877_v27, %v4892_v41  ;;  %v4890_v62 = vrot.slane %v4877_v27, 4  ;;  %v3259_v17 = vsel %vm1345_vm2, %v3243_v48, %v3258_v34 }
 0x540   : > { %v4891_v10 = vsel %vm1345_vm2, %v4890_v62, %v4853_v42  ;;  %v3268_v42 = vrot.slane %v3255_v30, 4 }
 0x542   : > { %v3269_v51 = vsel %vm1345_vm2, %v3268_v42, %v3249_v16 }
 0x543   : > { %v3275_v9 = vperm.slane %v3269_v51, %v11875_v52 }
 0x545   : > { %v3280_v53 = vrot.slane %v3275_v9, 4 }
 0x557   : > { %4894 = vxpose.xlu2.b32.start.end [1/1] (short) (narrow) %v4879_v14, 8  ;;  %v3263_v14 = vperm.slane %v3257_v35, %v11875_v52 }
 0x559   : > { %5118 = vxpose.xlu0.b32.start.end [1/1] (short) (narrow) %v4893_v46, 8  ;;  %v3271_v46 = vsel %vm1345_vm2, %v3255_v30, %v3270_v23  ;;  %v3281_v11 = vsel %vm1345_vm2, %v3280_v53, %v3263_v14 }
 0x55a   : > { %v3279_v8 = vperm.slane %v3271_v46, %v11875_v52 }
 0x55c   : > { %v3284_v3 = vrot.slane %v3279_v8, 4 }
 0x55f   : > { %5086 = vxpose.xlu2.b32.start.end [1/1] (short) (narrow) %v4891_v10, 8 }
 0x561   : > { %4990 = vxpose.xlu0.b32.start.end [1/1] (short) (narrow) %v4885_v15, 8  ;;  %v3282_v15 = vrot.slane %v3263_v14, 4 }
 0x569   : > { %5054 = vxpose.xlu0.b32.start.end [1/1] (short) (narrow) %v4889_v54, 8 }
 0x571   : > { %5022 = vxpose.xlu0.b32.start.end [1/1] (short) (narrow) %v4887_v33, 8 }
 0x576   : > { %4958 = vxpose.xlu1.b32.start.end [1/1] (short) (narrow) %v4883_v37, 8 }
 0x57e   : > { %4926 = vxpose.xlu1.b32.start.end [1/1] (short) (narrow) %v4881_v57, 8 }
 0x599   : > { %v2590_v49 = vpop.xlane.xlu1 %2589 }
 0x59a   : > { %11135 = vrcp.f32 %v2590_v49 }
 0x5a0   : > { %v11136_v13 = vpop.eup %11135 }
 0x5a1   : > { %v2596_v20 = vpop.xlane.xlu2 %2595  ;;  %v2604_v26 = vmul.f32 %v11136_v13, %v12408_v59  ;;  %v3267_v59 = vperm.slane %v3259_v17, %v11875_v52 }
 0x5a2   : > { %11137 = vrcp.f32 %v2596_v20  ;;  %v2593_v41 = vpop.xlane.xlu1 %2592 }
 0x5a3   : > { %v2599_v27 = vpop.xlane.xlu0 %2598  ;;  %11139 = vrcp.f32 %v2593_v41  ;;  %10670 = vmatpush.xpose.msk.msrb.mxu2 %vm2463_vm3, %v2604_v26  ;;  %v3286_v36 = vrot.slane %v3267_v59, 4  ;;  %v3285_v12 = vsel %vm1345_vm2, %v3284_v3, %v3267_v59 }
 0x5a4   : > { %11141 = vrcp.f32 %v2599_v27 }
 0x5a6   : > { %10671 = vmatmul.msk.f32.vlgmr.msrb.gmra.mxu2 %vm2463_vm3, %v3281_v11 }
 0x5a8   : > { %v11138_v62 = vpop.eup %11137 }
 0x5a9   : > { %v11140_v25 = vpop.eup %11139  ;;  %v2606_v10 = vmul.f32 %v11138_v62, %v12412_v60  ;;  %v3283_v60 = vsel %vm1345_vm2, %v3275_v9, %v3282_v15 }
 0x5aa   : > { %v11142_v6 = vpop.eup %11141  ;;  %v2605_v24 = vmul.f32 %v11140_v25, %v12414_v22  ;;  %v3287_v22 = vsel %vm1345_vm2, %v3279_v8, %v3286_v36 }
 0x5ab   : > { %v2607_v2 = vmul.f32 %v11142_v6, %v12418_v39  ;;  %10674 = vmatpush.xpose.msk.msra.mxu1 %vm2463_vm3, %v2606_v10 }
 0x5ac   : > { %10672 = vmatpush.xpose.msk.msrb.mxu0 %vm2463_vm3, %v2605_v24 }
 0x5ad   : > { %10676 = vmatpush.xpose.msk.msra.mxu2 %vm2463_vm3, %v2607_v2 }
 0x5ae   : > { %10675 = vmatmul.msk.f32.vlgmr.msra.gmra.mxu1 %vm2463_vm3, %v3285_v12 }
 0x5af   : > { %4446 = vmatpush.msrb.mxu1 %v12390_v1  ;;  %10673 = vmatmul.msk.f32.vlgmr.msrb.gmra.mxu0 %vm2463_vm3, %v3283_v60  ;;  %v4508_v39 = vpop.xlane.xlu1 %4507 }
 0x5b0   : > { %4423 = vmatpush.msra.mxu0 %v4377_v31  ;;  %10677 = vmatmul.msk.f32.vlgmr.msra.gmra.mxu2 %vm2463_vm3, %v3287_v22  ;;  %11143 = vrcp.f32 %v4508_v39 }
 0x5b1   : > { %4469 = vmatpush.msrb.mxu2 %v12387_v63 }
 0x5b6   : > { %v11144_v43 = vpop.eup %11143  ;;  %10680 = vmatmul.msk.f32.vlgmr.msrb.gmra.mxu1 %vm2463_vm3, %v11919_v40 }
 0x5b7   : > { %v4522_v1 = vmul.f32 %v11144_v43, %v12424_v4  ;;  %10679 = vmatmul.msk.f32.vlgmr.msra.gmra.mxu0 %vm2463_vm3, %v11932_v45 }
 0x5b8   : > { %10681 = vmatmul.msk.f32.vlgmr.msrb.gmra.mxu2 %vm2463_vm3, %v11928_v44 }
 0x5b9   : > { %10682 = vmatpush.xpose.msk.msra.mxu3 %vm2463_vm3, %v4522_v1 }
 0x5f0   : > { %v4910_v57 = vpop.trf.xlu2 }
 0x5f8   : > { %v5102_v49 = vpop.trf.xlu2 }
 0x5f9   : > { %v5162_v35 = vrot.slane %v5102_v49, 4 }
 0x5fd   : > { %v5134_v37 = vpop.trf.xlu0 }
 0x5fe   : > { %v5168_v55 = vrot.slane %v5134_v37, 4 }
 0x605   : > { %v5006_v0 = vpop.trf.xlu0 }
 0x606   : > { %v5156_v28 = vrot.slane %v5006_v0, 4 }
 0x60d   : > { %v5070_v48 = vpop.trf.xlu0 }
 0x60e   : > { %v5169_v16 = vsel %vm1345_vm2, %v5168_v55, %v5070_v48 }
 0x60f   : > { %v5173_v51 = vperm.slane %v5169_v16, %v11867_v38 }
 0x611   : > { %v5186_v34 = vrot.slane %v5173_v51, 4 }
 0x615   : > { %v5038_v13 = vpop.trf.xlu0 }
 0x616   : > { %v5163_v20 = vsel %vm1345_vm2, %v5162_v35, %v5038_v13 }
 0x617   : > { %v5167_v14 = vperm.slane %v5163_v20, %v11867_v38 }
 0x619   : > { %v5187_v46 = vsel %vm1345_vm2, %v5186_v34, %v5167_v14  ;;  %v5188_v17 = vrot.slane %v5167_v14, 4 }
 0x61a   : > { %v4974_v4 = vpop.trf.xlu1  ;;  %v5193_v53 = vperm.slane %v5187_v46, %v11875_v52 }
 0x61b   : > { %v5150_v45 = vrot.slane %v4974_v4, 4  ;;  %v5189_v59 = vsel %vm1345_vm2, %v5173_v51, %v5188_v17 }
 0x61c   : > { %v5198_v18 = vrot.slane %v5193_v53, 4  ;;  %v5197_v6 = vperm.slane %v5189_v59, %v11875_v52 }
 0x61d   : > { %v5151_v44 = vsel %vm1345_vm2, %v5150_v45, %v4910_v57 }
 0x61e   : > { %v5155_v50 = vperm.slane %v5151_v44, %v11867_v38  ;;  %v5202_v2 = vrot.slane %v5197_v6, 4 }
 0x620   : > { %v5176_v32 = vrot.slane %v5155_v50, 4 }
 0x622   : > { %v4942_v30 = vpop.trf.xlu1 }
 0x623   : > { %v5157_v58 = vsel %vm1345_vm2, %v5156_v28, %v4942_v30 }
 0x624   : > { %v5161_v19 = vperm.slane %v5157_v58, %v11867_v38 }
 0x626   : > { %v5177_v42 = vsel %vm1345_vm2, %v5161_v19, %v5176_v32  ;;  %v5174_v41 = vrot.slane %v5161_v19, 4 }
 0x627   : > { %v5185_v10 = vperm.slane %v5177_v42, %v11875_v52 }
 0x628   : > { %v5175_v11 = vsel %vm1345_vm2, %v5174_v41, %v5155_v50 }
 0x629   : > { %v3311_v63 = vpop.f32.mrf.mxu2  ;;  %v5204_v24 = vrot.slane %v5185_v10, 4  ;;  %v12571_v31 = vsel %vm1345_vm2, %v5202_v2, %v5185_v10 }
 0x62a   : > { %3392 = vxpose.xlu2.b32.start.end [1/1] (short) (narrow) %v3311_v63, 8 }
 0x62b   : > { %v3363_v54 = vpop.f32.mrf.mxu1  ;;  %v12565_v3 = vsel %vm1345_vm2, %v5197_v6, %v5204_v24 }
 0x62c   : > { %3456 = vxpose.xlu1.b32.start.end [1/1] (short) (narrow) %v3363_v54, 8  ;;  %v3337_v21 = vpop.f32.mrf.mxu0 }
 0x632   : > { %3424 = vxpose.xlu2.b32.start.end [1/1] (short) (narrow) %v3337_v21, 8 }
 0x633   : > { %v3389_v33 = vpop.f32.mrf.mxu2  ;;  %v4448_v61 = vpop.f32.mrf.mxu1 }
 0x634   : > { %3488 = vxpose.xlu0.b32.start.end [1/1] (short) (narrow) %v3389_v33, 8  ;;  %v4425_v47 = vpop.f32.mrf.mxu0  ;;  %v4476_v9 = vmul.f32 0.35355338, %v4448_v61 }
 0x635   : > { %v4475_v40 = vmul.f32 0.35355338, %v4425_v47 }
 0x636   : > { %v12549_v27 = vadd.f32 %v4476_v9, %v12402_v7 }
 0x637   : > { %v12532_v56 = vadd.f32 %v4475_v40, %v12402_v7 }
 0x638   : > { %v4488_v62 = vsel %vm2463_vm3, %v12549_v27, -inf }
 0x639   : > { %v4485_v5 = vsel %vm2463_vm3, %v12532_v56, -inf }
 0x63b   : > { %v4471_v29 = vpop.f32.mrf.mxu2 }
 0x63c   : > { %v4477_v23 = vmul.f32 0.35355338, %v4471_v29 }
 0x63e   : > { %v12545_v26 = vadd.f32 %v4477_v23, %v12402_v7  ;;  %v5181_v7 = vperm.slane %v5175_v11, %v11875_v52 }
 0x640   : > { %v4491_v8 = vsel %vm2463_vm3, %v12545_v26, -inf  ;;  %v5199_v25 = vsel %vm1345_vm2, %v5198_v18, %v5181_v7  ;;  %v5200_v15 = vrot.slane %v5181_v7, 4 }
 0x641   : > { %10683 = vmatmul.msk.f32.vlgmr.msra.gmra.mxu3 %vm2463_vm3, %v5199_v25 }
 0x642   : > { %v12568_v36 = vsel %vm1345_vm2, %v5193_v53, %v5200_v15 }
 0x68c   : > { %4486 = vmax.xlane.f32.xlu1 %v4485_v5 }
 0x6a3   : > { %4492 = vmax.xlane.f32.xlu2 %v4491_v8 }
 0x6a5   : > { %4489 = vmax.xlane.f32.xlu0 %v4488_v62 }
 0x6c3   : > { %v3408_v12 = vpop.trf.xlu2 }
 0x6c4   : > { %v3522_v60 = vrot.slane %v3408_v12, 4 }
 0x6cb   : > { %v3440_v1 = vpop.trf.xlu2 }
 0x6cc   : > { %v3534_v21 = vrot.slane %v3440_v1, 4 }
 0x6d0   : > { %v3472_v22 = vpop.trf.xlu1 }
 0x6d1   : > { %v3520_v39 = vrot.slane %v3472_v22, 4  ;;  %v3523_v43 = vsel %vm1345_vm2, %v3472_v22, %v3522_v60 }
 0x6d2   : > { %v3531_v54 = vperm.slane %v3523_v43, %v11867_v38 }
 0x6d3   : > { %v3521_v63 = vsel %vm1345_vm2, %v3520_v39, %v3408_v12 }
 0x6d4   : > { %v3527_v33 = vperm.slane %v3521_v63, %v11867_v38  ;;  %v3558_v47 = vrot.slane %v3531_v54, 4 }
 0x6d6   : > { %v3546_v45 = vrot.slane %v3527_v33, 4 }
 0x6d8   : > { %v3504_v40 = vpop.trf.xlu0 }
 0x6d9   : > { %v3532_v37 = vrot.slane %v3504_v40, 4  ;;  %v3535_v4 = vsel %vm1345_vm2, %v3504_v40, %v3534_v21 }
 0x6da   : > { %v3543_v57 = vperm.slane %v3535_v4, %v11867_v38 }
 0x6db   : > { %v3533_v44 = vsel %vm1345_vm2, %v3532_v37, %v3440_v1 }
 0x6dc   : > { %v3539_v5 = vperm.slane %v3533_v44, %v11867_v38  ;;  %v3556_v50 = vrot.slane %v3543_v57, 4  ;;  %v3559_v0 = vsel %vm1345_vm2, %v3543_v57, %v3558_v47 }
 0x6dd   : > { %v3567_v28 = vperm.slane %v3559_v0, %v11875_v52 }
 0x6de   : > { %v3544_v30 = vrot.slane %v3539_v5, 4  ;;  %v3547_v32 = vsel %vm1345_vm2, %v3539_v5, %v3546_v45  ;;  %v3557_v58 = vsel %vm1345_vm2, %v3556_v50, %v3531_v54 }
 0x6df   : > { %v3555_v19 = vperm.slane %v3547_v32, %v11875_v52  ;;  %v3563_v55 = vperm.slane %v3557_v58, %v11875_v52  ;;  %v3574_v42 = vrot.slane %v3567_v28, 4 }
 0x6e0   : > { %v3545_v48 = vsel %vm1345_vm2, %v3544_v30, %v3527_v33 }
 0x6e1   : > { %v3551_v16 = vperm.slane %v3545_v48, %v11875_v52  ;;  %v3570_v49 = vrot.slane %v3555_v19, 4  ;;  %v3572_v29 = vrot.slane %v3563_v55, 4  ;;  %v3575_v61 = vsel %vm1345_vm2, 0.0, %v3574_v42  ;;  %v5568_v19 = vld [vmem:[%s11702_s17 + $0x10] sm:$0xff] }
 0x6e2   : > { %v3587_v51 = vsel %vm1345_vm2, %v3574_v42, %v3563_v55  ;;  %v3592_v35 = vrot.slane %v3575_v61, 4  ;;  %v5566_v55 = vld [vmem:[%s11702_s17] sm:$0xff]  ;;  %v5229_v42 = vpop.f32.mrf.mxu3 }
 0x6e3   : > { %v3568_v23 = vrot.slane %v3551_v16, 4  ;;  %v3571_v9 = vsel %vm1345_vm2, 0.0, %v3570_v49  ;;  %v3573_v34 = vsel %vm1345_vm2, 0.0, %v3572_v29  ;;  %v3591_v13 = vperm.slane %v3587_v51, %v11867_v38 }
 0x6e4   : > { %v3581_v20 = vrot.slane %v3571_v9, 4  ;;  %v3576_v41 = vsel %vm1345_vm2, %v3570_v49, %v3551_v16  ;;  %v3593_v14 = vsel %vm1345_vm2, %v3592_v35, %v3573_v34 }
 0x6e5   : > { %v3569_v46 = vsel %vm1345_vm2, 0.0, %v3568_v23  ;;  %v3580_v17 = vperm.slane %v3576_v41, %v11867_v38  ;;  %v3597_v53 = vperm.slane %v3593_v14, %v11867_v38  ;;  %v3612_v11 = vrot.slane %v3591_v13, 4 }
 0x6e6   : > { %v3582_v8 = vsel %vm1345_vm2, %v3581_v20, %v3569_v46 }
 0x6e7   : > { %v3586_v59 = vperm.slane %v3582_v8, %v11867_v38  ;;  %v3600_v62 = vrot.slane %v3580_v17, 4  ;;  %v3613_v7 = vsel %vm1345_vm2, %v3597_v53, %v3612_v11  ;;  %v3610_v18 = vrot.slane %v3597_v53, 4  ;;  %v5828_v53 = vld [vmem:[%s11672_s12 + $0x18] sm:$0xff]  ;;  %v5827_v11 = vld [vmem:[%s11672_s12 + $0x10] sm:$0xff]  ;;  %v5826_v8 = vld [vmem:[%s11672_s12 + $0x8] sm:$0xff] }
 0x6e8   : > { %v3621_v25 = vperm.slane %v3613_v7, %v11875_v52 }
 0x6e9   : > { %v3601_v10 = vsel %vm1345_vm2, %v3586_v59, %v3600_v62  ;;  %v3598_v6 = vrot.slane %v3586_v59, 4  ;;  %v3611_v24 = vsel %vm1345_vm2, %v3610_v18, %v3591_v13  ;;  %v1278_v59 = vld [vmem:[%s13803_s19] sm:$0xff]  ;;  %v1279_v62 = vld [vmem:[%s13804_s22 + $0x8] sm:$0xff] }
 0x6ea   : > { %v3609_v15 = vperm.slane %v3601_v10, %v11875_v52  ;;  %v3626_v2 = vrot.slane %v3621_v25, 4  ;;  %v3617_v12 = vperm.slane %v3611_v24, %v11875_v52 }
 0x6eb   : > { %v3599_v60 = vsel %vm1345_vm2, %v3598_v6, %v3580_v17 }
 0x6ec   : > { %v3627_v22 = vsel %vm1345_vm2, %v3626_v2, %v3609_v15  ;;  %v3628_v39 = vrot.slane %v3609_v15, 4  ;;  %v3605_v43 = vperm.slane %v3599_v60, %v11875_v52  ;;  %v3622_v1 = vrot.slane %v3617_v12, 4  ;;  %v11121_v15 = vld [vmem:[%s13806_s14] ss:$0 sm:$0xff] }
 0x6ed   : > { %3635 = vrot.lane.b32.xlu0 %v3627_v22, %s11481_s18 }
 0x6ee   : > { %v3629_v63 = vsel %vm1345_vm2, %v3621_v25, %v3628_v39  ;;  %v3624_v54 = vrot.slane %v3605_v43, 4  ;;  %v3623_v21 = vsel %vm1345_vm2, %v3622_v1, %v3605_v43  ;;  %v11203_v25 = vld [vmem:[#allocation12] sm:$0xff]  ;;  %v11484_v1 = vmov 32.0  }
 0x6ef   : > { %3639 = vrot.lane.b32.xlu2 %v3629_v63, %s11482_s10 }
 0x6f0   : > { %v3625_v33 = vsel %vm1345_vm2, %v3617_v12, %v3624_v54 }
 0x6f1   : > { %3631 = vrot.lane.b32.xlu1 %v3625_v33, %s11483_s27 }
 0x6ff   : > { %v4487_v47 = vpop.xlane.xlu1 %4486 }
 0x700   : > { %v4495_v40 = vsub.f32 %v12532_v56, %v4487_v47 }
 0x702   : > { %v4500_v37 = vmul.f32 1.442695, %v4495_v40 }
 0x704   : > { %11145 = vpow2.f32 %v4500_v37 }
 0x70a   : > { %v11146_v4 = vpop.eup %11145 }
 0x70b   : > { %v4509_v0 = vsel %vm2463_vm3, %v11146_v4, 0.0 }
 0x716   : > { %v4493_v45 = vpop.xlane.xlu2 %4492 }
 0x717   : > { %v4497_v44 = vsub.f32 %v12545_v26, %v4493_v45  ;;  %v5569_v26 = vld [vmem:[%s11702_s17 + $0x18] sm:$0xff] }
 0x718   : > { %v4490_v57 = vpop.xlane.xlu0 %4489  ;;  %5589 = vmatpush.msrb.mxu3 %v5569_v26 }
 0x719   : > { %v4496_v5 = vsub.f32 %v12549_v27, %v4490_v57  ;;  %v4504_v50 = vmul.f32 1.442695, %v4497_v44  ;;  %v5567_v27 = vld [vmem:[%s11702_s17 + $0x8] sm:$0xff] }
 0x71a   : > { %5590 = vmatpush.msrb.mxu3 %v5568_v19 }
 0x71b   : > { %v4502_v28 = vmul.f32 1.442695, %v4496_v5  ;;  %4510 = vadd.xlane.f32.xlu1 %v4509_v0  ;;  %11147 = vpow2.f32 %v4504_v50 }
 0x71c   : > { %5591 = vmatpush.msrb.mxu3 %v5567_v27 }
 0x71d   : > { %11149 = vpow2.f32 %v4502_v28 }
 0x71e   : > { %5592 = vmatpush.msrb.mxu3 %v5566_v55 }
 0x721   : > { %v11148_v56 = vpop.eup %11147 }
 0x722   : > { %v4515_v32 = vsel %vm2463_vm3, %v11148_v56, 0.0 }
 0x723   : > { %v11150_v30 = vpop.eup %11149  ;;  %4516 = vadd.xlane.f32.xlu0 %v4515_v32 }
 0x724   : > { %v4512_v58 = vsel %vm2463_vm3, %v11150_v30, 0.0 }
 0x725   : > { %4513 = vadd.xlane.f32.xlu2 %v4512_v58 }
 0x749   : > { %v3640_v29 = vpop.permute.xlu2 %3639 }
 0x755   : > { %5310 = vxpose.xlu1.b32.start.end [1/1] (short) (narrow) %v5229_v42, 8 }
 0x75f   : > { %v3636_v16 = vpop.permute.xlu0 %3635 }
 0x763   : > { %v3632_v48 = vpop.permute.xlu1 %3631 }
 0x764   : > { %v3642_v49 = vsel %vm2463_vm3, %v3623_v21, %v3632_v48 }
 0x765   : > { %v3644_v61 = vsel %vm3643_vm4, %v3642_v49, %v3636_v16 }
 0x766   : > { %v3646_v51 = vsel %vm3645_vm5, %v3644_v61, %v3640_v29 }
 0x767   : > { %3647 = vst.msk [vmem:[#allocation3] sm:$0xff] %vm1294_vm1, %v3646_v51 }
 0x76e   : > { %v5564_v35 = vld [vmem:[#allocation3] sm:$0xff] }
 0x76f   : > { %10690 = vmatmul.msk.f32.vlgmr.msrb.gmra.mxu3 %vm1294_vm1, %v5564_v35 }
 0x78e   : > { %v4511_v23 = vpop.xlane.xlu1 %4510 }
 0x78f   : > { %11151 = vrcp.f32 %v4511_v23 }
 0x795   : > { %v11152_v9 = vpop.eup %11151 }
 0x796   : > { %v4523_v34 = vmul.f32 %v11152_v9, %v11146_v4  ;;  %v4517_v13 = vpop.xlane.xlu0 %4516 }
 0x797   : > { %11153 = vrcp.f32 %v4517_v13 }
 0x798   : > { %v4514_v20 = vpop.xlane.xlu2 %4513  ;;  %10684 = vmatpush.xpose.msk.msrb.mxu0 %vm2463_vm3, %v4523_v34 }
 0x799   : > { %11155 = vrcp.f32 %v4514_v20 }
 0x79a   : > { %11157 = vrcp.f32 %v11484_v1 }
 0x79b   : > { %10685 = vmatmul.msk.f32.vlgmr.msrb.gmra.mxu0 %vm2463_vm3, %v12568_v36  ;;  %v5825_v36 = vld [vmem:[%s11672_s12] sm:$0xff] }
 0x79d   : > { %v11154_v41 = vpop.eup %11153 }
 0x79e   : > { %v4525_v46 = vmul.f32 %v11154_v41, %v11148_v56 }
 0x79f   : > { %v11156_v14 = vpop.eup %11155 }
 0x7a0   : > { %v4524_v17 = vmul.f32 %v11156_v14, %v11150_v30  ;;  %10688 = vmatpush.xpose.msk.msra.mxu2 %vm2463_vm3, %v4525_v46  ;;  %v11158_v63 = vpop.eup %11157 }
 0x7a1   : > { %v5609_v54 = vmul.f32 32.0, %v11158_v63  ;;  %vm5613_vm6 = vweird.f32 %v11158_v63 }
 0x7a2   : > { %10686 = vmatpush.xpose.msk.msra.mxu1 %vm2463_vm3, %v4524_v17 }
 0x7a3   : > { %10689 = vmatmul.msk.f32.vlgmr.msra.gmra.mxu2 %vm2463_vm3, %v12565_v3  ;;  %v12653_v3 = vld [vmem:[%s11727_s11] sm:$0xff]  ;;  %v5610_v21 = vsub.f32 1.0, %v5609_v54 }
 0x7a5   : > { %10687 = vmatmul.msk.f32.vlgmr.msra.gmra.mxu1 %vm2463_vm3, %v12571_v31  ;;  %v5570_v31 = vperm.slane %v12653_v3, 0  ;;  %v5611_v47 = vmul.f32 %v11158_v63, %v5610_v21 }
 0x7a6   : > { %5851 = vmatpush.msrb.mxu1 %v5828_v53 }
 0x7a7   : > { %v5612_v40 = vadd.f32 %v11158_v63, %v5611_v47 }
 0x7a8   : > { %5852 = vmatpush.msrb.mxu1 %v5827_v11 }
 0x7a9   : > { %v12678_v37 = vsel %vm5613_vm6, %v11158_v63, %v5612_v40 }
 0x7aa   : > { %5853 = vmatpush.msrb.mxu1 %v5826_v8 }
 0x7ac   : > { %5854 = vmatpush.msrb.mxu1 %v5825_v36 }
 0x7ad   : > { %10694 = vmatmul.msk.f32.vlgmr.msrb.gmra.mxu1 %vm1294_vm1, %v1278_v59 }
 0x7b5   : > { %10695 = vmatmul.msk.f32.gmra.mxu1 %vm1294_vm1, %v1279_v62 }
 0x7f2   : > { %v5594_v7 = vpop.f32.mrf.mxu3 }
 0x7f3   : > { %v5595_v18 = vadd.f32 %v5594_v7, %v5570_v31 }
 0x7f5   : > { %v5600_v10 = vadd.f32 %v11203_v25, %v5595_v18 }
 0x7f7   : > { %v5602_v6 = vsel %vm1294_vm1, %v5600_v10, 0.0 }
 0x7f8   : > { %5603 = vadd.xlane.f32.xlu1 %v5602_v6 }
 0x7f9   : > { %v5326_v33 = vpop.trf.xlu1 }
 0x7fa   : > { %v5440_v28 = vrot.slane %v5326_v33, 4 }
 0x818   : > { %v5255_v2 = vpop.f32.mrf.mxu0 }
 0x822   : > { %v5281_v24 = vpop.f32.mrf.mxu1 }
 0x823   : > { %5374 = vxpose.xlu2.b32.start.end [1/1] (short) (narrow) %v5281_v24, 8 }
 0x826   : > { %v5307_v22 = vpop.f32.mrf.mxu2 }
 0x82a   : > { %v5856_v12 = vpop.f32.mrf.mxu1 }
 0x82b   : > { %v12664_v60 = vadd.f32 %v11121_v15, %v5856_v12  ;;  %5342 = vxpose.xlu2.b32.start.end [1/1] (short) (narrow) %v5255_v2, 8 }
 0x82d   : > { %5876 = vrot.lane.b32.xlu0 %v12664_v60, %s11476_s13  ;;  %5864 = vrot.lane.b32.xlu1 %v12664_v60, %s11477_s5 }
 0x832   : > { %v5859_v39 = vpop.f32.mrf.mxu1 }
 0x833   : > { %v12674_v43 = vadd.f32 %v11121_v15, %v5859_v39 }
 0x835   : > { %5870 = vrot.lane.b32.xlu0 %v12664_v60, %s11475_s25  ;;  %5994 = vrot.lane.b32.xlu1 %v12664_v60, %s11478_s15 }
 0x857   : > { %5406 = vxpose.xlu0.b32.start.end [1/1] (short) (narrow) %v5307_v22, 8 }
 0x86b   : > { %v5604_v4 = vpop.xlane.xlu1 %5603 }
 0x86c   : > { %v5615_v45 = vmul.f32 %v12678_v37, %v5604_v4 }
 0x86e   : > { %v12681_v57 = vsub.f32 %v5600_v10, %v5615_v45 }
 0x870   : > { %v5619_v44 = vmul.f32 %v12681_v57, %v12681_v57 }
 0x872   : > { %v5621_v5 = vsel %vm1294_vm1, %v5619_v44, 0.0 }
 0x894   : > { %5866 = vrot.lane.b32.xlu2 %v12674_v43, %s11477_s5 }
 0x89f   : > { %v12692_v50 = vpop.permute.xlu0 %5876 }
 0x8a7   : > { %v12694_v30 = vpop.permute.xlu0 %5870 }
 0x8bc   : > { %v5390_v0 = vpop.trf.xlu2 }
 0x8bd   : > { %5622 = vadd.xlane.f32.xlu2 %v5621_v5  ;;  %v5438_v56 = vrot.slane %v5390_v0, 4  ;;  %v5441_v32 = vsel %vm1345_vm2, %v5390_v0, %v5440_v28 }
 0x8be   : > { %v5449_v19 = vperm.slane %v5441_v32, %v11867_v38 }
 0x8bf   : > { %v5439_v26 = vsel %vm1345_vm2, %v5438_v56, %v5326_v33 }
 0x8c0   : > { %v5445_v55 = vperm.slane %v5439_v26, %v11867_v38  ;;  %v5476_v42 = vrot.slane %v5449_v19, 4 }
 0x8c2   : > { %v5464_v29 = vrot.slane %v5445_v55, 4 }
 0x8c4   : > { %v5358_v58 = vpop.trf.xlu2 }
 0x8c5   : > { %5878 = vrot.lane.b32.xlu0 %v12674_v43, %s11476_s13  ;;  %v5452_v27 = vrot.slane %v5358_v58, 4 }
 0x8cd   : > { %5872 = vrot.lane.b32.xlu0 %v12674_v43, %s11475_s25 }
 0x8d5   : > { %5996 = vrot.lane.b32.xlu0 %v12674_v43, %s11478_s15 }
 0x8fb   : > { %v5422_v48 = vpop.trf.xlu0 }
 0x8fc   : > { %v5450_v16 = vrot.slane %v5422_v48, 4  ;;  %v5453_v49 = vsel %vm1345_vm2, %v5422_v48, %v5452_v27 }
 0x8fd   : > { %v5461_v61 = vperm.slane %v5453_v49, %v11867_v38  ;;  %v5867_v49 = vpop.permute.xlu2 %5866 }
 0x8fe   : > { %v5451_v51 = vsel %vm1345_vm2, %v5450_v16, %v5358_v58  ;;  %v5865_v16 = vpop.permute.xlu1 %5864 }
 0x8ff   : > { %v5457_v35 = vperm.slane %v5451_v51, %v11867_v38  ;;  %v5474_v23 = vrot.slane %v5461_v61, 4  ;;  %v5477_v9 = vsel %vm1345_vm2, %v5461_v61, %v5476_v42  ;;  %v5894_v61 = vrot.slane %v12692_v50, 4 }
 0x900   : > { %v5485_v34 = vperm.slane %v5477_v9, %v11875_v52  ;;  %v5884_v51 = vrot.slane %v12664_v60, 4  ;;  %v5896_v9 = vrot.slane %v5865_v16, 4 }
 0x901   : > { %v5462_v13 = vrot.slane %v5457_v35, 4  ;;  %v5465_v20 = vsel %vm1345_vm2, %v5457_v35, %v5464_v29  ;;  %v5475_v41 = vsel %vm1345_vm2, %v5474_v23, %v5449_v19  ;;  %v5882_v29 = vrot.slane %v12694_v30, 4  ;;  %v5662_v35 = vld [vmem:[%s11707_s26 + $0x18] sm:$0xff]  ;;  %v5661_v23 = vld [vmem:[%s11707_s26 + $0x10] sm:$0xff] }
 0x902   : > { %v5473_v14 = vperm.slane %v5465_v20, %v11875_v52  ;;  %v5481_v46 = vperm.slane %v5475_v41, %v11875_v52  ;;  %v5492_v17 = vrot.slane %v5485_v34, 4  ;;  %5682 = vmatpush.msra.mxu0 %v5662_v35  ;;  %v5885_v20 = vsel %vm1345_vm2, %v12694_v30, %v5884_v51  ;;  %v5660_v41 = vld [vmem:[%s11707_s26 + $0x8] sm:$0xff] }
 0x903   : > { %v5463_v53 = vsel %vm1345_vm2, %v5462_v13, %v5445_v55  ;;  %v5883_v34 = vsel %vm1345_vm2, %v5882_v29, %v12664_v60  ;;  %v5895_v13 = vsel %vm1345_vm2, %v5894_v61, %v5865_v16 }
 0x904   : > { %v5469_v11 = vperm.slane %v5463_v53, %v11875_v52  ;;  %v5488_v8 = vrot.slane %v5473_v14, 4  ;;  %v5490_v36 = vrot.slane %v5481_v46, 4  ;;  %v5493_v59 = vsel %vm1345_vm2, 0.0, %v5492_v17  ;;  %5683 = vmatpush.msra.mxu0 %v5661_v23 }
 0x905   : > { %v5505_v62 = vsel %vm1345_vm2, %v5492_v17, %v5481_v46  ;;  %v5510_v7 = vrot.slane %v5493_v59, 4  ;;  %v5889_v14 = vperm.slane %v5883_v34, %v11867_v38  ;;  %v5659_v46 = vld [vmem:[%s11707_s26] sm:$0xff]  ;;  %v5897_v17 = vsel %vm1345_vm2, %v12692_v50, %v5896_v9 }
 0x906   : > { %v5486_v18 = vrot.slane %v5469_v11, 4  ;;  %v5489_v25 = vsel %vm1345_vm2, 0.0, %v5488_v8  ;;  %v5491_v10 = vsel %vm1345_vm2, 0.0, %v5490_v36  ;;  %v5509_v6 = vperm.slane %v5505_v62, %v11867_v38  ;;  %5684 = vmatpush.msra.mxu0 %v5660_v41 }
 0x907   : > { %v5499_v24 = vrot.slane %v5489_v25, 4  ;;  %v5494_v15 = vsel %vm1345_vm2, %v5488_v8, %v5469_v11  ;;  %v5511_v2 = vsel %vm1345_vm2, %v5510_v7, %v5491_v10  ;;  %v5901_v53 = vperm.slane %v5895_v13, %v11867_v38 }
 0x908   : > { %v5487_v12 = vsel %vm1345_vm2, 0.0, %v5486_v18  ;;  %v5498_v22 = vperm.slane %v5494_v15, %v11867_v38  ;;  %v5515_v39 = vperm.slane %v5511_v2, %v11867_v38  ;;  %v5530_v1 = vrot.slane %v5509_v6, 4  ;;  %5685 = vmatpush.msra.mxu0 %v5659_v46 }
 0x909   : > { %v5500_v63 = vsel %vm1345_vm2, %v5499_v24, %v5487_v12  ;;  %v5893_v11 = vperm.slane %v5885_v20, %v11867_v38  ;;  %v5905_v8 = vperm.slane %v5897_v17, %v11867_v38  ;;  %v5908_v36 = vrot.slane %v5889_v14, 4 }
 0x90a   : > { %v5504_v54 = vperm.slane %v5500_v63, %v11867_v38  ;;  %v5518_v21 = vrot.slane %v5498_v22, 4  ;;  %v5531_v33 = vsel %vm1345_vm2, %v5515_v39, %v5530_v1  ;;  %v5528_v47 = vrot.slane %v5515_v39, 4 }
 0x90b   : > { %v5539_v40 = vperm.slane %v5531_v33, %v11875_v52  ;;  %v5906_v59 = vrot.slane %v5901_v53, 4  ;;  %v5920_v62 = vrot.slane %v5893_v11, 4  ;;  %v5918_v25 = vrot.slane %v5905_v8, 4 }
 0x90c   : > { %v5519_v4 = vsel %vm1345_vm2, %v5504_v54, %v5518_v21  ;;  %v5516_v45 = vrot.slane %v5504_v54, 4  ;;  %v5529_v44 = vsel %vm1345_vm2, %v5528_v47, %v5509_v6  ;;  %v5952_v2 = vrot.slane %v5867_v49, 4 }
 0x90d   : > { %v5527_v5 = vperm.slane %v5519_v4, %v11875_v52  ;;  %v5544_v0 = vrot.slane %v5539_v40, 4  ;;  %v5535_v28 = vperm.slane %v5529_v44, %v11875_v52  ;;  %v5907_v18 = vsel %vm1345_vm2, %v5906_v59, %v5889_v14 }
 0x90e   : > { %v5517_v56 = vsel %vm1345_vm2, %v5516_v45, %v5498_v22  ;;  %v5921_v10 = vsel %vm1345_vm2, %v5905_v8, %v5920_v62  ;;  %v5919_v24 = vsel %vm1345_vm2, %v5918_v25, %v5893_v11  ;;  %v5913_v15 = vperm.slane %v5907_v18, %v11875_v52 }
 0x90f   : > { %v5545_v32 = vsel %vm1345_vm2, %v5544_v0, %v5527_v5  ;;  %v5546_v58 = vrot.slane %v5527_v5, 4  ;;  %v5523_v26 = vperm.slane %v5517_v56, %v11875_v52  ;;  %v5540_v19 = vrot.slane %v5535_v28, 4 }
 0x910   : > { %5553 = vrot.lane.b32.xlu2 %v5545_v32, %s11481_s18  ;;  %v5929_v39 = vperm.slane %v5921_v10, %v11875_v52  ;;  %v12778_v63 = vperm.slane %v5919_v24, %v11875_v52  ;;  %v5930_v21 = vrot.slane %v5913_v15, 4  ;;  %v5940_v5 = vrot.slane %v12674_v43, 4 }
 0x911   : > { %v5547_v27 = vsel %vm1345_vm2, %v5539_v40, %v5546_v58  ;;  %v5542_v55 = vrot.slane %v5523_v26, 4  ;;  %v12736_v42 = vsel %vm1345_vm2, %v5540_v19, %v5523_v26  ;;  %v5653_v13 = vperm.slane %v12653_v3, 4 }
 0x912   : > { %5557 = vrot.lane.b32.xlu1 %v5547_v27, %s11482_s10  ;;  %v5936_v45 = vrot.slane %v5929_v39, 4  ;;  %v5931_v56 = vsel %vm1345_vm2, 0.0, %v5930_v21  ;;  %v5656_v17 = vperm.slane %v12653_v3, 5 }
 0x913   : > { %v5543_v48 = vsel %vm1345_vm2, %v5535_v28, %v5542_v55 }
 0x914   : > { %5549 = vrot.lane.b32.xlu0 %v5543_v48, %s11483_s27  ;;  %v5937_v55 = vsel %vm1345_vm2, 0.0, %v5936_v45 }
 0x915   : > { %v11015_v9 = vpack.i.bf16 %v5937_v55, %v5929_v39  ;;  %v5934_v39 = vrot.slane %v12778_v63, 4 }
 0x918   : > { %6006 = vrot.lane.b32.xlu2 %v12692_v50, %s11478_s15  ;;  %v5909_v50 = vsel %vm1345_vm2, %v5901_v53, %v5908_v36 }
 0x919   : > { %v12773_v22 = vperm.slane %v5909_v50, %v11875_v52 }
 0x91a   : > { %6002 = vrot.lane.b32.xlu1 %v12694_v30, %s11478_s15 }
 0x91b   : > { %v11008_v40 = vpack.i.bf16 %v12778_v63, %v12773_v22 }
 0x91c   : > { %5998 = vrot.lane.b32.xlu0 %v5865_v16, %s11478_s15 }
 0x920   : > { %6000 = vrot.lane.b32.xlu2 %v5867_v49, %s11478_s15 }
 0x930   : > { %v5623_v60 = vpop.xlane.xlu2 %5622 }
 0x931   : > { %v5627_v30 = vmul.f32 %v5623_v60, %v12678_v37 }
 0x933   : > { %v5629_v7 = vadd.f32 1e-05, %v5627_v30 }
 0x935   : > { %11159 = vrsqrt.f32 %v5629_v7  ;;  %vm5637_vm8 = vweird.f32 %v5629_v7 }
 0x937   : > { %v5879_v6 = vpop.permute.xlu0 %5878 }
 0x938   : > { %v5950_v12 = vrot.slane %v5879_v6, 4  ;;  %6008 = vrot.lane.b32.xlu1 %v5879_v6, %s11478_s15  ;;  %v5953_v1 = vsel %vm1345_vm2, %v5879_v6, %v5952_v2 }
 0x939   : > { %v5961_v4 = vperm.slane %v5953_v1, %v11867_v38 }
 0x93a   : > { %v5951_v47 = vsel %vm1345_vm2, %v5950_v12, %v5867_v49  ;;  %v11022_v49 = vpack.i.bf16 %v5931_v56, %v5913_v15  ;;  %v5932_v12 = vrot.slane %v12773_v22, 4 }
 0x93b   : > { %v11160_v54 = vpop.eup %11159  ;;  %v5957_v0 = vperm.slane %v5951_v47, %v11867_v38  ;;  %v5974_v19 = vrot.slane %v5961_v4, 4  ;;  %v12823_v47 = vpop.permute.xlu1 %5994 }
 0x93c   : > { %v5632_v33 = vmul.f32 %v11160_v54, %v5629_v7  ;;  %vm5638_vm7 = vweird.f32 %v11160_v54  ;;  %v5933_v1 = vsel %vm1345_vm2, 0.0, %v5932_v12 }
 0x93d   : > { %v5962_v51 = vrot.slane %v5957_v0, 4  ;;  %vm5639_vm9 = vmor %vm5637_vm8, %vm5638_vm7 }
 0x93e   : > { %v5633_v44 = vmul.f32 %v11160_v54, %v5632_v33  ;;  %11009 = vxpose.xlu0.b32.start.end [1/1] (short) (narrow) %v11008_v40, 8 }
 0x93f   : > { %v5873_v28 = vpop.permute.xlu0 %5872 }
 0x940   : > { %v5634_v32 = vmul.f32 0.5, %v5633_v44  ;;  %v5938_v58 = vrot.slane %v5873_v28, 4  ;;  %v5941_v26 = vsel %vm1345_vm2, %v5873_v28, %v5940_v5  ;;  %6004 = vrot.lane.b32.xlu1 %v5873_v28, %s11478_s15 }
 0x941   : > { %v5949_v27 = vperm.slane %v5941_v26, %v11867_v38 }
 0x942   : > { %v5635_v48 = vsub.f32 1.5, %v5634_v32  ;;  %v5939_v16 = vsel %vm1345_vm2, %v5938_v58, %v12674_v43 }
 0x943   : > { %v5976_v29 = vrot.slane %v5949_v27, 4  ;;  %v5945_v61 = vperm.slane %v5939_v16, %v11867_v38  ;;  %v5975_v35 = vsel %vm1345_vm2, %v5974_v19, %v5949_v27 }
 0x944   : > { %v5636_v23 = vmul.f32 %v11160_v54, %v5635_v48  ;;  %v5981_v34 = vperm.slane %v5975_v35, %v11875_v52 }
 0x945   : > { %v5963_v20 = vsel %vm1345_vm2, %v5962_v51, %v5945_v61  ;;  %v5977_v41 = vsel %vm1345_vm2, %v5961_v4, %v5976_v29  ;;  %v5964_v36 = vrot.slane %v5945_v61, 4 }
 0x946   : > { %v5640_v43 = vsel %vm5639_vm9, %v11160_v54, %v5636_v23  ;;  %11023 = vxpose.xlu2.b32.start.end [1/1] (short) (narrow) %v11022_v49, 8  ;;  %11016 = vxpose.xlu0.b32.start.end [1/1] (short) (narrow) %v11015_v9, 8  ;;  %v5990_v14 = vrot.slane %v5981_v34, 4  ;;  %v5969_v53 = vperm.slane %v5963_v20, %v11875_v52  ;;  %v5985_v11 = vperm.slane %v5977_v41, %v11875_v52 }
 0x947   : > { %v5651_v46 = vmul.f32 %v5640_v43, %v12681_v57  ;;  %v5965_v57 = vsel %vm1345_vm2, %v5957_v0, %v5964_v36  ;;  %v5935_v54 = vsel %vm1345_vm2, 0.0, %v5934_v39  ;;  %v12821_v33 = vpop.permute.xlu0 %5996  ;;  %v6020_v43 = vrot.slane %v12823_v47, 4 }
 0x948   : > { %v5991_v8 = vsel %vm1345_vm2, 0.0, %v5990_v14  ;;  %v11036_v59 = vpack.i.bf16 %v5969_v53, %v5981_v34  ;;  %v5986_v7 = vrot.slane %v5969_v53, 4  ;;  %v5973_v18 = vperm.slane %v5965_v57, %v11875_v52 }
 0x949   : > { %v5654_v60 = vmul.f32 %v5653_v13, %v5651_v46  ;;  %v11043_v62 = vpack.i.bf16 %v5985_v11, %v5991_v8  ;;  %v5992_v6 = vrot.slane %v5985_v11, 4  ;;  %v11029_v21 = vpack.i.bf16 %v5935_v54, %v5933_v1 }
 0x94a   : > { %v5987_v25 = vsel %vm1345_vm2, 0.0, %v5986_v7  ;;  %v5988_v10 = vrot.slane %v5973_v18, 4 }
 0x94b   : > { %v12808_v30 = vadd.f32 %v5656_v17, %v5654_v60  ;;  %v11050_v50 = vpack.i.bf16 %v5973_v18, %v5987_v25  ;;  %v5993_v15 = vsel %vm1345_vm2, 0.0, %v5992_v6 }
 0x94c   : > { %v5989_v24 = vsel %vm1345_vm2, 0.0, %v5988_v10 }
 0x94d   : > { %10692 = vmatmul.msk.f32.vlgmr.msra.gmra.mxu0 %vm1294_vm1, %v12808_v30  ;;  %v11057_v2 = vpack.i.bf16 %v5989_v24, %v5993_v15 }
 0x94e   : > { %11037 = vxpose.xlu2.b32.start.end [1/1] (short) (narrow) %v11036_v59, 8  ;;  %11044 = vxpose.xlu0.b32.start.end [1/1] (short) (narrow) %v11043_v62, 8 }
 0x956   : > { %11051 = vxpose.xlu0.b32.start.end [1/1] (short) (narrow) %v11050_v50, 8 }
 0x95e   : > { %11058 = vxpose.xlu0.b32.start.end [1/1] (short) (narrow) %v11057_v2, 8 }
 0x96a   : > { %v5554_v4 = vpop.permute.xlu2 %5553 }
 0x972   : > { %v12831_v0 = vpop.permute.xlu2 %6006 }
 0x973   : > { %v6030_v59 = vrot.slane %v12831_v0, 4 }
 0x975   : > { %11030 = vxpose.xlu1.b32.start.end [1/1] (short) (narrow) %v11029_v21, 8 }
 0x97a   : > { %v12833_v28 = vpop.permute.xlu2 %6000 }
 0x984   : > { %v5558_v44 = vpop.permute.xlu1 %5557 }
 0x986   : > { %v5550_v40 = vpop.permute.xlu0 %5549 }
 0x987   : > { %v5560_v45 = vsel %vm2463_vm3, %v12736_v42, %v5550_v40 }
 0x988   : > { %v5561_v22 = vsel %vm3643_vm4, %v5560_v45, %v5554_v4 }
 0x989   : > { %v5562_v63 = vsel %vm3645_vm5, %v5561_v22, %v5558_v44 }
 0x98a   : > { %5563 = vst.msk [vmem:[#allocation3 + $0x8] sm:$0xff] %vm1294_vm1, %v5562_v63 }
 0x98c   : > { %v12845_v41 = vpop.permute.xlu1 %6002 }
 0x98d   : > { %v6021_v60 = vsel %vm1345_vm2, %v12845_v41, %v6020_v43  ;;  %v6018_v10 = vrot.slane %v12845_v41, 4 }
 0x98e   : > { %v12835_v56 = vpop.permute.xlu0 %5998  ;;  %v12860_v6 = vperm.slane %v6021_v60, %v11867_v38 }
 0x98f   : > { %v6032_v62 = vrot.slane %v12835_v56, 4 }
 0x991   : > { %v5565_v5 = vld [vmem:[#allocation3 + $0x8] sm:$0xff]  ;;  %v6033_v54 = vsel %vm1345_vm2, %v12831_v0, %v6032_v62 }
 0x992   : > { %10691 = vmatmul.msk.f32.gmra.mxu3 %vm1294_vm1, %v5565_v5 }
 0x9aa   : > { %v12868_v45 = vpop.permute.xlu1 %6008 }
 0x9df   : > { %v12837_v32 = vpop.trf.xlu2 }
 0x9e0   : > { %v11025_v44 = vunpack.i.l.bf16 %v12837_v32 }
 0x9e2   : > { %v12839_v58 = vpop.trf.xlu0 }
 0x9e7   : > { %v11038_v42 = vpop.trf.xlu2 }
 0x9e8   : > { %v11042_v27 = vunpack.i.h.bf16 %v11038_v42  ;;  %v11039_v55 = vunpack.i.l.bf16 %v11038_v42 }
 0x9ea   : > { %v12841_v26 = vpop.trf.xlu0  ;;  %v8361_v16 = vrot.slane %v11042_v27, 4  ;;  %v8385_v49 = vrot.slane %v11039_v55, 4 }
 0x9eb   : > { %v11018_v62 = vunpack.i.l.bf16 %v12841_v26 }
 0x9f2   : > { %v11045_v19 = vpop.trf.xlu0 }
 0x9f3   : > { %v11049_v48 = vunpack.i.h.bf16 %v11045_v19  ;;  %v11046_v35 = vunpack.i.l.bf16 %v11045_v19 }
 0x9f5   : > { %v8383_v61 = vrot.slane %v11049_v48, 4  ;;  %v8386_v20 = vsel %vm1345_vm2, %v11049_v48, %v8385_v49  ;;  %v8397_v8 = vrot.slane %v11046_v35, 4 }
 0x9f6   : > { %v8394_v53 = vperm.slane %v8386_v20, %v11867_v38 }
 0x9f7   : > { %v8384_v46 = vsel %vm1345_vm2, %v8383_v61, %v11039_v55  ;;  %v11014_v55 = vunpack.i.h.bf16 %v12839_v58 }
 0x9f8   : > { %v8390_v7 = vperm.slane %v8384_v46, %v11867_v38  ;;  %v8445_v15 = vrot.slane %v8394_v53, 4 }
 0x9fa   : > { %v11052_v29 = vpop.trf.xlu0  ;;  %v8433_v21 = vrot.slane %v8390_v7, 4 }
 0x9fb   : > { %v11056_v51 = vunpack.i.h.bf16 %v11052_v29  ;;  %v11053_v9 = vunpack.i.l.bf16 %v11052_v29 }
 0x9fd   : > { %v8359_v23 = vrot.slane %v11056_v51, 4  ;;  %v8362_v34 = vsel %vm1345_vm2, %v11056_v51, %v8361_v16  ;;  %v8373_v36 = vrot.slane %v11053_v9, 4 }
 0x9fe   : > { %v8370_v11 = vperm.slane %v8362_v34, %v11867_v38 }
 0x9ff   : > { %v8360_v14 = vsel %vm1345_vm2, %v8359_v23, %v11042_v27 }
 0xa00   : > { %v8366_v57 = vperm.slane %v8360_v14, %v11867_v38  ;;  %v8421_v24 = vrot.slane %v8370_v11, 4 }
 0xa02   : > { %v11059_v18 = vpop.trf.xlu0  ;;  %v8409_v5 = vrot.slane %v8366_v57, 4 }
 0xa03   : > { %v11063_v25 = vunpack.i.h.bf16 %v11059_v18  ;;  %v11060_v50 = vunpack.i.l.bf16 %v11059_v18 }
 0xa05   : > { %v8371_v2 = vrot.slane %v11063_v25, 4  ;;  %v8374_v12 = vsel %vm1345_vm2, %v11063_v25, %v8373_v36  ;;  %v8395_v39 = vrot.slane %v11060_v50, 4  ;;  %v8398_v1 = vsel %vm1345_vm2, %v11060_v50, %v8397_v8 }
 0xa06   : > { %v8382_v40 = vperm.slane %v8374_v12, %v11867_v38  ;;  %v8406_v4 = vperm.slane %v8398_v1, %v11867_v38 }
 0xa07   : > { %v8372_v22 = vsel %vm1345_vm2, %v8371_v2, %v11053_v9  ;;  %v8396_v63 = vsel %vm1345_vm2, %v8395_v39, %v11046_v35 }
 0xa08   : > { %v8402_v42 = vperm.slane %v8396_v63, %v11867_v38  ;;  %v8443_v19 = vrot.slane %v8406_v4, 4  ;;  %v8419_v27 = vrot.slane %v8382_v40, 4  ;;  %v8422_v0 = vsel %vm1345_vm2, %v8382_v40, %v8421_v24  ;;  %v12910_v40 = vpop.permute.xlu1 %6004 }
 0xa09   : > { %v8430_v48 = vperm.slane %v8422_v0, %v11875_v52  ;;  %v8446_v16 = vsel %vm1345_vm2, %v8406_v4, %v8445_v15  ;;  %v8378_v49 = vperm.slane %v8372_v22, %v11867_v38  ;;  %v6031_v24 = vsel %vm1345_vm2, %v6030_v59, %v12835_v56 }
 0xa0a   : > { %v8420_v29 = vsel %vm1345_vm2, %v8419_v27, %v8370_v11  ;;  %v8444_v61 = vsel %vm1345_vm2, %v8443_v19, %v8394_v53  ;;  %v8454_v51 = vperm.slane %v8446_v16, %v11875_v52  ;;  %v8434_v35 = vsel %vm1345_vm2, %v8402_v42, %v8433_v21 }
 0xa0b   : > { %v8426_v23 = vperm.slane %v8420_v29, %v11875_v52  ;;  %v8450_v9 = vperm.slane %v8444_v61, %v11875_v52  ;;  %v8469_v34 = vrot.slane %v8430_v48, 4  ;;  %v8410_v20 = vsel %vm1345_vm2, %v8378_v49, %v8409_v5 }
 0xa0c   : > { %v12887_v43 = vperm.slane %v8410_v20, %v11875_v52  ;;  %v12890_v14 = vperm.slane %v8434_v35, %v11875_v52  ;;  %v8467_v46 = vrot.slane %v8454_v51, 4  ;;  %v8407_v11 = vrot.slane %v8378_v49, 4 }
 0xa0d   : > { %v11011_v53 = vunpack.i.l.bf16 %v12839_v58  ;;  %v8463_v60 = vrot.slane %v8450_v9, 4  ;;  %v8470_v8 = vsel %vm1345_vm2, %v8454_v51, %v8469_v34  ;;  %v8431_v36 = vrot.slane %v8402_v42, 4 }
 0xa0e   : > { %v8459_v18 = vrot.slane %v12890_v14, 4  ;;  %v8468_v25 = vsel %vm1345_vm2, %v8467_v46, %v8430_v48  ;;  %v8408_v50 = vsel %vm1345_vm2, %v8407_v11, %v8366_v57  ;;  %v8465_v21 = vrot.slane %v8426_v23, 4 }
 0xa0f   : > { %v8464_v15 = vsel %vm1345_vm2, %v8463_v60, %v8426_v23  ;;  %v12902_v2 = vperm.slane %v8408_v50, %v11875_v52  ;;  %v8432_v58 = vsel %vm1345_vm2, %v8431_v36, %v8390_v7  ;;  %v6442_v57 = vrot.slane %v11025_v44, 4 }
 0xa10   : > { %v11106_v12 = vpack.i.bf16 %v8470_v8, %v8464_v15  ;;  %v8460_v39 = vsel %vm1345_vm2, %v8459_v18, %v12887_v43  ;;  %v12908_v1 = vperm.slane %v8432_v58, %v11875_v52  ;;  %v6041_v59 = vperm.slane %v6033_v54, %v11867_v38 }
 0xa11   : > { %v11092_v4 = vpack.i.bf16 %v8460_v39, %v8468_v25  ;;  %v8457_v56 = vrot.slane %v12902_v2, 4  ;;  %v6466_v22 = vrot.slane %v11014_v55, 4  ;;  %v6440_v63 = vrot.slane %v11011_v53, 4 }
 0xa12   : > { %v6464_v5 = vrot.slane %v11018_v62, 4  ;;  %11107 = vxpose.xlu2.b32.start.end [1/1] (short) (narrow) %v11106_v12, 8  ;;  %v6056_v7 = vrot.slane %v12860_v6, 4  ;;  %v12916_v42 = vperm.slane %v6031_v24, %v11867_v38  ;;  %v11028_v19 = vunpack.i.h.bf16 %v12837_v32 }
 0xa13   : > { %11093 = vxpose.xlu1.b32.start.end [1/1] (short) (narrow) %v11092_v4, 8  ;;  %v8458_v27 = vsel %vm1345_vm2, %v12908_v1, %v8457_v56  ;;  %v8466_v0 = vsel %vm1345_vm2, %v8450_v9, %v8465_v21  ;;  %v6019_v54 = vsel %vm1345_vm2, %v6018_v10, %v12823_v47  ;;  %v11021_v48 = vunpack.i.h.bf16 %v12841_v26 }
 0xa14   : > { %v6443_v16 = vsel %vm1345_vm2, %v11011_v53, %v6442_v57  ;;  %v6057_v49 = vsel %vm1345_vm2, %v6041_v59, %v6056_v7  ;;  %v6465_v29 = vsel %vm1345_vm2, %v6464_v5, %v11014_v55  ;;  %v6467_v32 = vsel %vm1345_vm2, %v11018_v62, %v6466_v22 }
 0xa15   : > { %v6441_v61 = vsel %vm1345_vm2, %v6440_v63, %v11025_v44  ;;  %v6042_v51 = vrot.slane %v12916_v42, 4  ;;  %v11113_v35 = vpack.i.bf16 %v8458_v27, %v8466_v0  ;;  %v6054_v23 = vrot.slane %v6041_v59, 4 }
 0xa16   : > { %v6454_v9 = vrot.slane %v11028_v19, 4  ;;  %v6451_v41 = vperm.slane %v6443_v16, %v11867_v38  ;;  %v12935_v47 = vperm.slane %v6057_v49, %v11875_v52  ;;  %v6025_v26 = vperm.slane %v6019_v54, %v11867_v38 }
 0xa17   : > { %v6476_v10 = vrot.slane %v11021_v48, 4  ;;  %v12939_v34 = vperm.slane %v6465_v29, %v11867_v38  ;;  %v6475_v55 = vperm.slane %v6467_v32, %v11867_v38  ;;  %v6447_v44 = vperm.slane %v6441_v61, %v11867_v38 }
 0xa18   : > { %v6055_v53 = vsel %vm1345_vm2, %v6054_v23, %v12860_v6  ;;  %v6043_v60 = vsel %vm1345_vm2, %v6042_v51, %v6025_v26  ;;  %v6502_v15 = vrot.slane %v6451_v41, 4  ;;  %v6044_v5 = vrot.slane %v6025_v26, 4 }
 0xa19   : > { %v11031_v20 = vpop.trf.xlu1  ;;  %v6490_v25 = vrot.slane %v6447_v44, 4  ;;  %v6514_v6 = vrot.slane %v12939_v34, 4  ;;  %v6526_v39 = vrot.slane %v6475_v55, 4  ;;  %v12958_v59 = vperm.slane %v6055_v53, %v11875_v52 }
 0xa1a   : > { %v11035_v46 = vunpack.i.h.bf16 %v11031_v20  ;;  %v11032_v11 = vunpack.i.l.bf16 %v11031_v20  ;;  %7203 = vxpose.xlu2.b32.start.end [1/1] (short) (narrow) %v12935_v47, 8  ;;  %v6049_v22 = vperm.slane %v6043_v60, %v11875_v52  ;;  %v6045_v51 = vsel %vm1345_vm2, %v12916_v42, %v6044_v5 }
 0xa1b   : > { %11114 = vxpose.xlu1.b32.start.end [1/1] (short) (narrow) %v11113_v35, 8  ;;  %v6072_v26 = vrot.slane %v12935_v47, 4  ;;  %v6086_v42 = vrot.slane %v12868_v45, 4  ;;  %v6074_v47 = vrot.slane %v12910_v40, 4 }
 0xa1c   : > { %v6477_v8 = vsel %vm1345_vm2, %v6476_v10, %v11035_v46  ;;  %v6478_v36 = vrot.slane %v11035_v46, 4  ;;  %v6452_v62 = vrot.slane %v11032_v11, 4  ;;  %v6455_v18 = vsel %vm1345_vm2, %v11032_v11, %v6454_v9 }
 0xa1d   : > { %v6483_v50 = vperm.slane %v6477_v8, %v11867_v38  ;;  %v6463_v24 = vperm.slane %v6455_v18, %v11867_v38  ;;  %v6076_v10 = vrot.slane %v12821_v33, 4  ;;  %v6053_v46 = vperm.slane %v6045_v51, %v11875_v52 }
 0xa1e   : > { %v6479_v58 = vsel %vm1345_vm2, %v11021_v48, %v6478_v36  ;;  %v6453_v12 = vsel %vm1345_vm2, %v6452_v62, %v11028_v19  ;;  %v6073_v36 = vsel %vm1345_vm2, 0.0, %v6072_v26  ;;  %v8455_v26 = vrot.slane %v12908_v1, 4 }
 0xa1f   : > { %v6459_v21 = vperm.slane %v6453_v12, %v11867_v38  ;;  %v6500_v57 = vrot.slane %v6463_v24, 4  ;;  %v6487_v4 = vperm.slane %v6479_v58, %v11867_v38  ;;  %v6503_v56 = vsel %vm1345_vm2, %v6463_v24, %v6502_v15 }
 0xa20   : > { %v6511_v63 = vperm.slane %v6503_v56, %v11875_v52  ;;  %v6515_v19 = vsel %vm1345_vm2, %v6483_v50, %v6514_v6  ;;  %v6077_v8 = vsel %vm1345_vm2, %v12910_v40, %v6076_v10  ;;  %v6512_v62 = vrot.slane %v6483_v50, 4 }
 0xa21   : > { %v6491_v7 = vsel %vm1345_vm2, %v6459_v21, %v6490_v25  ;;  %v6527_v27 = vsel %vm1345_vm2, %v6487_v4, %v6526_v39  ;;  %v6501_v0 = vsel %vm1345_vm2, %v6500_v57, %v6451_v41  ;;  %v6524_v49 = vrot.slane %v6487_v4, 4 }
 0xa22   : > { %7011 = vxpose.xlu2.b32.start.end [1/1] (short) (narrow) %v6049_v22, 8  ;;  %v6499_v54 = vperm.slane %v6491_v7, %v11875_v52  ;;  %v6535_v48 = vperm.slane %v6527_v27, %v11875_v52  ;;  %v6550_v16 = vrot.slane %v6511_v63, 4  ;;  %v6523_v29 = vperm.slane %v6515_v19, %v11875_v52 }
 0xa23   : > { %7139 = vxpose.xlu1.b32.start.end [1/1] (short) (narrow) %v12958_v59, 8  ;;  %v6507_v61 = vperm.slane %v6501_v0, %v11875_v52  ;;  %v6525_v35 = vsel %vm1345_vm2, %v6524_v49, %v6475_v55  ;;  %v6488_v23 = vrot.slane %v6459_v21, 4  ;;  %v6087_v15 = vsel %vm1345_vm2, %v6086_v42, %v12833_v28 }
 0xa24   : > { %v6542_v32 = vrot.slane %v6499_v54, 4  ;;  %v6551_v41 = vsel %vm1345_vm2, %v6535_v48, %v6550_v16  ;;  %v6531_v11 = vperm.slane %v6525_v35, %v11875_v52  ;;  %v6548_v60 = vrot.slane %v6535_v48, 4 }
 0xa25   : > { %v6546_v53 = vrot.slane %v6507_v61, 4  ;;  %v6489_v55 = vsel %vm1345_vm2, %v6488_v23, %v6447_v44  ;;  %v6085_v44 = vperm.slane %v6077_v8, %v11867_v38  ;;  %v6066_v58 = vrot.slane %v6049_v22, 4 }
 0xa26   : > { %v6543_v9 = vsel %vm1345_vm2, %v6523_v29, %v6542_v32  ;;  %v6549_v25 = vsel %vm1345_vm2, %v6548_v60, %v6511_v63  ;;  %v6495_v24 = vperm.slane %v6489_v55, %v11875_v52  ;;  %v6088_v12 = vrot.slane %v12833_v28, 4 }
 0xa27   : > { %v11064_v20 = vpack.i.bf16 %v6543_v9, %v6551_v41  ;;  %v6547_v18 = vsel %vm1345_vm2, %v6531_v11, %v6546_v53  ;;  %v6068_v6 = vrot.slane %v6053_v46, 4  ;;  %v6075_v40 = vsel %vm1345_vm2, %v6074_v47, %v12821_v33 }
 0xa28   : > { %v11071_v39 = vpack.i.bf16 %v6549_v25, %v6547_v18  ;;  %v6513_v50 = vsel %vm1345_vm2, %v6512_v62, %v12939_v34  ;;  %v6089_v21 = vsel %vm1345_vm2, %v12868_v45, %v6088_v12  ;;  %v6093_v57 = vperm.slane %v6087_v15, %v11867_v38 }
 0xa29   : > { %11065 = vxpose.xlu0.b32.start.end [1/1] (short) (narrow) %v11064_v20, 8  ;;  %v6538_v4 = vrot.slane %v6495_v24, 4  ;;  %v6112_v56 = vrot.slane %v6085_v44, 4  ;;  %v6067_v22 = vsel %vm1345_vm2, 0.0, %v6066_v58  ;;  %v6069_v28 = vsel %vm1345_vm2, 0.0, %v6068_v6 }
 0xa2a   : > { %7075 = vxpose.xlu2.b32.start.end [1/1] (short) (narrow) %v6053_v46, 8  ;;  %v6519_v63 = vperm.slane %v6513_v50, %v11875_v52  ;;  %v6540_v33 = vrot.slane %v6523_v29, 4  ;;  %v6081_v5 = vperm.slane %v6075_v40, %v11867_v38  ;;  %v6097_v34 = vperm.slane %v6089_v21, %v11867_v38 }
 0xa2b   : > { %7235 = vxpose.xlu1.b32.start.end [1/1] (short) (narrow) %v6073_v36, 8  ;;  %v6098_v7 = vrot.slane %v6093_v57, 4  ;;  %v6544_v49 = vrot.slane %v6531_v11, 4  ;;  %v8461_v10 = vrot.slane %v12887_v43, 4  ;;  %v8456_v20 = vsel %vm1345_vm2, %v8455_v26, %v12902_v2 }
 0xa2c   : > { %v6539_v45 = vsel %vm1345_vm2, %v6519_v63, %v6538_v4  ;;  %v6113_v19 = vsel %vm1345_vm2, %v6097_v34, %v6112_v56  ;;  %v6541_v27 = vsel %vm1345_vm2, %v6540_v33, %v6499_v54  ;;  %v6536_v32 = vrot.slane %v6519_v63, 4 }
 0xa2d   : > { %v6099_v0 = vsel %vm1345_vm2, %v6098_v7, %v6081_v5  ;;  %v11078_v48 = vpack.i.bf16 %v6541_v27, %v6539_v45  ;;  %v13010_v16 = vperm.slane %v6113_v19, %v11875_v52  ;;  %v6110_v51 = vrot.slane %v6097_v34, 4 }
 0xa2e   : > { %v6105_v29 = vperm.slane %v6099_v0, %v11875_v52  ;;  %v6545_v35 = vsel %vm1345_vm2, %v6544_v49, %v6507_v61  ;;  %v6537_v54 = vsel %vm1345_vm2, %v6536_v32, %v6495_v24  ;;  %v8462_v46 = vsel %vm1345_vm2, %v12890_v14, %v8461_v10 }
 0xa2f   : > { %v6111_v23 = vsel %vm1345_vm2, %v6110_v51, %v6085_v44  ;;  %v11085_v9 = vpack.i.bf16 %v6537_v54, %v6545_v35  ;;  %v11099_v11 = vpack.i.bf16 %v8462_v46, %v8456_v20  ;;  %v6070_v60 = vrot.slane %v12958_v59, 4 }
 0xa30   : > { %v6117_v41 = vperm.slane %v6111_v23, %v11875_v52  ;;  %v6122_v61 = vrot.slane %v6105_v29, 4  ;;  %v6100_v42 = vrot.slane %v6081_v5, 4 }
 0xa31   : > { %11072 = vxpose.xlu0.b32.start.end [1/1] (short) (narrow) %v11071_v39, 8  ;;  %v6071_v1 = vsel %vm1345_vm2, 0.0, %v6070_v60 }
 0xa32   : > { %7043 = vxpose.xlu2.b32.start.end [1/1] (short) (narrow) %v6067_v22, 8  ;;  %v6123_v53 = vsel %vm1345_vm2, 0.0, %v6122_v61  ;;  %v6101_v43 = vsel %vm1345_vm2, %v6093_v57, %v6100_v42  ;;  %v6126_v14 = vrot.slane %v6117_v41, 4 }
 0xa33   : > { %7107 = vxpose.xlu1.b32.start.end [1/1] (short) (narrow) %v6069_v28, 8  ;;  %v13029_v55 = vperm.slane %v6101_v43, %v11875_v52 }
 0xa34   : > { %v6127_v2 = vsel %vm1345_vm2, 0.0, %v6126_v14 }
 0xa39   : > { %11079 = vxpose.xlu0.b32.start.end [1/1] (short) (narrow) %v11078_v48, 8 }
 0xa3a   : > { %9122 = vxpose.xlu2.b32.start.end [1/1] (short) (narrow) %v13010_v16, 8 }
 0xa3b   : > { %8930 = vxpose.xlu1.b32.start.end [1/1] (short) (narrow) %v6105_v29, 8 }
 0xa41   : > { %11086 = vxpose.xlu0.b32.start.end [1/1] (short) (narrow) %v11085_v9, 8 }
 0xa42   : > { %9058 = vxpose.xlu2.b32.start.end [1/1] (short) (narrow) %v6117_v41, 8 }
 0xa49   : > { %11100 = vxpose.xlu0.b32.start.end [1/1] (short) (narrow) %v11099_v11, 8 }
 0xa4a   : > { %8962 = vxpose.xlu2.b32.start.end [1/1] (short) (narrow) %v6123_v53, 8 }
 0xa51   : > { %7171 = vxpose.xlu0.b32.start.end [1/1] (short) (narrow) %v6071_v1, 8 }
 0xa59   : > { %8994 = vxpose.xlu0.b32.start.end [1/1] (short) (narrow) %v13029_v55, 8 }
 0xa61   : > { %9090 = vxpose.xlu0.b32.start.end [1/1] (short) (narrow) %v6127_v2, 8 }
 0xaab   : > { %v11108_v8 = vpop.trf.xlu2 }
 0xaac   : > { %v11109_v62 = vunpack.i.l.bf16 %v11108_v8  ;;  %v11112_v18 = vunpack.i.h.bf16 %v11108_v8 }
 0xaae   : > { %v8745_v24 = vrot.slane %v11112_v18, 4 }
 0xab3   : > { %v7219_v50 = vpop.trf.xlu2 }
 0xab4   : > { %v7291_v9 = vrot.slane %v7219_v50, 4 }
 0xab7   : > { %v11094_v36 = vpop.trf.xlu1 }
 0xab8   : > { %v11095_v47 = vunpack.i.l.bf16 %v11094_v36  ;;  %v11098_v54 = vunpack.i.h.bf16 %v11094_v36 }
 0xaba   : > { %v8739_v59 = vrot.slane %v11095_v47, 4 }
 0xabb   : > { %v7027_v56 = vpop.trf.xlu2 }
 0xabc   : > { %v8740_v25 = vsel %vm1345_vm2, %v8739_v59, %v11109_v62  ;;  %v7269_v5 = vrot.slane %v7027_v56, 4  ;;  %v8727_v59 = vrot.slane %v11098_v54, 4 }
 0xabd   : > { %v8744_v6 = vperm.slane %v8740_v25, %v11867_v38 }
 0xabf   : > { %v13034_v15 = vpop.trf.xlu1  ;;  %v8765_v39 = vrot.slane %v8744_v6, 4 }
 0xac0   : > { %v11116_v44 = vunpack.i.l.bf16 %v13034_v15  ;;  %v11119_v18 = vunpack.i.h.bf16 %v13034_v15 }
 0xac2   : > { %v8746_v58 = vsel %vm1345_vm2, %v8745_v24, %v11116_v44 }
 0xac3   : > { %v8750_v12 = vperm.slane %v8746_v58, %v11867_v38  ;;  %v7091_v19 = vpop.trf.xlu2 }
 0xac4   : > { %v7267_v48 = vrot.slane %v7091_v19, 4  ;;  %v7270_v29 = vsel %vm1345_vm2, %v7091_v19, %v7269_v5 }
 0xac5   : > { %v8763_v40 = vrot.slane %v8750_v12, 4  ;;  %v13044_v4 = vsel %vm1345_vm2, %v8750_v12, %v8765_v39  ;;  %v13053_v26 = vperm.slane %v7270_v29, %v11867_v38 }
 0xac6   : > { %v7268_v41 = vsel %vm1345_vm2, %v7267_v48, %v7027_v56 }
 0xac7   : > { %v13041_v57 = vsel %vm1345_vm2, %v8763_v40, %v8744_v6  ;;  %v7155_v28 = vpop.trf.xlu1  ;;  %v13058_v42 = vperm.slane %v7268_v41, %v11867_v38  ;;  %v7329_v25 = vrot.slane %v13053_v26, 4 }
 0xac8   : > { %v7292_v1 = vsel %vm1345_vm2, %v7291_v9, %v7155_v28  ;;  %v7293_v43 = vrot.slane %v7155_v28, 4 }
 0xac9   : > { %v13070_v40 = vperm.slane %v7292_v1, %v11867_v38  ;;  %v7317_v39 = vrot.slane %v13058_v42, 4 }
 0xaca   : > { %v7294_v15 = vsel %vm1345_vm2, %v7219_v50, %v7293_v43 }
 0xacb   : > { %v7059_v24 = vpop.trf.xlu2  ;;  %v7302_v48 = vperm.slane %v7294_v15, %v11867_v38 }
 0xacc   : > { %v7281_v28 = vrot.slane %v7059_v24, 4 }
 0xacd   : > { %v11066_v21 = vpop.trf.xlu0 }
 0xace   : > { %v11070_v63 = vunpack.i.h.bf16 %v11066_v21  ;;  %v11067_v33 = vunpack.i.l.bf16 %v11066_v21 }
 0xacf   : > { %v13049_v23 = vpop.trf.xlu1 }
 0xad0   : > { %v6814_v27 = vrot.slane %v11070_v63, 4  ;;  %v6826_v0 = vrot.slane %v11067_v33, 4  ;;  %v7303_v1 = vrot.slane %v13049_v23, 4 }
 0xad5   : > { %v11073_v22 = vpop.trf.xlu0 }
 0xad6   : > { %v11074_v45 = vunpack.i.l.bf16 %v11073_v22  ;;  %v11077_v49 = vunpack.i.h.bf16 %v11073_v22 }
 0xad7   : > { %v7123_v22 = vpop.trf.xlu1 }
 0xad8   : > { %v6827_v51 = vsel %vm1345_vm2, %v6826_v0, %v11074_v45  ;;  %v6820_v10 = vrot.slane %v11077_v49, 4  ;;  %v7279_v49 = vrot.slane %v7123_v22, 4  ;;  %v7282_v9 = vsel %vm1345_vm2, %v7123_v22, %v7281_v28 }
 0xad9   : > { %v6831_v20 = vperm.slane %v6827_v51, %v11867_v38 }
 0xada   : > { %v7280_v43 = vsel %vm1345_vm2, %v7279_v49, %v7059_v24 }
 0xadb   : > { %v6844_v8 = vrot.slane %v6831_v20, 4 }
 0xadd   : > { %v11080_v34 = vpop.trf.xlu0 }
 0xade   : > { %v11081_v7 = vunpack.i.l.bf16 %v11080_v34  ;;  %v11084_v32 = vunpack.i.h.bf16 %v11080_v34 }
 0xae0   : > { %v6815_v35 = vsel %vm1345_vm2, %v6814_v27, %v11081_v7  ;;  %v6808_v46 = vrot.slane %v11084_v32, 4 }
 0xae1   : > { %v6819_v61 = vperm.slane %v6815_v35, %v11867_v38 }
 0xae3   : > { %v6832_v36 = vrot.slane %v6819_v61, 4 }
 0xae5   : > { %v11087_v11 = vpop.trf.xlu0 }
 0xae6   : > { %v11091_v53 = vunpack.i.h.bf16 %v11087_v11  ;;  %v11088_v60 = vunpack.i.l.bf16 %v11087_v11 }
 0xae8   : > { %v6809_v14 = vsel %vm1345_vm2, %v6808_v46, %v11091_v53  ;;  %v6821_v2 = vsel %vm1345_vm2, %v6820_v10, %v11088_v60  ;;  %v8770_v53 = vperm.slane %v13041_v57, %v11875_v52  ;;  %v7341_v60 = vrot.slane %v13070_v40, 4 }
 0xae9   : > { %v6813_v47 = vperm.slane %v6809_v14, %v11867_v38  ;;  %v6825_v62 = vperm.slane %v6821_v2, %v11867_v38  ;;  %v7353_v2 = vrot.slane %v7302_v48, 4 }
 0xaeb   : > { %v6834_v44 = vrot.slane %v6813_v47, 4  ;;  %v6846_v58 = vrot.slane %v6825_v62, 4  ;;  %v6833_v12 = vsel %vm1345_vm2, %v6832_v36, %v6813_v47  ;;  %v6845_v6 = vsel %vm1345_vm2, %v6844_v8, %v6825_v62 }
 0xaec   : > { %v6839_v21 = vperm.slane %v6833_v12, %v11875_v52  ;;  %v6851_v56 = vperm.slane %v6845_v6, %v11875_v52  ;;  %v8775_v12 = vrot.slane %v8770_v53, 4 }
 0xaed   : > { %v11101_v63 = vpop.trf.xlu0  ;;  %v6835_v33 = vsel %vm1345_vm2, %v6819_v61, %v6834_v44  ;;  %v6847_v5 = vsel %vm1345_vm2, %v6831_v20, %v6846_v58  ;;  %v8774_v20 = vperm.slane %v13044_v4, %v11875_v52  ;;  %v7290_v4 = vperm.slane %v7282_v9, %v11867_v38 }
 0xaee   : > { %v11105_v34 = vunpack.i.h.bf16 %v11101_v63  ;;  %v11102_v45 = vunpack.i.l.bf16 %v11101_v63  ;;  %v6856_v7 = vrot.slane %v6851_v56, 4  ;;  %v6858_v19 = vrot.slane %v6839_v21, 4 }
 0xaef   : > { %v6843_v27 = vperm.slane %v6835_v33, %v11875_v52  ;;  %v6855_v0 = vperm.slane %v6847_v5, %v11875_v52  ;;  %v7286_v44 = vperm.slane %v7280_v43, %v11867_v38  ;;  %v7327_v22 = vrot.slane %v7290_v4, 4 }
 0xaf0   : > { %v8733_v29 = vrot.slane %v11105_v34, 4  ;;  %v8728_v50 = vsel %vm1345_vm2, %v8727_v59, %v11102_v45  ;;  %v6857_v51 = vsel %vm1345_vm2, %v6856_v7, %v6839_v21  ;;  %v6859_v35 = vsel %vm1345_vm2, %v6851_v56, %v6858_v19 }
 0xaf1   : > { %v8732_v32 = vperm.slane %v8728_v50, %v11867_v38  ;;  %v6860_v54 = vrot.slane %v6855_v0, 4  ;;  %6882 = vmatpush.msrb.mxu2 %v6857_v51  ;;  %v6862_v10 = vrot.slane %v6843_v27, 4  ;;  %v7318_v33 = vsel %vm1345_vm2, %v7286_v44, %v7317_v39 }
 0xaf2   : > { %v8734_v41 = vsel %vm1345_vm2, %v8733_v29, %v11119_v18  ;;  %v8779_v18 = vrot.slane %v8774_v20, 4  ;;  %v7330_v19 = vsel %vm1345_vm2, %v7290_v4, %v7329_v25  ;;  %v7315_v29 = vrot.slane %v7286_v44, 4  ;;  %v13156_v44 = vld [vmem:[%s11727_s11] sm:$0xff] }
 0xaf3   : > { %v8738_v46 = vperm.slane %v8734_v41, %v11867_v38  ;;  %v8753_v61 = vrot.slane %v8732_v32, 4  ;;  %6905 = vmatpush.msra.mxu2 %v6859_v35  ;;  %v6861_v11 = vsel %vm1345_vm2, %v6860_v54, %v6843_v27  ;;  %v6863_v14 = vsel %vm1345_vm2, %v6855_v0, %v6862_v10 }
 0xaf4   : > { %6928 = vmatpush.msra.mxu3 %v6861_v11  ;;  %6951 = vmatpush.msrb.mxu0 %v6863_v14  ;;  %v7326_v0 = vperm.slane %v7318_v33, %v11875_v52  ;;  %v7328_v50 = vsel %vm1345_vm2, %v7327_v22, %v13053_v26  ;;  %v7338_v25 = vperm.slane %v7330_v19, %v11875_v52  ;;  %v8946_v33 = vpop.trf.xlu1 }
 0xaf5   : > { %v8751_v8 = vrot.slane %v8738_v46, 4  ;;  %v7187_v36 = vpop.trf.xlu0  ;;  %v8754_v47 = vsel %vm1345_vm2, %v8738_v46, %v8753_v61  ;;  %v7316_v26 = vsel %vm1345_vm2, %v7315_v29, %v13058_v42 }
 0xaf6   : > { %v7304_v62 = vsel %vm1345_vm2, %v7303_v1, %v7187_v36  ;;  %v7305_v57 = vrot.slane %v7187_v36, 4  ;;  %v8762_v59 = vperm.slane %v8754_v47, %v11875_v52  ;;  %v7377_v11 = vrot.slane %v7338_v25, 4  ;;  %v5597_v47 = vpop.f32.mrf.mxu3 }
 0xaf7   : > { %v7310_v24 = vperm.slane %v7304_v62, %v11867_v38  ;;  %v8752_v58 = vsel %vm1345_vm2, %v8751_v8, %v8732_v32  ;;  %v7369_v1 = vrot.slane %v7326_v0, 4  ;;  %v5598_v62 = vadd.f32 %v5597_v47, %v5570_v31  ;;  %v9138_v31 = vpop.trf.xlu2 }
 0xaf8   : > { %v7306_v6 = vsel %vm1345_vm2, %v13049_v23, %v7305_v57  ;;  %v13107_v21 = vsel %vm1345_vm2, %v8779_v18, %v8762_v59  ;;  %v8758_v56 = vperm.slane %v8752_v58, %v11875_v52  ;;  %v8781_v15 = vrot.slane %v8762_v59, 4  ;;  %v11204_v57 = vld [vmem:[#allocation12 + $0x8] sm:$0xff]  ;;  %v5687_v58 = vpop.f32.mrf.mxu0 }
 0xaf9   : > { %v7314_v28 = vperm.slane %v7306_v6, %v11867_v38  ;;  %v7342_v63 = vsel %vm1345_vm2, %v7310_v24, %v7341_v60  ;;  %v7339_v41 = vrot.slane %v7310_v24, 4  ;;  %v13151_v59 = vadd.f32 %v11204_v57, %v5598_v62 }
 0xafa   : > { %v7350_v5 = vperm.slane %v7342_v63, %v11875_v52  ;;  %v8777_v34 = vrot.slane %v8758_v56, 4  ;;  %v13115_v45 = vsel %vm1345_vm2, %v8775_v12, %v8758_v56  ;;  %v13118_v23 = vsel %vm1345_vm2, %v8774_v20, %v8781_v15 }
 0xafb   : > { %v7351_v7 = vrot.slane %v7314_v28, 4  ;;  %v7354_v27 = vsel %vm1345_vm2, %v7314_v28, %v7353_v2  ;;  %v7334_v20 = vperm.slane %v7328_v50, %v11875_v52  ;;  %v7340_v61 = vsel %vm1345_vm2, %v7339_v41, %v13070_v40 }
 0xafc   : > { %v7367_v49 = vrot.slane %v7350_v5, 4  ;;  %v7362_v39 = vperm.slane %v7354_v27, %v11875_v52  ;;  %v13130_v51 = vsel %vm1345_vm2, %v8770_v53, %v8777_v34  ;;  %v7322_v53 = vperm.slane %v7316_v26, %v11875_v52 }
 0xafd   : > { %v7352_v32 = vsel %vm1345_vm2, %v7351_v7, %v7302_v48  ;;  %v7346_v43 = vperm.slane %v7340_v61, %v11875_v52  ;;  %v7370_v14 = vsel %vm1345_vm2, %v7350_v5, %v7369_v1  ;;  %v7373_v8 = vrot.slane %v7334_v20, 4  ;;  %v9010_v15 = vpop.trf.xlu0 }
 0xafe   : > { %v7368_v35 = vsel %vm1345_vm2, %v7367_v49, %v7326_v0  ;;  %v7375_v54 = vrot.slane %v7362_v39, 4  ;;  %v7358_v9 = vperm.slane %v7352_v32, %v11875_v52  ;;  %v7378_v60 = vsel %vm1345_vm2, %v7362_v39, %v7377_v11 }
 0xaff   : > { %7443 = vxpose.xlu2.b32.start.end [1/1] (short) (narrow) %v7368_v35, 8  ;;  %v7365_v2 = vrot.slane %v7322_v53, 4  ;;  %v7363_v4 = vrot.slane %v7346_v43, 4  ;;  %v5605_v18 = vsel %vm1294_vm1, %v13151_v59, 0.0  ;;  %v5663_v24 = vperm.slane %v13156_v44, 1  ;;  %v9074_v56 = vpop.trf.xlu2 }
 0xb00   : > { %v7376_v10 = vsel %vm1345_vm2, %v7375_v54, %v7338_v25  ;;  %v7371_v46 = vrot.slane %v7358_v9, 4  ;;  %v7374_v36 = vsel %vm1345_vm2, %v7358_v9, %v7373_v8  ;;  %v9210_v6 = vrot.slane %v9138_v31, 4 }
 0xb01   : > { %7571 = vxpose.xlu1.b32.start.end [1/1] (short) (narrow) %v7376_v10, 8  ;;  %v7366_v42 = vsel %vm1345_vm2, %v7346_v43, %v7365_v2  ;;  %v7364_v40 = vsel %vm1345_vm2, %v7363_v4, %v7322_v53  ;;  %v13161_v12 = vadd.f32 %v5687_v58, %v5663_v24  ;;  %v9212_v28 = vrot.slane %v9074_v56, 4 }
 0xb02   : > { %v7372_v48 = vsel %vm1345_vm2, %v7371_v46, %v7334_v20  ;;  %v13168_v22 = vsel %vm1345_vm2, %v9210_v6, %v9074_v56  ;;  %v9186_v63 = vrot.slane %v9010_v15, 4  ;;  %v9188_v5 = vrot.slane %v8946_v33, 4 }
 0xb03   : > { %7507 = vxpose.xlu0.b32.start.end [1/1] (short) (narrow) %v7372_v48, 8  ;;  %v13171_v34 = vsel %vm1345_vm2, %v9138_v31, %v9212_v28  ;;  %v6124_v39 = vrot.slane %v13029_v55, 4 }
 0xb04   : > { %v13174_v7 = vsel %vm1345_vm2, %v9186_v63, %v8946_v33  ;;  %v13177_v19 = vsel %vm1345_vm2, %v9010_v15, %v9188_v5 }
 0xb05   : > { %v13183_v49 = vpop.trf.xlu0  ;;  %v6125_v50 = vsel %vm1345_vm2, 0.0, %v6124_v39 }
 0xb07   : > { %7603 = vxpose.xlu2.b32.start.end [1/1] (short) (narrow) %v7378_v60, 8  ;;  %v13181_v27 = vpop.trf.xlu2 }
 0xb09   : > { %7475 = vxpose.xlu1.b32.start.end [1/1] (short) (narrow) %v7370_v14, 8 }
 0xb0b   : > { %7411 = vxpose.xlu0.b32.start.end [1/1] (short) (narrow) %v7366_v42, 8 }
 0xb0f   : > { %7379 = vxpose.xlu2.b32.start.end [1/1] (short) (narrow) %v7364_v40, 8 }
 0xb17   : > { %7539 = vxpose.xlu2.b32.start.end [1/1] (short) (narrow) %v7374_v36, 8 }
 0xb69   : > { %5606 = vadd.xlane.f32.xlu1 %v5605_v18 }
 0xb79   : > { %5695 = vrot.lane.b32.xlu0 %v13161_v12, %s11477_s5 }
 0xb81   : > { %5701 = vrot.lane.b32.xlu0 %v13161_v12, %s11475_s25 }
 0xb89   : > { %5707 = vrot.lane.b32.xlu0 %v13161_v12, %s11476_s13 }
 0xb98   : > { %v7459_v0 = vpop.trf.xlu2 }
 0xb99   : > { %v7635_v32 = vrot.slane %v7459_v0, 4 }
 0xba0   : > { %v7619_v29 = vpop.trf.xlu2 }
 0xba1   : > { %v7653_v26 = vrot.slane %v7619_v29, 4 }
 0xba3   : > { %9026 = vxpose.xlu1.b32.start.end [1/1] (short) (narrow) %v6125_v50, 8 }
 0xba5   : > { %v7587_v35 = vpop.trf.xlu1 }
 0xba6   : > { %v7647_v25 = vrot.slane %v7587_v35, 4 }
 0xba7   : > { %v7523_v54 = vpop.trf.xlu0 }
 0xba8   : > { %v7648_v9 = vsel %vm1345_vm2, %v7647_v25, %v7523_v54  ;;  %v7395_v41 = vpop.trf.xlu2  ;;  %v5715_v54 = vrot.slane %v13161_v12, 4 }
 0xba9   : > { %v7636_v10 = vsel %vm1345_vm2, %v7635_v32, %v7395_v41  ;;  %v7652_v46 = vperm.slane %v7648_v9, %v11867_v38 }
 0xbaa   : > { %v7640_v20 = vperm.slane %v7636_v10, %v11867_v38 }
 0xbab   : > { %v7673_v53 = vrot.slane %v7652_v46, 4 }
 0xbac   : > { %v7661_v61 = vrot.slane %v7640_v20, 4 }
 0xbad   : > { %v7491_v48 = vpop.trf.xlu1 }
 0xbae   : > { %v7641_v55 = vrot.slane %v7491_v48, 4 }
 0xbaf   : > { %v7427_v11 = vpop.trf.xlu0 }
 0xbb0   : > { %v7642_v60 = vsel %vm1345_vm2, %v7641_v55, %v7427_v11  ;;  %v7555_v1 = vpop.trf.xlu2 }
 0xbb1   : > { %v7646_v43 = vperm.slane %v7642_v60, %v11867_v38  ;;  %v7654_v14 = vsel %vm1345_vm2, %v7653_v26, %v7555_v1 }
 0xbb2   : > { %v7658_v2 = vperm.slane %v7654_v14, %v11867_v38 }
 0xbb3   : > { %v7659_v42 = vrot.slane %v7646_v43, 4  ;;  %v7662_v4 = vsel %vm1345_vm2, %v7646_v43, %v7661_v61 }
 0xbb4   : > { %v7671_v40 = vrot.slane %v7658_v2, 4  ;;  %v7674_v8 = vsel %vm1345_vm2, %v7658_v2, %v7673_v53  ;;  %v7670_v57 = vperm.slane %v7662_v4, %v11875_v52 }
 0xbb5   : > { %v7660_v36 = vsel %vm1345_vm2, %v7659_v42, %v7640_v20  ;;  %v7682_v18 = vperm.slane %v7674_v8, %v11875_v52 }
 0xbb6   : > { %v7672_v47 = vsel %vm1345_vm2, %v7671_v40, %v7652_v46  ;;  %v7666_v62 = vperm.slane %v7660_v36, %v11875_v52  ;;  %v7689_v15 = vrot.slane %v7670_v57, 4 }
 0xbb7   : > { %v7678_v58 = vperm.slane %v7672_v47, %v11875_v52  ;;  %v7687_v28 = vrot.slane %v7682_v18, 4 }
 0xbb8   : > { %v7685_v31 = vrot.slane %v7666_v62, 4  ;;  %v13210_v33 = vsel %vm1345_vm2, %v7682_v18, %v7689_v15 }
 0xbb9   : > { %v7683_v56 = vrot.slane %v7678_v58, 4  ;;  %v13213_v5 = vsel %vm1345_vm2, %v7687_v28, %v7670_v57 }
 0xbba   : > { %v13204_v6 = vsel %vm1345_vm2, %v7678_v58, %v7685_v31  ;;  %v6128_v31 = vrot.slane %v13010_v16, 4 }
 0xbbb   : > { %v13207_v63 = vsel %vm1345_vm2, %v7683_v56, %v7666_v62 }
 0xbdc   : > { %v5607_v0 = vpop.xlane.xlu1 %5606 }
 0xbdd   : > { %v5616_v39 = vmul.f32 %v12678_v37, %v5607_v0 }
 0xbdf   : > { %v13217_v29 = vsub.f32 %v13151_v59, %v5616_v39 }
 0xbe1   : > { %v5620_v50 = vmul.f32 %v13217_v29, %v13217_v29 }
 0xbe3   : > { %v5624_v32 = vsel %vm1294_vm1, %v5620_v50, 0.0 }
 0xbe4   : > { %5625 = vadd.xlane.f32.xlu2 %v5624_v32 }
 0xbeb   : > { %v5696_v35 = vpop.permute.xlu0 %5695 }
 0xbec   : > { %v5727_v59 = vrot.slane %v5696_v35, 4 }
 0xbf3   : > { %v5702_v25 = vpop.permute.xlu0 %5701 }
 0xbf4   : > { %v5713_v9 = vrot.slane %v5702_v25, 4  ;;  %v5716_v41 = vsel %vm1345_vm2, %v5702_v25, %v5715_v54 }
 0xbf5   : > { %v5724_v20 = vperm.slane %v5716_v41, %v11867_v38 }
 0xbf6   : > { %v5714_v10 = vsel %vm1345_vm2, %v5713_v9, %v13161_v12 }
 0xbf7   : > { %v5720_v46 = vperm.slane %v5714_v10, %v11867_v38  ;;  %v5751_v61 = vrot.slane %v5724_v20, 4 }
 0xbf9   : > { %v5739_v60 = vrot.slane %v5720_v46, 4 }
 0xbfb   : > { %v5708_v26 = vpop.permute.xlu0 %5707 }
 0xbfc   : > { %v5725_v48 = vrot.slane %v5708_v26, 4  ;;  %v5728_v55 = vsel %vm1345_vm2, %v5708_v26, %v5727_v59  ;;  %v6129_v26 = vsel %vm1345_vm2, 0.0, %v6128_v31 }
 0xbfd   : > { %v5736_v11 = vperm.slane %v5728_v55, %v11867_v38 }
 0xbfe   : > { %v5726_v53 = vsel %vm1345_vm2, %v5725_v48, %v5696_v35 }
 0xbff   : > { %v5732_v1 = vperm.slane %v5726_v53, %v11867_v38  ;;  %v5749_v43 = vrot.slane %v5736_v11, 4  ;;  %v5752_v12 = vsel %vm1345_vm2, %v5736_v11, %v5751_v61 }
 0xc00   : > { %v5760_v14 = vperm.slane %v5752_v12, %v11875_v52 }
 0xc01   : > { %v5737_v2 = vrot.slane %v5732_v1, 4  ;;  %v5740_v42 = vsel %vm1345_vm2, %v5732_v1, %v5739_v60  ;;  %v5750_v4 = vsel %vm1345_vm2, %v5749_v43, %v5724_v20 }
 0xc02   : > { %v5748_v40 = vperm.slane %v5740_v42, %v11875_v52  ;;  %v5756_v8 = vperm.slane %v5750_v4, %v11875_v52  ;;  %v5767_v36 = vrot.slane %v5760_v14, 4 }
 0xc03   : > { %v5738_v47 = vsel %vm1345_vm2, %v5737_v2, %v5720_v46 }
 0xc04   : > { %v5744_v62 = vperm.slane %v5738_v47, %v11875_v52  ;;  %v5763_v57 = vrot.slane %v5748_v40, 4  ;;  %v5765_v18 = vrot.slane %v5756_v8, 4  ;;  %v5768_v58 = vsel %vm1345_vm2, 0.0, %v5767_v36 }
 0xc05   : > { %v6141_v56 = vsel %vm1345_vm2, %v5767_v36, %v5756_v8  ;;  %v6146_v15 = vrot.slane %v5768_v58, 4 }
 0xc06   : > { %v5761_v28 = vrot.slane %v5744_v62, 4  ;;  %v5764_v0 = vsel %vm1345_vm2, 0.0, %v5763_v57  ;;  %v5766_v39 = vsel %vm1345_vm2, 0.0, %v5765_v18  ;;  %v6130_v50 = vsel %vm1345_vm2, %v5763_v57, %v5744_v62 }
 0xc07   : > { %v6135_v32 = vrot.slane %v5764_v0, 4  ;;  %v6145_v35 = vperm.slane %v6141_v56, %v11867_v38  ;;  %v6147_v25 = vsel %vm1345_vm2, %v6146_v15, %v5766_v39  ;;  %v6134_v54 = vperm.slane %v6130_v50, %v11867_v38 }
 0xc08   : > { %v5762_v9 = vsel %vm1345_vm2, 0.0, %v5761_v28  ;;  %v6151_v16 = vperm.slane %v6147_v25, %v11867_v38  ;;  %v13283_v25 = vld [vmem:[%s13807_s2] ss:$0 sm:$0xff] }
 0xc09   : > { %v6166_v41 = vrot.slane %v6145_v35, 4  ;;  %v6136_v10 = vsel %vm1345_vm2, %v6135_v32, %v5762_v9  ;;  %v6154_v20 = vrot.slane %v6134_v54, 4 }
 0xc0a   : > { %v6140_v59 = vperm.slane %v6136_v10, %v11867_v38  ;;  %v6164_v46 = vrot.slane %v6151_v16, 4 }
 0xc0b   : > { %v6167_v48 = vsel %vm1345_vm2, %v6151_v16, %v6166_v41  ;;  %v9200_v41 = vrot.slane %v13181_v27, 4 }
 0xc0c   : > { %v6155_v55 = vsel %vm1345_vm2, %v6140_v59, %v6154_v20  ;;  %v6175_v61 = vperm.slane %v6167_v48, %v11875_v52  ;;  %v6152_v11 = vrot.slane %v6140_v59, 4  ;;  %v6165_v53 = vsel %vm1345_vm2, %v6164_v46, %v6145_v35 }
 0xc0d   : > { %9154 = vxpose.xlu2.b32.start.end [1/1] (short) (narrow) %v6129_v26, 8  ;;  %v6163_v60 = vperm.slane %v6155_v55, %v11875_v52  ;;  %v6171_v1 = vperm.slane %v6165_v53, %v11875_v52  ;;  %v9221_v26 = vperm.slane %v13171_v34, %v11867_v38  ;;  %v9197_v48 = vperm.slane %v13177_v19, %v11867_v38 }
 0xc0e   : > { %v6180_v43 = vrot.slane %v6175_v61, 4  ;;  %v6153_v12 = vsel %vm1345_vm2, %v6152_v11, %v6134_v54  ;;  %v9224_v55 = vrot.slane %v13183_v49, 4 }
 0xc0f   : > { %v6159_v14 = vperm.slane %v6153_v12, %v11875_v52  ;;  %v6176_v2 = vrot.slane %v6171_v1, 4  ;;  %v6182_v42 = vrot.slane %v6163_v60, 4 }
 0xc10   : > { %v6181_v4 = vsel %vm1345_vm2, %v6180_v43, %v6163_v60  ;;  %v9272_v60 = vrot.slane %v9221_v26, 4 }
 0xc11   : > { %10698 = vmatmul.msk.f32.vlgmr.msra.gmra.mxu3 %vm2463_vm3, %v6181_v4  ;;  %v6177_v40 = vsel %vm1345_vm2, %v6176_v2, %v6159_v14  ;;  %v6183_v8 = vsel %vm1345_vm2, %v6175_v61, %v6182_v42  ;;  %v6178_v36 = vrot.slane %v6159_v14, 4 }
 0xc12   : > { %10696 = vmatmul.msk.f32.vlgmr.msrb.gmra.mxu2 %vm2463_vm3, %v6177_v40 }
 0xc13   : > { %v6179_v47 = vsel %vm1345_vm2, %v6171_v1, %v6178_v36  ;;  %v9248_v1 = vrot.slane %v9197_v48, 4 }
 0xc1a   : > { %10697 = vmatmul.msk.f32.vlgmr.msra.gmra.mxu2 %vm2463_vm3, %v6179_v47 }
 0xc47   : > { %v13288_v10 = vpop.trf.xlu1 }
 0xc48   : > { %v9201_v46 = vsel %vm1345_vm2, %v13288_v10, %v9200_v41 }
 0xc49   : > { %v9209_v61 = vperm.slane %v9201_v46, %v11867_v38 }
 0xc4b   : > { %v9249_v12 = vsel %vm1345_vm2, %v9209_v61, %v9248_v1 }
 0xc4c   : > { %v9257_v19 = vperm.slane %v9249_v12, %v11875_v52 }
 0xc57   : > { %v5626_v62 = vpop.xlane.xlu2 %5625 }
 0xc58   : > { %v5628_v57 = vmul.f32 %v5626_v62, %v12678_v37 }
 0xc5a   : > { %v5630_v18 = vadd.f32 1e-05, %v5628_v57 }
 0xc5c   : > { %11161 = vrsqrt.f32 %v5630_v18  ;;  %vm5647_vm11 = vweird.f32 %v5630_v18 }
 0xc62   : > { %v11162_v58 = vpop.eup %11161 }
 0xc63   : > { %v5642_v31 = vmul.f32 %v11162_v58, %v5630_v18  ;;  %vm5648_vm10 = vweird.f32 %v11162_v58 }
 0xc64   : > { %vm5649_vm12 = vmor %vm5647_vm11, %vm5648_vm10 }
 0xc65   : > { %v5643_v56 = vmul.f32 %v11162_v58, %v5642_v31 }
 0xc67   : > { %v5644_v15 = vmul.f32 0.5, %v5643_v56 }
 0xc69   : > { %v5645_v28 = vsub.f32 1.5, %v5644_v15 }
 0xc6b   : > { %v5646_v0 = vmul.f32 %v11162_v58, %v5645_v28 }
 0xc6d   : > { %v5650_v39 = vsel %vm5649_vm12, %v11162_v58, %v5646_v0 }
 0xc6e   : > { %v5652_v50 = vmul.f32 %v5650_v39, %v13217_v29 }
 0xc70   : > { %v5655_v32 = vmul.f32 %v5653_v13, %v5652_v50  ;;  %v9246_v50 = vrot.slane %v9209_v61, 4 }
 0xc72   : > { %v13275_v35 = vadd.f32 %v5656_v17, %v5655_v32 }
 0xc74   : > { %10693 = vmatmul.msk.f32.gmra.mxu0 %vm1294_vm1, %v13275_v35 }
 0xc7c   : > { %10699 = vmatmul.msk.f32.vlgmr.msrb.gmra.mxu0 %vm2463_vm3, %v6183_v8 }
 0xc94   : > { %v6930_v54 = vpop.f32.mrf.mxu3 }
 0xc95   : > { %v6958_v9 = vmul.f32 0.35355338, %v6930_v54  ;;  %v6884_v29 = vpop.f32.mrf.mxu2  ;;  %v9247_v54 = vsel %vm1345_vm2, %v9246_v50, %v9197_v48 }
 0xc96   : > { %v6956_v58 = vmul.f32 0.35355338, %v6884_v29  ;;  %v13331_v29 = vperm.slane %v9247_v54, %v11875_v52 }
 0xc97   : > { %v6965_v16 = vadd.f32 %v13283_v25, %v6958_v9 }
 0xc98   : > { %v6963_v44 = vadd.f32 %v13283_v25, %v6956_v58 }
 0xc99   : > { %v6973_v13 = vsel %vm2463_vm3, %v6965_v16, -inf }
 0xc9a   : > { %6974 = vmax.xlane.f32.xlu1 %v6973_v13  ;;  %v9296_v13 = vrot.slane %v9257_v19, 4 }
 0xc9d   : > { %v6907_v3 = vpop.f32.mrf.mxu2 }
 0xc9e   : > { %v6957_v17 = vmul.f32 0.35355338, %v6907_v3 }
 0xca0   : > { %v6964_v20 = vadd.f32 %v13283_v25, %v6957_v17 }
 0xca2   : > { %v6970_v59 = vsel %vm2463_vm3, %v6964_v20, -inf }
 0xca3   : > { %6971 = vmax.xlane.f32.xlu2 %v6970_v59 }
 0xca6   : > { %v13300_v11 = vpop.trf.xlu2 }
 0xca7   : > { %v9225_v53 = vsel %vm1345_vm2, %v13300_v11, %v9224_v55 }
 0xca8   : > { %v9233_v43 = vperm.slane %v9225_v53, %v11867_v38 }
 0xcaa   : > { %v9273_v34 = vsel %vm1345_vm2, %v9233_v43, %v9272_v60  ;;  %v9270_v0 = vrot.slane %v9233_v43, 4 }
 0xcab   : > { %v9281_v14 = vperm.slane %v9273_v34, %v11875_v52 }
 0xcac   : > { %v9271_v39 = vsel %vm1345_vm2, %v9270_v0, %v9221_v26 }
 0xcad   : > { %v9294_v2 = vrot.slane %v9281_v14, 4  ;;  %v13326_v32 = vperm.slane %v9271_v39, %v11875_v52  ;;  %v9297_v3 = vsel %vm1345_vm2, %v9281_v14, %v9296_v13 }
 0xcaf   : > { %v9295_v42 = vsel %vm1345_vm2, %v9294_v2, %v9257_v19  ;;  %v9290_v9 = vrot.slane %v13326_v32, 4 }
 0xcb0   : > { %9490 = vxpose.xlu0.b32.start.end [1/1] (short) (narrow) %v9295_v42, 8 }
 0xcf1   : > { %v5690_v4 = vpop.f32.mrf.mxu0 }
 0xcf2   : > { %v13312_v40 = vadd.f32 %v5690_v4, %v5663_v24  ;;  %v6967_v24 = vsel %vm2463_vm3, %v6963_v44, -inf }
 0xcf4   : > { %5703 = vrot.lane.b32.xlu2 %v13312_v40, %s11475_s25  ;;  %v5771_v14 = vrot.slane %v13312_v40, 4 }
 0xcf9   : > { %v6953_v60 = vpop.f32.mrf.mxu0 }
 0xcfa   : > { %v6959_v12 = vmul.f32 0.35355338, %v6953_v60 }
 0xd0d   : > { %v6975_v8 = vpop.xlane.xlu1 %6974 }
 0xd0e   : > { %v6981_v36 = vsub.f32 %v6965_v16, %v6975_v8  ;;  %v9291_v16 = vsel %vm1345_vm2, %v9290_v9, %v13331_v29 }
 0xd10   : > { %v6987_v47 = vmul.f32 1.442695, %v6981_v36 }
 0xd12   : > { %11163 = vpow2.f32 %v6987_v47 }
 0xd16   : > { %v6972_v62 = vpop.xlane.xlu2 %6971 }
 0xd17   : > { %v6980_v57 = vsub.f32 %v6964_v20, %v6972_v62 }
 0xd18   : > { %v11164_v18 = vpop.eup %11163 }
 0xd19   : > { %v6985_v31 = vmul.f32 1.442695, %v6980_v57  ;;  %v6997_v56 = vsel %vm2463_vm3, %v11164_v18, 0.0 }
 0xd1a   : > { %6998 = vadd.xlane.f32.xlu1 %v6997_v56 }
 0xd1b   : > { %11165 = vpow2.f32 %v6985_v31 }
 0xd21   : > { %v11166_v15 = vpop.eup %11165  ;;  %6968 = vmax.xlane.f32.xlu0 %v6967_v24 }
 0xd22   : > { %v6994_v28 = vsel %vm2463_vm3, %v11166_v15, 0.0 }
 0xd23   : > { %6995 = vadd.xlane.f32.xlu2 %v6994_v28 }
 0xd35   : > { %5697 = vrot.lane.b32.xlu0 %v13312_v40, %s11477_s5  ;;  %s13808_s5 = sld [smem:[#allocation56_spill]] }
 0xd3b   : > { %s13809_s16 = scalar_lea.vmem %s13808_s5, %s11687_s4 }
 0xd3d   : > { %5709 = vrot.lane.b32.xlu0 %v13312_v40, %s11476_s13 }
 0xd4c   : > { %9426 = vxpose.xlu2.b32.start.end [1/1] (short) (narrow) %v9291_v16, 8 }
 0xd4e   : > { %v5704_v20 = vpop.permute.xlu2 %5703 }
 0xd4f   : > { %v5769_v19 = vrot.slane %v5704_v20, 4  ;;  %v5772_v42 = vsel %vm1345_vm2, %v5704_v20, %v5771_v14 }
 0xd51   : > { %v5770_v4 = vsel %vm1345_vm2, %v5769_v19, %v13312_v40 }
 0xd54   : > { %v13336_v17 = vpop.trf.xlu0 }
 0xd5f   : > { %9522 = vxpose.xlu0.b32.start.end [1/1] (short) (narrow) %v9297_v3, 8 }
 0xd8d   : > { %v6999_v41 = vpop.xlane.xlu1 %6998 }
 0xd8e   : > { %11167 = vrcp.f32 %v6999_v41 }
 0xd94   : > { %v11168_v59 = vpop.eup %11167  ;;  %v6969_v46 = vpop.xlane.xlu0 %6968 }
 0xd95   : > { %v13338_v26 = vmul.f32 %v11168_v59, %v11164_v18  ;;  %v6979_v48 = vsub.f32 %v6963_v44, %v6969_v46 }
 0xd96   : > { %v6996_v55 = vpop.xlane.xlu2 %6995 }
 0xd97   : > { %v6983_v61 = vmul.f32 1.442695, %v6979_v48  ;;  %10704 = vmatpush.xpose.msk.msrb.mxu3 %vm2463_vm3, %v13338_v26  ;;  %11169 = vrcp.f32 %v6996_v55 }
 0xd99   : > { %11171 = vpow2.f32 %v6983_v61 }
 0xd9a   : > { %10705 = vmatmul.msk.f32.vlgmr.msrb.gmra.mxu3 %vm2463_vm3, %v13213_v5 }
 0xd9b   : > { %8847 = vmatpush.msra.mxu3 %v13107_v21  ;;  %v13357_v21 = vadd.f32 %v13283_v25, %v6959_v12 }
 0xd9d   : > { %v11170_v53 = vpop.eup %11169  ;;  %v6976_v2 = vsel %vm2463_vm3, %v13357_v21, -inf }
 0xd9e   : > { %v13345_v1 = vmul.f32 %v11170_v53, %v11166_v15 }
 0xd9f   : > { %v13347_v43 = vpop.eup %11171 }
 0xda0   : > { %10702 = vmatpush.xpose.msk.msrb.mxu2 %vm2463_vm3, %v13345_v1  ;;  %v6991_v34 = vsel %vm2463_vm3, %v13347_v43, 0.0 }
 0xda1   : > { %6992 = vadd.xlane.f32.xlu1 %v6991_v34 }
 0xda3   : > { %10703 = vmatmul.msk.f32.vlgmr.msrb.gmra.mxu2 %vm2463_vm3, %v13204_v6  ;;  %v5776_v6 = vperm.slane %v5770_v4, %v11867_v38 }
 0xda4   : > { %8824 = vmatpush.msra.mxu2 %v13130_v51  ;;  %v5780_v51 = vperm.slane %v5772_v42, %v11867_v38 }
 0xda5   : > { %v5795_v58 = vrot.slane %v5776_v6, 4 }
 0xda6   : > { %v5807_v62 = vrot.slane %v5780_v51, 4 }
 0xda7   : > { %v5698_v5 = vpop.permute.xlu0 %5697 }
 0xda8   : > { %v5783_v8 = vrot.slane %v5698_v5, 4 }
 0xda9   : > { %6977 = vmax.xlane.f32.xlu1 %v6976_v2 }
 0xdaf   : > { %v5710_v25 = vpop.permute.xlu0 %5709 }
 0xdb0   : > { %v5781_v36 = vrot.slane %v5710_v25, 4  ;;  %v5784_v47 = vsel %vm1345_vm2, %v5710_v25, %v5783_v8 }
 0xdb1   : > { %v5792_v57 = vperm.slane %v5784_v47, %v11867_v38 }
 0xdb2   : > { %v5782_v18 = vsel %vm1345_vm2, %v5781_v36, %v5698_v5 }
 0xdb3   : > { %v5788_v31 = vperm.slane %v5782_v18, %v11867_v38  ;;  %v5805_v56 = vrot.slane %v5792_v57, 4  ;;  %v5808_v40 = vsel %vm1345_vm2, %v5792_v57, %v5807_v62 }
 0xdb4   : > { %v5816_v44 = vperm.slane %v5808_v40, %v11875_v52 }
 0xdb5   : > { %v5793_v24 = vrot.slane %v5788_v31, 4  ;;  %v5796_v15 = vsel %vm1345_vm2, %v5788_v31, %v5795_v58  ;;  %v5806_v28 = vsel %vm1345_vm2, %v5805_v56, %v5780_v51 }
 0xdb6   : > { %v5804_v0 = vperm.slane %v5796_v15, %v11875_v52  ;;  %v5812_v39 = vperm.slane %v5806_v28, %v11875_v52  ;;  %v5823_v50 = vrot.slane %v5816_v44, 4 }
 0xdb7   : > { %v5794_v54 = vsel %vm1345_vm2, %v5793_v24, %v5776_v6 }
 0xdb8   : > { %v5800_v9 = vperm.slane %v5794_v54, %v11875_v52  ;;  %v5819_v16 = vrot.slane %v5804_v0, 4  ;;  %v5821_v13 = vrot.slane %v5812_v39, 4  ;;  %v5824_v3 = vsel %vm1345_vm2, 0.0, %v5823_v50 }
 0xdb9   : > { %v8060_v41 = vsel %vm1345_vm2, %v5823_v50, %v5812_v39  ;;  %v8065_v20 = vrot.slane %v5824_v3, 4  ;;  %v9222_v0 = vrot.slane %v13300_v11, 4  ;;  %v9217_v50 = vperm.slane %v13168_v22, %v11867_v38 }
 0xdba   : > { %v5817_v59 = vrot.slane %v5800_v9, 4  ;;  %v5820_v46 = vsel %vm1345_vm2, 0.0, %v5819_v16  ;;  %v5822_v48 = vsel %vm1345_vm2, 0.0, %v5821_v13  ;;  %v8049_v55 = vsel %vm1345_vm2, %v5819_v16, %v5800_v9 }
 0xdbb   : > { %v8054_v61 = vrot.slane %v5820_v46, 4  ;;  %v8064_v53 = vperm.slane %v8060_v41, %v11867_v38  ;;  %v8066_v60 = vsel %vm1345_vm2, %v8065_v20, %v5822_v48  ;;  %v8053_v12 = vperm.slane %v8049_v55, %v11867_v38 }
 0xdbc   : > { %v5818_v34 = vsel %vm1345_vm2, 0.0, %v5817_v59  ;;  %v8070_v5 = vperm.slane %v8066_v60, %v11867_v38  ;;  %v9223_v39 = vsel %vm1345_vm2, %v9222_v0, %v13183_v49  ;;  %v9198_v54 = vrot.slane %v13288_v10, 4 }
 0xdbd   : > { %v8085_v14 = vrot.slane %v8064_v53, 4  ;;  %v8055_v19 = vsel %vm1345_vm2, %v8054_v61, %v5818_v34  ;;  %v8073_v2 = vrot.slane %v8053_v12, 4  ;;  %v9229_v9 = vperm.slane %v9223_v39, %v11867_v38 }
 0xdbe   : > { %v8059_v42 = vperm.slane %v8055_v19, %v11867_v38  ;;  %v8083_v4 = vrot.slane %v8070_v5, 4  ;;  %v9260_v16 = vrot.slane %v9217_v50, 4  ;;  %v9199_v13 = vsel %vm1345_vm2, %v9198_v54, %v13181_v27 }
 0xdbf   : > { %v8086_v51 = vsel %vm1345_vm2, %v8070_v5, %v8085_v14  ;;  %v9193_v3 = vperm.slane %v13174_v7, %v11867_v38  ;;  %v9205_v11 = vperm.slane %v9199_v13, %v11867_v38 }
 0xdc0   : > { %v8074_v8 = vsel %vm1345_vm2, %v8059_v42, %v8073_v2  ;;  %v8094_v6 = vperm.slane %v8086_v51, %v11875_v52  ;;  %v8071_v25 = vrot.slane %v8059_v42, 4  ;;  %v8084_v36 = vsel %vm1345_vm2, %v8083_v4, %v8064_v53 }
 0xdc1   : > { %v8082_v47 = vperm.slane %v8074_v8, %v11875_v52  ;;  %v8090_v62 = vperm.slane %v8084_v36, %v11875_v52  ;;  %v9261_v41 = vsel %vm1345_vm2, %v9229_v9, %v9260_v16  ;;  %v9236_v20 = vrot.slane %v9193_v3, 4 }
 0xdc2   : > { %v8099_v57 = vrot.slane %v8094_v6, 4  ;;  %v8072_v18 = vsel %vm1345_vm2, %v8071_v25, %v8053_v12  ;;  %v9269_v49 = vperm.slane %v9261_v41, %v11875_v52  ;;  %v9234_v36 = vrot.slane %v9205_v11, 4 }
 0xdc3   : > { %v8078_v58 = vperm.slane %v8072_v18, %v11875_v52  ;;  %v8095_v31 = vrot.slane %v8090_v62, 4  ;;  %v8101_v56 = vrot.slane %v8082_v47, 4  ;;  %v9237_v22 = vsel %vm1345_vm2, %v9205_v11, %v9236_v20 }
 0xdc4   : > { %v8100_v40 = vsel %vm1345_vm2, %v8099_v57, %v8082_v47  ;;  %v9286_v59 = vrot.slane %v9269_v49, 4  ;;  %v9245_v10 = vperm.slane %v9237_v22, %v11875_v52 }
 0xdc5   : > { %10710 = vmatmul.msk.f32.vlgmr.msra.gmra.mxu3 %vm2463_vm3, %v8100_v40  ;;  %v8097_v44 = vrot.slane %v8078_v58, 4  ;;  %v8096_v24 = vsel %vm1345_vm2, %v8095_v31, %v8078_v58  ;;  %v13403_v15 = vsel %vm1345_vm2, %v8094_v6, %v8101_v56  ;;  %v9258_v6 = vrot.slane %v9229_v9, 4 }
 0xdc6   : > { %v9287_v46 = vsel %vm1345_vm2, %v9286_v59, %v9245_v10  ;;  %v9288_v4 = vrot.slane %v9245_v10, 4  ;;  %v9292_v10 = vrot.slane %v13331_v29, 4 }
 0xdc7   : > { %v8098_v28 = vsel %vm1345_vm2, %v8090_v62, %v8097_v44  ;;  %v9259_v25 = vsel %vm1345_vm2, %v9258_v6, %v9217_v50  ;;  %v9235_v62 = vsel %vm1345_vm2, %v9234_v36, %v9193_v3 }
 0xdc8   : > { %10709 = vmatmul.msk.f32.vlgmr.msra.gmra.mxu2 %vm2463_vm3, %v8098_v28  ;;  %v9289_v8 = vsel %vm1345_vm2, %v9269_v49, %v9288_v4  ;;  %v9265_v47 = vperm.slane %v9259_v25, %v11875_v52  ;;  %v9241_v18 = vperm.slane %v9235_v62, %v11875_v52 }
 0xdca   : > { %v9282_v57 = vrot.slane %v9265_v47, 4  ;;  %v9284_v22 = vrot.slane %v9241_v18, 4 }
 0xdcc   : > { %v9283_v58 = vsel %vm1345_vm2, %v9282_v57, %v9241_v18  ;;  %v9285_v59 = vsel %vm1345_vm2, %v9265_v47, %v9284_v22 }
 0xde3   : > { %9362 = vxpose.xlu1.b32.start.end [1/1] (short) (narrow) %v9287_v46, 8  ;;  %v9293_v46 = vsel %vm1345_vm2, %v13326_v32, %v9292_v10 }
 0xe03   : > { %v13452_v31 = vpop.trf.xlu0 }
 0xe14   : > { %v6993_v48 = vpop.xlane.xlu1 %6992 }
 0xe15   : > { %11173 = vrcp.f32 %v6993_v48 }
 0xe1b   : > { %v11174_v27 = vpop.eup %11173 }
 0xe1c   : > { %v13425_v7 = vmul.f32 %v11174_v27, %v13347_v43  ;;  %v6978_v55 = vpop.xlane.xlu1 %6977 }
 0xe1d   : > { %v6982_v61 = vsub.f32 %v13357_v21, %v6978_v55  ;;  %v7766_v43 = vpop.f32.mrf.mxu3  ;;  %v13440_v21 = vld [vmem:[%s13807_s2 + $0x1] ss:$0 sm:$0xff] }
 0xe1e   : > { %10700 = vmatpush.xpose.msk.msra.mxu1 %vm2463_vm3, %v13425_v7 }
 0xe1f   : > { %v6989_v53 = vmul.f32 1.442695, %v6982_v61 }
 0xe21   : > { %11175 = vpow2.f32 %v6989_v53  ;;  %10701 = vmatmul.msk.f32.vlgmr.msra.gmra.mxu1 %vm2463_vm3, %v13207_v63 }
 0xe22   : > { %8801 = vmatpush.msrb.mxu1 %v13115_v45 }
 0xe26   : > { %v13435_v34 = vpop.f32.mrf.mxu2 }
 0xe27   : > { %v11176_v60 = vpop.eup %11175 }
 0xe28   : > { %v7000_v12 = vsel %vm2463_vm3, %v11176_v60, 0.0 }
 0xe29   : > { %7001 = vadd.xlane.f32.xlu0 %v7000_v12  ;;  %10708 = vmatmul.msk.f32.vlgmr.msrb.gmra.mxu1 %vm2463_vm3, %v8096_v24 }
 0xe48   : > { %v8849_v5 = vpop.f32.mrf.mxu3 }
 0xe49   : > { %v8877_v45 = vmul.f32 0.35355338, %v8849_v5 }
 0xe4b   : > { %v8884_v14 = vadd.f32 %v13440_v21, %v8877_v45  ;;  %v8826_v19 = vpop.f32.mrf.mxu2 }
 0xe4c   : > { %v8876_v63 = vmul.f32 0.35355338, %v8826_v19 }
 0xe4d   : > { %v8892_v2 = vsel %vm2463_vm3, %v8884_v14, -inf }
 0xe4e   : > { %v8883_v42 = vadd.f32 %v13440_v21, %v8876_v63  ;;  %8893 = vmax.xlane.f32.xlu1 %v8892_v2 }
 0xe50   : > { %v8889_v51 = vsel %vm2463_vm3, %v8883_v42, -inf }
 0xe51   : > { %8890 = vmax.xlane.f32.xlu2 %v8889_v51 }
 0xe52   : > { %9394 = vxpose.xlu0.b32.start.end [1/1] (short) (narrow) %v9289_v8, 8 }
 0xe7a   : > { %9298 = vxpose.xlu2.b32.start.end [1/1] (short) (narrow) %v9283_v58, 8 }
 0xe87   : > { %v9378_v0 = vpop.trf.xlu1 }
 0xe88   : > { %7859 = vxpose.xlu1.b32.start.end [1/1] (short) (narrow) %v7766_v43, 8  ;;  %v9554_v27 = vrot.slane %v9378_v0, 4 }
 0xe9c   : > { %v7002_v56 = vpop.xlane.xlu0 %7001 }
 0xe9d   : > { %11177 = vrcp.f32 %v7002_v56 }
 0xe9e   : > { %v7714_v24 = vpop.f32.mrf.mxu1 }
 0xea3   : > { %v11178_v40 = vpop.eup %11177 }
 0xea4   : > { %v13454_v44 = vmul.f32 %v11178_v40, %v11176_v60  ;;  %v9566_v40 = vrot.slane %v13336_v17, 4 }
 0xea6   : > { %10706 = vmatpush.xpose.msk.msra.mxu0 %vm2463_vm3, %v13454_v44  ;;  %v8803_v28 = vpop.f32.mrf.mxu1 }
 0xea7   : > { %v8875_v39 = vmul.f32 0.35355338, %v8803_v28 }
 0xea9   : > { %10707 = vmatmul.msk.f32.vlgmr.msra.gmra.mxu0 %vm2463_vm3, %v13210_v33  ;;  %v8882_v50 = vadd.f32 %v13440_v21, %v8875_v39  ;;  %v9442_v33 = vpop.trf.xlu2 }
 0xeaa   : > { %8870 = vmatpush.msrb.mxu0 %v13118_v23  ;;  %v9567_v28 = vsel %vm1345_vm2, %v9566_v40, %v9442_v33 }
 0xeab   : > { %v8886_v16 = vsel %vm2463_vm3, %v8882_v50, -inf }
 0xeb1   : > { %10711 = vmatmul.msk.f32.vlgmr.msrb.gmra.mxu0 %vm2463_vm3, %v13403_v15 }
 0xec1   : > { %v8894_v54 = vpop.xlane.xlu1 %8893 }
 0xec2   : > { %v8900_v9 = vsub.f32 %v8884_v14, %v8894_v54  ;;  %v9572_v54 = vrot.slane %v13452_v31, 4 }
 0xec3   : > { %8887 = vmax.xlane.f32.xlu0 %v8886_v16 }
 0xec4   : > { %v8906_v13 = vmul.f32 1.442695, %v8900_v9  ;;  %v8891_v41 = vpop.xlane.xlu2 %8890 }
 0xec5   : > { %v8899_v11 = vsub.f32 %v8883_v42, %v8891_v41 }
 0xec6   : > { %11179 = vpow2.f32 %v8906_v13 }
 0xec7   : > { %v8904_v15 = vmul.f32 1.442695, %v8899_v11 }
 0xec9   : > { %11181 = vpow2.f32 %v8904_v15 }
 0xecc   : > { %v11180_v23 = vpop.eup %11179 }
 0xecd   : > { %v8916_v3 = vsel %vm2463_vm3, %v11180_v23, 0.0 }
 0xece   : > { %8917 = vadd.xlane.f32.xlu0 %v8916_v3 }
 0xecf   : > { %v11182_v49 = vpop.eup %11181 }
 0xed0   : > { %v8913_v20 = vsel %vm2463_vm3, %v11182_v49, 0.0 }
 0xeeb   : > { %8914 = vadd.xlane.f32.xlu2 %v8913_v20 }
 0xef6   : > { %v9410_v61 = vpop.trf.xlu0 }
 0xef7   : > { %9330 = vxpose.xlu0.b32.start.end [1/1] (short) (narrow) %v9285_v59, 8  ;;  %v9560_v8 = vrot.slane %v9410_v61, 4 }
 0xf13   : > { %v9314_v55 = vpop.trf.xlu2 }
 0xf14   : > { %9458 = vxpose.xlu2.b32.start.end [1/1] (short) (narrow) %v9293_v46, 8  ;;  %v9555_v53 = vsel %vm1345_vm2, %v9554_v27, %v9314_v55 }
 0xf15   : > { %v9559_v6 = vperm.slane %v9555_v53, %v11867_v38 }
 0xf17   : > { %v9580_v47 = vrot.slane %v9559_v6, 4 }
 0xf1c   : > { %7795 = vxpose.xlu2.b32.start.end [1/1] (short) (narrow) %v7714_v24, 8 }
 0xf26   : > { %v7792_v48 = vpop.f32.mrf.mxu0 }
 0xf27   : > { %7891 = vxpose.xlu0.b32.start.end [1/1] (short) (narrow) %v7792_v48, 8 }
 0xf2c   : > { %v7875_v57 = vpop.trf.xlu1 }
 0xf2e   : > { %v8872_v60 = vpop.f32.mrf.mxu0 }
 0xf2f   : > { %v8878_v12 = vmul.f32 0.35355338, %v8872_v60 }
 0xf31   : > { %v8885_v43 = vadd.f32 %v13440_v21, %v8878_v12 }
 0xf33   : > { %v8895_v5 = vsel %vm2463_vm3, %v8885_v43, -inf }
 0xf34   : > { %8896 = vmax.xlane.f32.xlu1 %v8895_v5 }
 0xf36   : > { %v8888_v29 = vpop.xlane.xlu0 %8887 }
 0xf37   : > { %v8898_v45 = vsub.f32 %v8882_v50, %v8888_v29  ;;  %v9571_v50 = vperm.slane %v9567_v28, %v11867_v38 }
 0xf39   : > { %v8902_v14 = vmul.f32 1.442695, %v8898_v45 }
 0xf3b   : > { %11183 = vpow2.f32 %v8902_v14 }
 0xf41   : > { %v11184_v32 = vpop.eup %11183  ;;  %v8918_v19 = vpop.xlane.xlu0 %8917 }
 0xf42   : > { %11185 = vrcp.f32 %v8918_v19  ;;  %v8910_v63 = vsel %vm2463_vm3, %v11184_v32, 0.0  ;;  %v7923_v19 = vrot.slane %v7875_v57, 4 }
 0xf43   : > { %8911 = vadd.xlane.f32.xlu1 %v8910_v63 }
 0xf48   : > { %v11186_v2 = vpop.eup %11185 }
 0xf49   : > { %v13475_v42 = vmul.f32 %v11186_v2, %v11180_v23  ;;  %v9592_v23 = vrot.slane %v9571_v50, 4 }
 0xf4b   : > { %10716 = vmatpush.xpose.msk.msrb.mxu3 %vm2463_vm3, %v13475_v42 }
 0xf5e   : > { %v8915_v21 = vpop.xlane.xlu2 %8914 }
 0xf5f   : > { %11187 = vrcp.f32 %v8915_v21 }
 0xf65   : > { %v11188_v4 = vpop.eup %11187 }
 0xf66   : > { %v13479_v51 = vmul.f32 %v11188_v4, %v11182_v49 }
 0xf68   : > { %10714 = vmatpush.xpose.msk.msrb.mxu2 %vm2463_vm3, %v13479_v51 }
 0xf9b   : > { %v9346_v25 = vpop.trf.xlu0 }
 0xf9c   : > { %v9561_v36 = vsel %vm1345_vm2, %v9560_v8, %v9346_v25 }
 0xf9d   : > { %v9565_v62 = vperm.slane %v9561_v36, %v11867_v38 }
 0xf9f   : > { %v9578_v18 = vrot.slane %v9565_v62, 4  ;;  %v9581_v58 = vsel %vm1345_vm2, %v9565_v62, %v9580_v47 }
 0xfa0   : > { %v9589_v16 = vperm.slane %v9581_v58, %v11875_v52 }
 0xfa1   : > { %v9579_v56 = vsel %vm1345_vm2, %v9578_v18, %v9559_v6 }
 0xfa2   : > { %v9585_v17 = vperm.slane %v9579_v56, %v11875_v52  ;;  %v9608_v49 = vrot.slane %v9589_v16, 4 }
 0xfa4   : > { %v9604_v59 = vrot.slane %v9585_v17, 4 }
 0xfa7   : > { %v8897_v24 = vpop.xlane.xlu1 %8896 }
 0xfa8   : > { %v8901_v0 = vsub.f32 %v8885_v43, %v8897_v24 }
 0xfaa   : > { %v8908_v39 = vmul.f32 1.442695, %v8901_v0 }
 0xfac   : > { %11189 = vpow2.f32 %v8908_v39 }
 0xfad   : > { %v9474_v9 = vpop.trf.xlu2 }
 0xfae   : > { %v9573_v13 = vsel %vm1345_vm2, %v9572_v54, %v9474_v9 }
 0xfaf   : > { %v9577_v3 = vperm.slane %v9573_v13, %v11867_v38 }
 0xfb1   : > { %v9590_v41 = vrot.slane %v9577_v3, 4  ;;  %v9593_v33 = vsel %vm1345_vm2, %v9577_v3, %v9592_v23 }
 0xfb2   : > { %v11190_v11 = vpop.eup %11189  ;;  %v9601_v15 = vperm.slane %v9593_v33, %v11875_v52 }
 0xfb3   : > { %v9591_v31 = vsel %vm1345_vm2, %v9590_v41, %v9571_v50  ;;  %v8919_v20 = vsel %vm2463_vm3, %v11190_v11, 0.0 }
 0xfb4   : > { %8920 = vadd.xlane.f32.xlu1 %v8919_v20  ;;  %v9597_v22 = vperm.slane %v9591_v31, %v11875_v52  ;;  %v9606_v10 = vrot.slane %v9601_v15, 4  ;;  %v9609_v46 = vsel %vm1345_vm2, %v9601_v15, %v9608_v49 }
 0xfb6   : > { %v8912_v48 = vpop.xlane.xlu1 %8911  ;;  %v9605_v27 = vsel %vm1345_vm2, %v9597_v22, %v9604_v59  ;;  %v9607_v55 = vsel %vm1345_vm2, %v9606_v10, %v9589_v16  ;;  %v9602_v61 = vrot.slane %v9597_v22, 4 }
 0xfb7   : > { %11191 = vrcp.f32 %v8912_v48  ;;  %10715 = vmatmul.msk.f32.vlgmr.msrb.gmra.mxu2 %vm2463_vm3, %v9605_v27  ;;  %10717 = vmatmul.msk.f32.vlgmr.msrb.gmra.mxu3 %vm2463_vm3, %v9607_v55 }
 0xfb8   : > { %v9603_v53 = vsel %vm1345_vm2, %v9602_v61, %v9585_v17 }
 0xfbd   : > { %v11192_v60 = vpop.eup %11191 }
 0xfbe   : > { %v13507_v12 = vmul.f32 %v11192_v60, %v11184_v32  ;;  %v7811_v32 = vpop.trf.xlu2 }
 0xfbf   : > { %v7925_v63 = vrot.slane %v7811_v32, 4 }
 0xfc0   : > { %10712 = vmatpush.xpose.msk.msra.mxu1 %vm2463_vm3, %v13507_v12 }
 0xfc1   : > { %v7926_v21 = vsel %vm1345_vm2, %v7875_v57, %v7925_v63 }
 0xfc2   : > { %v7934_v6 = vperm.slane %v7926_v21, %v11867_v38 }
 0xfc3   : > { %10713 = vmatmul.msk.f32.vlgmr.msra.gmra.mxu1 %vm2463_vm3, %v9603_v53 }
 0xfc4   : > { %v7961_v56 = vrot.slane %v7934_v6, 4 }
 0xfcb   : > { %v7907_v2 = vpop.trf.xlu0 }
 0xfcc   : > { %v7935_v4 = vrot.slane %v7907_v2, 4 }
 0xfee   : > { %7827 = vxpose.xlu1.b32.start.end [1/1] (short) (narrow) %v13435_v34, 8  ;;  %v7924_v34 = vsel %vm1345_vm2, %v7923_v19, %v7811_v32 }
 0xfef   : > { %v7930_v8 = vperm.slane %v7924_v34, %v11867_v38 }
 0xff1   : > { %v7949_v62 = vrot.slane %v7930_v8, 4 }
0x1027   : > { %v8921_v43 = vpop.xlane.xlu1 %8920 }
0x1028   : > { %11193 = vrcp.f32 %v8921_v43 }
0x102e   : > { %v11194_v5 = vpop.eup %11193 }
0x102f   : > { %v13513_v29 = vmul.f32 %v11194_v5, %v11190_v11 }
0x1031   : > { %10718 = vmatpush.xpose.msk.msra.mxu0 %vm2463_vm3, %v13513_v29 }
0x1034   : > { %10719 = vmatmul.msk.f32.vlgmr.msra.gmra.mxu0 %vm2463_vm3, %v9609_v46 }
0x103a   : > { %v9685_v45 = vpop.f32.mrf.mxu3  ;;  %v9659_v14 = vpop.f32.mrf.mxu2 }
0x103b   : > { %9778 = vxpose.xlu2.b32.start.end [1/1] (short) (narrow) %v9685_v45, 8 }
0x1043   : > { %9746 = vxpose.xlu2.b32.start.end [1/1] (short) (narrow) %v9659_v14, 8 }
0x1092   : > { %v7843_v25 = vpop.trf.xlu1 }
0x1093   : > { %v7936_v36 = vsel %vm1345_vm2, %v7935_v4, %v7843_v25  ;;  %v7937_v47 = vrot.slane %v7843_v25, 4 }
0x1094   : > { %v7942_v18 = vperm.slane %v7936_v36, %v11867_v38 }
0x1095   : > { %v7938_v58 = vsel %vm1345_vm2, %v7907_v2, %v7937_v47 }
0x1096   : > { %v7946_v40 = vperm.slane %v7938_v58, %v11867_v38  ;;  %v7947_v24 = vrot.slane %v7942_v18, 4  ;;  %v7950_v57 = vsel %vm1345_vm2, %v7942_v18, %v7949_v62  ;;  %v9633_v58 = vpop.f32.mrf.mxu1 }
0x1097   : > { %v7958_v28 = vperm.slane %v7950_v57, %v11875_v52  ;;  %v9971_v57 = vld [vmem:[%s11679_s3 + $0x8] sm:$0xff] }
0x1098   : > { %v7948_v0 = vsel %vm1345_vm2, %v7947_v24, %v7930_v8  ;;  %v7959_v39 = vrot.slane %v7946_v40, 4  ;;  %v7962_v50 = vsel %vm1345_vm2, %v7946_v40, %v7961_v56  ;;  %v9973_v40 = vld [vmem:[%s11679_s3 + $0x18] sm:$0xff]  ;;  %v9972_v24 = vld [vmem:[%s11679_s3 + $0x10] sm:$0xff] }
0x1099   : > { %v7954_v54 = vperm.slane %v7948_v0, %v11875_v52  ;;  %v7970_v9 = vperm.slane %v7962_v50, %v11875_v52  ;;  %v7973_v16 = vrot.slane %v7958_v28, 4  ;;  %9993 = vmatpush.msrb.mxu1 %v9973_v40  ;;  %v9970_v28 = vld [vmem:[%s11679_s3] sm:$0xff] }
0x109a   : > { %v7960_v13 = vsel %vm1345_vm2, %v7959_v39, %v7934_v6 }
0x109b   : > { %v7966_v23 = vperm.slane %v7960_v13, %v11875_v52  ;;  %v7971_v3 = vrot.slane %v7954_v54, 4  ;;  %v7974_v17 = vsel %vm1345_vm2, 0.0, %v7973_v16  ;;  %v7977_v41 = vrot.slane %v7970_v9, 4  ;;  %9994 = vmatpush.msrb.mxu1 %v9972_v24 }
0x109c   : > { %v7979_v33 = vsel %vm1345_vm2, %v7973_v16, %v7954_v54  ;;  %v7984_v11 = vrot.slane %v7974_v17, 4 }
0x109d   : > { %v7972_v15 = vsel %vm1345_vm2, 0.0, %v7971_v3  ;;  %v7975_v49 = vrot.slane %v7966_v23, 4  ;;  %v7978_v31 = vsel %vm1345_vm2, 0.0, %v7977_v41  ;;  %v7983_v20 = vperm.slane %v7979_v33, %v11867_v38  ;;  %9995 = vmatpush.msrb.mxu1 %v9971_v57 }
0x109e   : > { %v7990_v22 = vsel %vm1345_vm2, %v7977_v41, %v7966_v23  ;;  %v7995_v59 = vrot.slane %v7978_v31, 4  ;;  %v7985_v10 = vsel %vm1345_vm2, %v7984_v11, %v7972_v15 }
0x109f   : > { %v7976_v46 = vsel %vm1345_vm2, 0.0, %v7975_v49  ;;  %v7989_v48 = vperm.slane %v7985_v10, %v11867_v38  ;;  %v7994_v27 = vperm.slane %v7990_v22, %v11867_v38  ;;  %v8003_v55 = vrot.slane %v7983_v20, 4  ;;  %9996 = vmatpush.msrb.mxu1 %v9970_v28 }
0x10a0   : > { %v7996_v61 = vsel %vm1345_vm2, %v7995_v59, %v7976_v46 }
0x10a1   : > { %v8000_v53 = vperm.slane %v7996_v61, %v11867_v38  ;;  %v8004_v60 = vsel %vm1345_vm2, %v7989_v48, %v8003_v55  ;;  %v8015_v43 = vrot.slane %v7994_v27, 4  ;;  %v8001_v5 = vrot.slane %v7989_v48, 4 }
0x10a2   : > { %v8012_v45 = vperm.slane %v8004_v60, %v11875_v52 }
0x10a3   : > { %v8016_v14 = vsel %vm1345_vm2, %v8000_v53, %v8015_v43  ;;  %v8002_v32 = vsel %vm1345_vm2, %v8001_v5, %v7983_v20  ;;  %v8013_v19 = vrot.slane %v8000_v53, 4 }
0x10a4   : > { %v8024_v63 = vperm.slane %v8016_v14, %v11875_v52  ;;  %v8008_v2 = vperm.slane %v8002_v32, %v11875_v52  ;;  %v8031_v6 = vrot.slane %v8012_v45, 4 }
0x10a5   : > { %v8014_v34 = vsel %vm1345_vm2, %v8013_v19, %v7994_v27 }
0x10a6   : > { %v8029_v21 = vrot.slane %v8024_v63, 4  ;;  %v8020_v4 = vperm.slane %v8014_v34, %v11875_v52  ;;  %v8027_v8 = vrot.slane %v8008_v2, 4  ;;  %v8032_v18 = vsel %vm1345_vm2, %v8024_v63, %v8031_v6 }
0x10a8   : > { %v8030_v25 = vsel %vm1345_vm2, %v8029_v21, %v8012_v45  ;;  %v8028_v36 = vsel %vm1345_vm2, %v8020_v4, %v8027_v8  ;;  %v8025_v47 = vrot.slane %v8020_v4, 4 }
0x10a9   : > { %8038 = vrot.lane.b32.xlu1 %v8030_v25, %s11481_s18  ;;  %8034 = vrot.lane.b32.xlu0 %v8028_v36, %s11483_s27 }
0x10aa   : > { %v8026_v62 = vsel %vm1345_vm2, %v8025_v47, %v8008_v2 }
0x10ac   : > { %8042 = vrot.lane.b32.xlu2 %v8032_v18, %s11482_s10 }
0x10b1   : > { %v9711_v56 = vpop.f32.mrf.mxu0 }
0x10cb   : > { %9714 = vxpose.xlu0.b32.start.end [1/1] (short) (narrow) %v9633_v58, 8 }
0x10d4   : > { %v9794_v0 = vpop.trf.xlu2 }
0x10d5   : > { %v9842_v33 = vrot.slane %v9794_v0, 4 }
0x10dc   : > { %v9762_v39 = vpop.trf.xlu2 }
0x10dd   : > { %v9856_v15 = vrot.slane %v9762_v39, 4 }
0x10de   : > { %9810 = vxpose.xlu1.b32.start.end [1/1] (short) (narrow) %v9711_v56, 8 }
0x1106   : > { %v8043_v16 = vpop.permute.xlu2 %8042 }
0x111b   : > { %v8039_v50 = vpop.permute.xlu1 %8038  ;;  %v8035_v54 = vpop.permute.xlu0 %8034 }
0x111c   : > { %v8045_v9 = vsel %vm2463_vm3, %v8026_v62, %v8035_v54 }
0x111d   : > { %v8046_v13 = vsel %vm3643_vm4, %v8045_v9, %v8039_v50 }
0x111e   : > { %v8047_v23 = vsel %vm3645_vm5, %v8046_v13, %v8043_v16 }
0x111f   : > { %8048 = vst.msk [vmem:[#allocation3] sm:$0xff] %vm1294_vm1, %v8047_v23 }
0x1126   : > { %v9968_v3 = vld [vmem:[#allocation3] sm:$0xff] }
0x1127   : > { %10720 = vmatmul.msk.f32.vlgmr.msrb.gmra.mxu1 %vm1294_vm1, %v9968_v3 }
0x116f   : > { %v9730_v17 = vpop.trf.xlu0 }
0x1170   : > { %v9844_v41 = vrot.slane %v9730_v17, 4  ;;  %v9843_v49 = vsel %vm1345_vm2, %v9842_v33, %v9730_v17 }
0x1171   : > { %v9849_v20 = vperm.slane %v9843_v49, %v11867_v38 }
0x1172   : > { %v9845_v11 = vsel %vm1345_vm2, %v9794_v0, %v9844_v41 }
0x1173   : > { %v9853_v31 = vperm.slane %v9845_v11, %v11867_v38  ;;  %v9868_v55 = vrot.slane %v9849_v20, 4 }
0x1175   : > { %v9880_v46 = vrot.slane %v9853_v31, 4 }
0x1182   : > { %v9826_v22 = vpop.trf.xlu1 }
0x1183   : > { %v9854_v59 = vrot.slane %v9826_v22, 4  ;;  %v9857_v10 = vsel %vm1345_vm2, %v9826_v22, %v9856_v15 }
0x1184   : > { %v9865_v48 = vperm.slane %v9857_v10, %v11867_v38 }
0x1185   : > { %v9855_v27 = vsel %vm1345_vm2, %v9854_v59, %v9762_v39 }
0x1186   : > { %v9861_v61 = vperm.slane %v9855_v27, %v11867_v38  ;;  %v9878_v53 = vrot.slane %v9865_v48, 4  ;;  %v9881_v60 = vsel %vm1345_vm2, %v9865_v48, %v9880_v46  ;;  %v13614_v48 = vld [vmem:[%s11727_s11] sm:$0xff] }
0x1187   : > { %v9889_v43 = vperm.slane %v9881_v60, %v11875_v52 }
0x1188   : > { %v9866_v5 = vrot.slane %v9861_v61, 4  ;;  %v9869_v45 = vsel %vm1345_vm2, %v9861_v61, %v9868_v55  ;;  %v9879_v14 = vsel %vm1345_vm2, %v9878_v53, %v9853_v31 }
0x1189   : > { %v9877_v32 = vperm.slane %v9869_v45, %v11875_v52  ;;  %v9885_v19 = vperm.slane %v9879_v14, %v11875_v52  ;;  %v9896_v63 = vrot.slane %v9889_v43, 4 }
0x118a   : > { %v9867_v2 = vsel %vm1345_vm2, %v9866_v5, %v9849_v20 }
0x118b   : > { %v9873_v34 = vperm.slane %v9867_v2, %v11875_v52  ;;  %v9892_v21 = vrot.slane %v9877_v32, 4  ;;  %v9894_v4 = vrot.slane %v9885_v19, 4  ;;  %v9897_v8 = vsel %vm1345_vm2, 0.0, %v9896_v63 }
0x118c   : > { %v9909_v6 = vsel %vm1345_vm2, %v9896_v63, %v9885_v19  ;;  %v9914_v25 = vrot.slane %v9897_v8, 4 }
0x118d   : > { %v9890_v36 = vrot.slane %v9873_v34, 4  ;;  %v9893_v47 = vsel %vm1345_vm2, 0.0, %v9892_v21  ;;  %v9895_v62 = vsel %vm1345_vm2, 0.0, %v9894_v4  ;;  %v9898_v18 = vsel %vm1345_vm2, %v9892_v21, %v9873_v34 }
0x118e   : > { %v9903_v58 = vrot.slane %v9893_v47, 4  ;;  %v9913_v56 = vperm.slane %v9909_v6, %v11867_v38  ;;  %v9902_v40 = vperm.slane %v9898_v18, %v11867_v38  ;;  %v9915_v24 = vsel %vm1345_vm2, %v9914_v25, %v9895_v62  ;;  %v10058_v47 = vld [vmem:[%s11729_s0 + $0x10] sm:$0xff]  ;;  %v10057_v62 = vld [vmem:[%s11729_s0 + $0x8] sm:$0xff]  ;;  %v10056_v18 = vld [vmem:[%s11729_s0] sm:$0xff] }
0x118f   : > { %v9891_v57 = vsel %vm1345_vm2, 0.0, %v9890_v36  ;;  %v9919_v28 = vperm.slane %v9915_v24, %v11867_v38  ;;  %v10059_v36 = vld [vmem:[%s11729_s0 + $0x18] sm:$0xff] }
0x1190   : > { %v9904_v0 = vsel %vm1345_vm2, %v9903_v58, %v9891_v57  ;;  %v9922_v39 = vrot.slane %v9902_v40, 4  ;;  %v9934_v50 = vrot.slane %v9913_v56, 4  ;;  %10082 = vmatpush.msra.mxu2 %v10059_v36 }
0x1191   : > { %v9908_v54 = vperm.slane %v9904_v0, %v11867_v38  ;;  %v9932_v9 = vrot.slane %v9919_v28, 4 }
0x1192   : > { %v9935_v13 = vsel %vm1345_vm2, %v9919_v28, %v9934_v50  ;;  %10083 = vmatpush.msra.mxu2 %v10058_v47  ;;  %v10050_v50 = vperm.slane %v13614_v48, 6 }
0x1193   : > { %v9923_v16 = vsel %vm1345_vm2, %v9908_v54, %v9922_v39  ;;  %v9920_v23 = vrot.slane %v9908_v54, 4  ;;  %v9933_v3 = vsel %vm1345_vm2, %v9932_v9, %v9913_v56  ;;  %v9943_v11 = vperm.slane %v9935_v13, %v11875_v52 }
0x1194   : > { %v9931_v17 = vperm.slane %v9923_v16, %v11875_v52  ;;  %v9939_v41 = vperm.slane %v9933_v3, %v11875_v52  ;;  %10084 = vmatpush.msra.mxu2 %v10057_v62  ;;  %v10053_v16 = vperm.slane %v13614_v48, 7  ;;  %v10102_v3 = vld [vmem:[%s11721_s29 + $0x38] sm:$0xff] }
0x1195   : > { %v9921_v33 = vsel %vm1345_vm2, %v9920_v23, %v9902_v40  ;;  %v9948_v10 = vrot.slane %v9943_v11, 4  ;;  %10119 = vmatpush.msra.mxu3 %v10102_v3 }
0x1196   : > { %v9950_v15 = vrot.slane %v9931_v17, 4  ;;  %v9927_v38 = vperm.slane %v9921_v33, %v11875_v52  ;;  %v9944_v49 = vrot.slane %v9939_v41, 4  ;;  %v9974_v52 = vperm.slane %v13614_v48, 2  ;;  %10085 = vmatpush.msra.mxu2 %v10056_v18  ;;  %v10099_v33 = vld [vmem:[%s11721_s29 + $0x20] sm:$0xff] }
0x1197   : > { %v9949_v46 = vsel %vm1345_vm2, %v9948_v10, %v9931_v17  ;;  %v10101_v17 = vld [vmem:[%s11721_s29 + $0x30] sm:$0xff]  ;;  %v10095_v10 = vld [vmem:[%s11721_s29] sm:$0xff] }
0x1198   : > { %v9951_v31 = vsel %vm1345_vm2, %v9943_v11, %v9950_v15  ;;  %v9946_v20 = vrot.slane %v9927_v38, 4  ;;  %v9945_v22 = vsel %vm1345_vm2, %v9944_v49, %v9927_v38  ;;  %10120 = vmatpush.msra.mxu3 %v10101_v17  ;;  %v10098_v11 = vld [vmem:[%s11721_s29 + $0x18] sm:$0xff] }
0x1199   : > { %9961 = vrot.lane.b32.xlu0 %v9951_v31, %s11482_s10 }
0x119a   : > { %v9947_v59 = vsel %vm1345_vm2, %v9939_v41, %v9946_v20  ;;  %v10100_v41 = vld [vmem:[%s11721_s29 + $0x28] sm:$0xff] }
0x119b   : > { %9953 = vrot.lane.b32.xlu1 %v9947_v59, %s11483_s27  ;;  %10121 = vmatpush.msra.mxu3 %v10100_v41  ;;  %v10096_v59 = vld [vmem:[%s11721_s29 + $0x8] sm:$0xff] }
0x119d   : > { %10122 = vmatpush.msra.mxu3 %v10099_v33 }
0x119f   : > { %10123 = vmatpush.msra.mxu3 %v10098_v11 }
0x11a3   : > { %9957 = vrot.lane.b32.xlu1 %v9949_v46, %s11481_s18  ;;  %v11124_v46 = vld [vmem:[%s13809_s16] ss:$0 sm:$0xff] }
0x11a4   : > { %v9998_v27 = vpop.f32.mrf.mxu1 }
0x11a5   : > { %v9999_v55 = vadd.f32 %v9998_v27, %v9974_v52 }
0x11a7   : > { %v10004_v61 = vadd.f32 %v9999_v55, %v12808_v30 }
0x11a9   : > { %v10006_v53 = vsel %vm1294_vm1, %v10004_v61, 0.0 }
0x11cd   : > { %10007 = vadd.xlane.f32.xlu1 %v10006_v53 }
0x120b   : > { %v9962_v45 = vpop.permute.xlu0 %9961 }
0x120d   : > { %v9954_v60 = vpop.permute.xlu1 %9953 }
0x120e   : > { %v9964_v43 = vsel %vm2463_vm3, %v9945_v22, %v9954_v60  ;;  %v10097_v22 = vld [vmem:[%s11721_s29 + $0x10] sm:$0xff] }
0x120f   : > { %10124 = vmatpush.msra.mxu3 %v10097_v22 }
0x1211   : > { %10125 = vmatpush.msra.mxu3 %v10096_v59 }
0x1213   : > { %10126 = vmatpush.msra.mxu3 %v10095_v10 }
0x1215   : > { %v9958_v5 = vpop.permute.xlu1 %9957 }
0x1216   : > { %v9965_v14 = vsel %vm3643_vm4, %v9964_v43, %v9958_v5 }
0x1217   : > { %v9966_v32 = vsel %vm3645_vm5, %v9965_v14, %v9962_v45 }
0x1218   : > { %9967 = vst.msk [vmem:[#allocation3 + $0x8] sm:$0xff] %vm1294_vm1, %v9966_v32 }
0x121f   : > { %v9969_v19 = vld [vmem:[#allocation3 + $0x8] sm:$0xff] }
0x1220   : > { %10721 = vmatmul.msk.f32.gmra.mxu1 %vm1294_vm1, %v9969_v19 }
0x1240   : > { %v10008_v30 = vpop.xlane.xlu1 %10007 }
0x1241   : > { %v10012_v63 = vmul.f32 %v10008_v30, %v12678_v37 }
0x1243   : > { %v10014_v2 = vsub.f32 %v10004_v61, %v10012_v63 }
0x1245   : > { %v10016_v34 = vmul.f32 %v10014_v2, %v10014_v2 }
0x1247   : > { %v10018_v21 = vsel %vm1294_vm1, %v10016_v34, 0.0 }
0x1248   : > { %10019 = vadd.xlane.f32.xlu0 %v10018_v21  ;;  %v10103_v21 = vperm.slane %v13614_v48, 3 }
0x129d   : > { %v10001_v4 = vpop.f32.mrf.mxu1 }
0x129e   : > { %v10002_v8 = vadd.f32 %v10001_v4, %v9974_v52 }
0x12a0   : > { %v10005_v6 = vadd.f32 %v10002_v8, %v13275_v35 }
0x12a2   : > { %v10009_v25 = vsel %vm1294_vm1, %v10005_v6, 0.0 }
0x12a3   : > { %10010 = vadd.xlane.f32.xlu2 %v10009_v25 }
0x12bb   : > { %v10020_v58 = vpop.xlane.xlu0 %10019 }
0x12bc   : > { %v10024_v56 = vmul.f32 %v10020_v58, %v12678_v37 }
0x12be   : > { %v10026_v40 = vadd.f32 1e-05, %v10024_v56 }
0x12c0   : > { %11195 = vrsqrt.f32 %v10026_v40  ;;  %vm10034_vm14 = vweird.f32 %v10026_v40 }
0x12c6   : > { %v11196_v24 = vpop.eup %11195 }
0x12c7   : > { %v10029_v57 = vmul.f32 %v11196_v24, %v10026_v40  ;;  %vm10035_vm13 = vweird.f32 %v11196_v24 }
0x12c8   : > { %vm10036_vm15 = vmor %vm10034_vm14, %vm10035_vm13 }
0x12c9   : > { %v10030_v35 = vmul.f32 %v11196_v24, %v10029_v57 }
0x12cb   : > { %v10031_v28 = vmul.f32 0.5, %v10030_v35 }
0x12cd   : > { %v10032_v0 = vsub.f32 1.5, %v10031_v28 }
0x12cf   : > { %v10033_v39 = vmul.f32 %v11196_v24, %v10032_v0 }
0x12d1   : > { %v10037_v54 = vsel %vm10036_vm15, %v11196_v24, %v10033_v39 }
0x12d2   : > { %v10048_v9 = vmul.f32 %v10037_v54, %v10014_v2 }
0x12d4   : > { %v10051_v13 = vmul.f32 %v10050_v50, %v10048_v9 }
0x12d6   : > { %v10054_v23 = vadd.f32 %v10053_v16, %v10051_v13 }
0x12d8   : > { %10722 = vmatmul.msk.f32.vlgmr.msra.gmra.mxu2 %vm1294_vm1, %v10054_v23 }
0x1316   : > { %v10011_v15 = vpop.xlane.xlu2 %10010 }
0x1317   : > { %v10013_v38 = vmul.f32 %v10011_v15, %v12678_v37 }
0x1319   : > { %v10015_v49 = vsub.f32 %v10005_v6, %v10013_v38 }
0x131b   : > { %v10017_v31 = vmul.f32 %v10015_v49, %v10015_v49 }
0x131d   : > { %v10021_v20 = vsel %vm1294_vm1, %v10017_v31, 0.0 }
0x131e   : > { %10022 = vadd.xlane.f32.xlu2 %v10021_v20 }
0x135b   : > { %v10087_v52 = vpop.f32.mrf.mxu2 }
0x135c   : > { %v10088_v27 = vadd.f32 %v11124_v46, %v10087_v52 }
0x135e   : > { %v10093_v55 = vmax.f32 %v10088_v27, 0.0 }
0x1360   : > { %10724 = vmatmul.msk.f32.vlgmr.msra.gmra.mxu3 %vm10104_vm0, %v10093_v55 }
0x1391   : > { %v10023_v61 = vpop.xlane.xlu2 %10022 }
0x1392   : > { %v10025_v53 = vmul.f32 %v10023_v61, %v12678_v37 }
0x1394   : > { %v10027_v60 = vadd.f32 1e-05, %v10025_v53 }
0x1396   : > { %11197 = vrsqrt.f32 %v10027_v60  ;;  %vm10044_vm4 = vweird.f32 %v10027_v60 }
0x139c   : > { %v11198_v43 = vpop.eup %11197 }
0x139d   : > { %v10039_v5 = vmul.f32 %v11198_v43, %v10027_v60  ;;  %vm10045_vm2 = vweird.f32 %v11198_v43 }
0x139e   : > { %vm10046_vm5 = vmor %vm10044_vm4, %vm10045_vm2 }
0x139f   : > { %v10040_v45 = vmul.f32 %v11198_v43, %v10039_v5 }
0x13a1   : > { %v10041_v14 = vmul.f32 0.5, %v10040_v45 }
0x13a3   : > { %v10042_v32 = vsub.f32 1.5, %v10041_v14 }
0x13a5   : > { %v10043_v19 = vmul.f32 %v11198_v43, %v10042_v32 }
0x13a7   : > { %v10047_v30 = vsel %vm10046_vm5, %v11198_v43, %v10043_v19 }
0x13a8   : > { %v10049_v63 = vmul.f32 %v10047_v30, %v10015_v49 }
0x13aa   : > { %v10052_v2 = vmul.f32 %v10050_v50, %v10049_v63 }
0x13ac   : > { %v10055_v34 = vadd.f32 %v10053_v16, %v10052_v2 }
0x13ae   : > { %10723 = vmatmul.msk.f32.gmra.mxu2 %vm1294_vm1, %v10055_v34 }
0x13e3   : > { %v10128_v4 = vpop.f32.mrf.mxu3 }
0x13e4   : > { %v10129_v8 = vadd.f32 %v10128_v4, %v10103_v21 }
0x13e6   : > { %v10134_v6 = vadd.f32 %v10129_v8, %v10054_v23  ;;  %v1285_v23 = vld [vmem:[%s11727_s11 + $0x8] sm:$0x3] }
0x13e7   : > { %v10180_v41 = vperm.slane %v1285_v23, 0  ;;  %v10183_v11 = vperm.slane %v1285_v23, 1 }
0x13e8   : > { %v10136_v25 = vsel %vm1294_vm1, %v10134_v6, 0.0 }
0x13e9   : > { %10137 = vadd.xlane.f32.xlu1 %v10136_v25 }
0x1431   : > { %v10090_v36 = vpop.f32.mrf.mxu2 }
0x1432   : > { %v10091_v47 = vadd.f32 %v11124_v46, %v10090_v36 }
0x1434   : > { %v10094_v62 = vmax.f32 %v10091_v47, 0.0 }
0x1436   : > { %10725 = vmatmul.msk.f32.gmra.mxu3 %vm10104_vm0, %v10094_v62 }
0x145c   : > { %v10138_v18 = vpop.xlane.xlu1 %10137 }
0x145d   : > { %v10142_v58 = vmul.f32 %v10138_v18, %v12678_v37 }
0x145f   : > { %v10144_v56 = vsub.f32 %v10134_v6, %v10142_v58 }
0x1461   : > { %v10146_v40 = vmul.f32 %v10144_v56, %v10144_v56 }
0x1463   : > { %v10148_v24 = vsel %vm1294_vm1, %v10146_v40, 0.0 }
0x1464   : > { %10149 = vadd.xlane.f32.xlu2 %v10148_v24 }
0x14b9   : > { %v10131_v48 = vpop.f32.mrf.mxu3 }
0x14ba   : > { %v10132_v57 = vadd.f32 %v10131_v48, %v10103_v21 }
0x14bc   : > { %v10135_v35 = vadd.f32 %v10132_v57, %v10055_v34 }
0x14be   : > { %v10139_v28 = vsel %vm1294_vm1, %v10135_v35, 0.0 }
0x14bf   : > { %10140 = vadd.xlane.f32.xlu0 %v10139_v28 }
0x14d7   : > { %v10150_v0 = vpop.xlane.xlu2 %10149 }
0x14d8   : > { %v10154_v39 = vmul.f32 %v10150_v0, %v12678_v37 }
0x14da   : > { %v10156_v50 = vadd.f32 1e-05, %v10154_v39 }
0x14dc   : > { %11199 = vrsqrt.f32 %v10156_v50  ;;  %vm10164_vm7 = vweird.f32 %v10156_v50 }
0x14e2   : > { %v11200_v54 = vpop.eup %11199 }
0x14e3   : > { %v10159_v9 = vmul.f32 %v11200_v54, %v10156_v50  ;;  %vm10165_vm6 = vweird.f32 %v11200_v54 }
0x14e4   : > { %vm10166_vm8 = vmor %vm10164_vm7, %vm10165_vm6 }
0x14e5   : > { %v10160_v16 = vmul.f32 %v11200_v54, %v10159_v9 }
0x14e7   : > { %v10161_v13 = vmul.f32 0.5, %v10160_v16 }
0x14e9   : > { %v10162_v3 = vsub.f32 1.5, %v10161_v13 }
0x14eb   : > { %v10163_v17 = vmul.f32 %v11200_v54, %v10162_v3 }
0x14ed   : > { %v10167_v33 = vsel %vm10166_vm8, %v11200_v54, %v10163_v17 }
0x14ee   : > { %v10178_v15 = vmul.f32 %v10167_v33, %v10144_v56 }
0x14f0   : > { %v10181_v38 = vmul.f32 %v10180_v41, %v10178_v15 }
0x14f2   : > { %v10184_v49 = vadd.f32 %v10183_v11, %v10181_v38 }
0x14f4   : > { %10186 = vst.msk [vmem:[#allocation12] sm:$0xff] %vm1294_vm1, %v10184_v49 }
0x1532   : > { %v10141_v31 = vpop.xlane.xlu0 %10140 }
0x1533   : > { %v10143_v20 = vmul.f32 %v10141_v31, %v12678_v37 }
0x1535   : > { %v10145_v22 = vsub.f32 %v10135_v35, %v10143_v20 }
0x1537   : > { %v10147_v59 = vmul.f32 %v10145_v22, %v10145_v22 }
0x1539   : > { %v10151_v10 = vsel %vm1294_vm1, %v10147_v59, 0.0 }
0x153a   : > { %10152 = vadd.xlane.f32.xlu1 %v10151_v10 }
0x15ad   : > { %v10153_v46 = vpop.xlane.xlu1 %10152 }
0x15ae   : > { %v10155_v52 = vmul.f32 %v10153_v46, %v12678_v37 }
0x15b0   : > { %v10157_v27 = vadd.f32 1e-05, %v10155_v52 }
0x15b2   : > { %11201 = vrsqrt.f32 %v10157_v27  ;;  %vm10174_vm10 = vweird.f32 %v10157_v27 }
0x15b8   : > { %v11202_v55 = vpop.eup %11201 }
0x15b9   : > { %v10169_v61 = vmul.f32 %v11202_v55, %v10157_v27  ;;  %vm10175_vm9 = vweird.f32 %v11202_v55 }
0x15ba   : > { %vm10176_vm11 = vmor %vm10174_vm10, %vm10175_vm9 }
0x15bb   : > { %v10170_v53 = vmul.f32 %v11202_v55, %v10169_v61 }
0x15bd   : > { %v10171_v60 = vmul.f32 0.5, %v10170_v53 }
0x15bf   : > { %v10172_v43 = vsub.f32 1.5, %v10171_v60 }
0x15c1   : > { %v10173_v5 = vmul.f32 %v11202_v55, %v10172_v43 }
0x15c3   : > { %v10177_v45 = vsel %vm10176_vm11, %v11202_v55, %v10173_v5 }
0x15c4   : > { %v10179_v14 = vmul.f32 %v10177_v45, %v10145_v22 }
0x15c6   : > { %v10182_v32 = vmul.f32 %v10180_v41, %v10179_v14  ;;  %10191 = sbr.rel (%p10726_p4) target bundleno = 5587 (0x15d3), region = 411 }
0x15c8   : > { %v10185_v19 = vadd.f32 %v10183_v11, %v10182_v32 }
0x15ca   : > { %10187 = vst.msk [vmem:[#allocation12 + $0x8] sm:$0xff] %vm1294_vm1, %v10185_v19 }
0x15cb   : > { %10192 = vst.msk [vmem:[#allocation13] sm:$0xff] %vm2463_vm3, %v13425_v7 }
0x15cc   : > { %10193 = vst.msk [vmem:[#allocation13 + $0x8] sm:$0xff] %vm2463_vm3, %v13345_v1 }
0x15cd   : > { %10194 = vst.msk [vmem:[#allocation13 + $0x10] sm:$0xff] %vm2463_vm3, %v13338_v26 }
0x15ce   : > { %10195 = vst.msk [vmem:[#allocation13 + $0x18] sm:$0xff] %vm2463_vm3, %v13454_v44 }
0x15cf   : > { %10197 = vst.msk [vmem:[#allocation13 + $0x20] sm:$0xff] %vm2463_vm3, %v13507_v12 }
0x15d0   : > { %10198 = vst.msk [vmem:[#allocation13 + $0x28] sm:$0xff] %vm2463_vm3, %v13479_v51 }
0x15d1   : > { %10199 = vst.msk [vmem:[#allocation13 + $0x30] sm:$0xff] %vm2463_vm3, %v13475_v42 }
0x15d2   : > { %10200 = vst.msk [vmem:[#allocation13 + $0x38] sm:$0xff] %vm2463_vm3, %v13513_v29 }
0x15d3 PF: > { %s13810_s20 = sld [smem:[#allocation40_spill]]  ;;  %s11485_s9 = smov [#allocation12]  }
0x15d4   : > { %s13811_s11 = sld [smem:[#allocation59_spill]]  ;;  %s10209_s30 = sshll.u32 %s11485_s9, 4  ;;  %s10210_s30 = int_to_ptr.vmem [resolvable:$true] %s10209_s30 }
0x15d5   : > { %s11486_s18 = smov 128   ;;  %s13812_s21 = sld [smem:[#allocation60_spill]] }
0x15d6   : > { %s11487_s6 = smov [#allocation13]  }
0x15d7   : > { %s10227_s23 = sshll.u32 %s11487_s6, 4  ;;  %s10228_s23 = int_to_ptr.vmem [resolvable:$true] %s10227_s23 }
0x15d9   : > { %p10798_p5 = scmp.eq.s32.totalorder %s13810_s20, 1 }
0x15da   : > { %s10211_s1 = sshll.u32 %s13811_s11, 4  ;;  %s10212_s1 = int_to_ptr.hbm [resolvable:$true] %s10211_s1 }
0x15db   : > { %10772 = dma.vmem_to_hbm [thread:$0]  (%p10798_p5), %s10210_s30, 256, %s10212_s1, [#allocation8], %s11486_s18, %s11486_s18, %s11483_s27  }
0x15dc   : > { %s10229_s19 = sshll.u32 %s13812_s21, 4  ;;  %s10230_s19 = int_to_ptr.hbm [resolvable:$true] %s10229_s19 }
0x15dd   : > { %10774 = dma.vmem_to_hbm [thread:$0]  (%p10798_p5), %s10228_s23, 1024, %s10230_s19, [#allocation14], %s11486_s18, %s11486_s18, %s11483_s27  }
0x15de   : > { %11436 = dma.done.wait (%p10798_p5), [#allocation8], 256  }
0x15df   : > { %11438 = vsyncadd (%p10798_p5), [#allocation8], 4294967040 }
0x15e0   : > { %11440 = dma.done.wait (%p10798_p5), [#allocation14], 1024  }
0x15e1   : > { %11442 = vsyncadd (%p10798_p5), [#allocation14], 4294966272 }
0x15e2 PF: > { %s13813_s12 = sld [smem:[#allocation39_spill]] }
0x15e3   : > { %s13814_s0 = sld [smem:[#allocation36_spill]] }
0x15e4   : > { %s13815_s19 = sld [smem:[#allocation37_spill]] }
0x15e5   : > { %s13816_s1 = sld [smem:[#allocation42_spill]] }
0x15e6   : > { %s13817_s20 = sld [smem:[#allocation38_spill]] }
0x15e7   : > { %s13818_s21 = sld [smem:[#allocation41_spill]] }
0x15e8   : > { %s45_s5 = sadd.s32 1, %s13813_s12  }
0x15e9   : > { %p42_p6 = scmp.ge.s32.totalorder %s45_s5, 4  }
0x15eb   :  { %44 = sbr.rel (!%p42_p6) target bundleno = 38 (0x26), region = 584 }
0x15f0   :  { %10251 = vsyncpa [#allocation7], 1 }
0x15f1   :  { %10253 = vsyncpa [#allocation7 + $0x1], 1 }
0x15f2   :  { %10254 = vsyncpa [#allocation10], 1 }
0x15f3   :  { %10256 = vsyncpa [#allocation10 + $0x1], 1 }
0x15f4   :  { %10257 = vsyncpa [#allocation8], 1 }
0x15f5   :  { %10259 = vsyncpa [#allocation8 + $0x1], 1 }
0x15f6   :  { %10260 = vsyncpa [#allocation14], 1 }
0x15f7   :  { %10261 = vsyncmov [#allocation2] }
0x15fa   :  { %s10262_s27 = vpop.sfrf %10261 }
0x15fb   :  { %p10733_p7 = scmp.ne.s32.totalorder %s10262_s27, 0 }
0x15fd   :  { %10266 = shalt.err (%p10733_p7)  }
0x15fe   :  { %10268 = vsyncmov [#allocation2 + $0x1] }
0x1601   :  { %s10269_s24 = vpop.sfrf %10268 }
0x1602   :  { %p10734_p8 = scmp.ne.s32.totalorder %s10269_s24, 0 }
0x1604   :  { %10273 = shalt.err (%p10734_p8)  }
0x1605   :  { %10275 = vsyncmov [#allocation2 + $0x2] }
0x1608   :  { %s10276_s8 = vpop.sfrf %10275 }
0x1609   :  { %p10735_p9 = scmp.ne.s32.totalorder %s10276_s8, 0 }
0x160b   :  { %10280 = shalt.err (%p10735_p9)  }
0x160c   :  { %10282 = vsyncmov [#allocation2 + $0x3] }
0x160f   :  { %s10283_s7 = vpop.sfrf %10282 }
0x1610   :  { %p10736_p10 = scmp.ne.s32.totalorder %s10283_s7, 0 }
0x1612   :  { %10287 = shalt.err (%p10736_p10)  }
0x1613   :  { %10289 = vsyncmov [#allocation2 + $0x4] }
0x1616   :  { %s10290_s28 = vpop.sfrf %10289 }
0x1617   :  { %p10737_p11 = scmp.ne.s32.totalorder %s10290_s28, 0 }
0x1619   :  { %10294 = shalt.err (%p10737_p11)  }
0x161a   :  { %10296 = vsyncmov [#allocation2 + $0x5] }
0x161d   :  { %s10297_s22 = vpop.sfrf %10296 }
0x161e   :  { %p10738_p12 = scmp.ne.s32.totalorder %s10297_s22, 0 }
0x1620   :  { %10301 = shalt.err (%p10738_p12)  }
0x1621   :  { %10303 = vsyncmov [#allocation2 + $0x6] }
0x1624   :  { %s10304_s14 = vpop.sfrf %10303 }
0x1625   :  { %p10739_p13 = scmp.ne.s32.totalorder %s10304_s14, 0 }
0x1627   :  { %10308 = shalt.err (%p10739_p13)  }
0x1628   :  { %10310 = vsyncmov [#allocation2 + $0x7] }
0x162b   :  { %s10311_s26 = vpop.sfrf %10310 }
0x162c   :  { %p10740_p0 = scmp.ne.s32.totalorder %s10311_s26, 0 }
0x162e   :  { %10315 = shalt.err (%p10740_p0)  }

</bundles_post_ra>
